<compile_context>
chip_gen: v5e
topology: v5e:2x2
jax: 0.10.0
libtpu: 0.0.40
codegen_flags: <defaults>
</compile_context>

<pallas_src>
import functools
import math

import jax
import jax.numpy as jnp
from jax.experimental import pallas as pl
from jax.experimental.pallas import tpu as pltpu


CFG = dict(
    image_size=16, patch_size=8, in_channels=3,
    hidden=32, num_heads=4, num_layers=2, mlp_dim=64,
    lora_rank=4, lora_alpha=8,
    ln_eps=1e-12,   # HF ViT layer_norm_eps default (PyTorch nn.LayerNorm is 1e-5)
)

# Matmul operands (weights + MXU inputs) in bf16; elementwise math in f32.
MXU_DTYPE = jnp.bfloat16
ACC_DTYPE = jnp.float32


# ----------------------------- in-kernel helpers ----------------------------

def _ln(x, g, b, eps):
    mean = jnp.mean(x, axis=-1, keepdims=True)
    var = jnp.mean(jnp.square(x - mean), axis=-1, keepdims=True)
    return (x - mean) * jax.lax.rsqrt(var + eps) * g + b


# ------------------------------ fused ViT kernel -----------------------------

def _vit_forward_kernel(p_ref, pw_ref, pb_ref,
                        ln1g_ref, ln1b_ref, wqkv_ref, bqkv_ref, wo_ref, bo_ref,
                        ln2g_ref, ln2b_ref, w1_ref, b1_ref, w2_ref, b2_ref,
                        lnfg_ref, lnfb_ref, o_ref,
                        *, imgs_per_step, num_layers, num_heads, head_dim, eps):
    H, dh = num_heads, head_dim

    for b in range(imgs_per_step):                       # static unroll (images in this step)
        # ---- patch embedding; CLS token / position / bias folded into pb slab ----
        x = jnp.dot(p_ref[b], pw_ref[...],
                    preferred_element_type=ACC_DTYPE) + pb_ref[...]     # (S, D) f32

        for li in range(num_layers):                     # static unroll over encoder layers
            # ---------------- attention block (pre-LN) ----------------
            xn = _ln(x, ln1g_ref[li], ln1b_ref[li], eps).astype(MXU_DTYPE)
            xh = jnp.broadcast_to(xn[None], (H,) + xn.shape)            # (H, S, D)
            # Head-major fused QKV: head split lives in the weight layout, so no
            # in-kernel head slicing of activations / transposes are needed.
            qkv = jnp.einsum('hsd,hde->hse', xh, wqkv_ref[li],
                             preferred_element_type=ACC_DTYPE) + bqkv_ref[li]  # (H,S,3dh)
            q = qkv[:, :, 0 * dh:1 * dh].astype(MXU_DTYPE)   # 1/sqrt(dh) folded into weights
            k = qkv[:, :, 1 * dh:2 * dh].astype(MXU_DTYPE)
            v = qkv[:, :, 2 * dh:3 * dh].astype(MXU_DTYPE)

            s = jnp.einsum('hqd,hkd->hqk', q, k,
                           preferred_element_type=ACC_DTYPE)            # (H, S, S)
            s = s - jnp.max(s, axis=-1, keepdims=True)
            prob = jnp.exp(s)
            prob = prob * pl.reciprocal(jnp.sum(prob, axis=-1, keepdims=True),
                                        approx=True)
            ctx = jnp.einsum('hqk,hkd->hqd', prob.astype(MXU_DTYPE), v,
                             preferred_element_type=ACC_DTYPE)          # (H, S, dh)
            # per-head output projection summed over heads == concat(heads) @ Wo
            attn = jnp.einsum('hqd,hdo->hqo', ctx.astype(MXU_DTYPE), wo_ref[li],
                              preferred_element_type=ACC_DTYPE)         # (H, S, D)
            x = x + jnp.sum(attn, axis=0) + bo_ref[li]                  # residual in VMEM

            # ---------------- MLP block (pre-LN) ----------------
            xn2 = _ln(x, ln2g_ref[li], ln2b_ref[li], eps).astype(MXU_DTYPE)
            m = jnp.dot(xn2, w1_ref[li], preferred_element_type=ACC_DTYPE) + b1_ref[li]
            m = jax.nn.gelu(m, approximate=True)  # TODO(synk): HF ViT uses exact erf GELU
            m = jnp.dot(m.astype(MXU_DTYPE), w2_ref[li],
                        preferred_element_type=ACC_DTYPE) + b2_ref[li]
            x = x + m

        # ---- final LayerNorm + store (only HBM write of the whole network) ----
        o_ref[b] = _ln(x, lnfg_ref[...], lnfb_ref[...], eps).astype(o_ref.dtype)


# ----------------------------- parameters (glue) -----------------------------

def init_params(key, cfg):
    """Raw (unmerged) parameters, mirroring the PyTorch module structure."""
    D, P, C = cfg["hidden"], cfg["patch_size"], cfg["in_channels"]
    n_patches = (cfg["image_size"] // P) ** 2
    S = n_patches + 1
    r = cfg["lora_rank"]

    def nrm(k, shape, std=0.02):
        return std * jax.random.normal(k, shape, jnp.float32)

    keys = jax.random.split(key, 4 + cfg["num_layers"])
    params = {
        "patch_w": nrm(keys[0], (C * P * P, D)),
        "patch_b": jnp.zeros((D,), jnp.float32),
        "cls": nrm(keys[1], (1, 1, D)),
        "pos": nrm(keys[2], (1, S, D)),
        "lnf_g": jnp.ones((D,), jnp.float32),
        "lnf_b": jnp.zeros((D,), jnp.float32),
        "layers": [],
    }
    for li in range(cfg["num_layers"]):
        lk = jax.random.split(keys[4 + li], 16)
        params["layers"].append({
            "ln1_g": jnp.ones((D,)), "ln1_b": jnp.zeros((D,)),
            "ln2_g": jnp.ones((D,)), "ln2_b": jnp.zeros((D,)),
            "wq": nrm(lk[0], (D, D)), "bq": jnp.zeros((D,)),
            "wk": nrm(lk[1], (D, D)), "bk": jnp.zeros((D,)),
            "wv": nrm(lk[2], (D, D)), "bv": jnp.zeros((D,)),
            "wo": nrm(lk[3], (D, D)), "bo": jnp.zeros((D,)),
            # LoRA adapters on query/key/value (nonzero B to exercise the path)
            "aq": nrm(lk[4], (D, r)), "bq2": nrm(lk[5], (r, D)),
            "ak": nrm(lk[6], (D, r)), "bk2": nrm(lk[7], (r, D)),
            "av": nrm(lk[8], (D, r)), "bv2": nrm(lk[9], (r, D)),
            "w1": nrm(lk[10], (D, cfg["mlp_dim"])), "b1": jnp.zeros((cfg["mlp_dim"],)),
            "w2": nrm(lk[11], (cfg["mlp_dim"], D)), "b2": jnp.zeros((D,)),
        })
    return params


def merge_params(params, cfg):
    """One-time host-side prep: merge LoRA (W + s*A@B), fold 1/sqrt(dh) into the
    q weights, build head-major fused QKV [L,H,D,3dh] / Wo [L,H,dh,D], stack all
    per-layer tensors with a leading L axis, precompute the [S, D] patch-embed
    bias slab (cls/pos/bias folded), and cast matmul weights to bf16."""
    D, H = cfg["hidden"], cfg["num_heads"]
    dh = D // H
    S = (cfg["image_size"] // cfg["patch_size"]) ** 2 + 1
    mlp = cfg["mlp_dim"]
    lora_scale = cfg["lora_alpha"] / cfg["lora_rank"]
    q_scale = 1.0 / math.sqrt(dh)

    cls = params["cls"].reshape(1, D)
    pos = params["pos"].reshape(S, D)
    # row 0: cls + pos[0] (patch input row 0 is zero);  rows 1..: patch_b + pos
    b_rows = jnp.broadcast_to(params["patch_b"].reshape(1, D), (S - 1, D))
    embed_bias = (jnp.concatenate([cls, b_rows], axis=0) + pos).astype(jnp.float32)

    def with_lora(w, a, bb):
        return w + lora_scale * (a @ bb)

    def to_heads_cols(w):                  # (D, D) -> (H, D, dh) per-head column blocks
        return w.reshape(D, H, dh).transpose(1, 0, 2)

    per_layer = []
    for lp in params["layers"]:
        wq = with_lora(lp["wq"], lp["aq"], lp["bq2"]) * q_scale   # scale folded into q
        wk = with_lora(lp["wk"], lp["ak"], lp["bk2"])
        wv = with_lora(lp["wv"], lp["av"], lp["bv2"])
        wqkv_h = jnp.concatenate(
            [to_heads_cols(wq), to_heads_cols(wk), to_heads_cols(wv)], axis=-1)  # (H,D,3dh)
        bqkv_h = jnp.concatenate(
            [(lp["bq"] * q_scale).reshape(H, dh),
             lp["bk"].reshape(H, dh),
             lp["bv"].reshape(H, dh)], axis=-1).reshape(H, 1, 3 * dh)             # (H,1,3dh)
        wo_h = lp["wo"].reshape(H, dh, D)                                          # (H,dh,D)
        per_layer.append(dict(
            ln1_g=lp["ln1_g"].reshape(1, D), ln1_b=lp["ln1_b"].reshape(1, D),
            ln2_g=lp["ln2_g"].reshape(1, D), ln2_b=lp["ln2_b"].reshape(1, D),
            wqkv=wqkv_h, bqkv=bqkv_h, wo=wo_h, bo=lp["bo"].reshape(1, D),
            w1=lp["w1"], b1=lp["b1"].reshape(1, mlp),
            w2=lp["w2"], b2=lp["b2"].reshape(1, D)))

    def stack(name, dtype):
        return jnp.stack([l[name] for l in per_layer], axis=0).astype(dtype)

    return {
        "patch_w": params["patch_w"].astype(MXU_DTYPE),
        "embed_bias": embed_bias,
        "lnf_g": params["lnf_g"].reshape(1, D).astype(jnp.float32),
        "lnf_b": params["lnf_b"].reshape(1, D).astype(jnp.float32),
        "ln1_g": stack("ln1_g", jnp.float32), "ln1_b": stack("ln1_b", jnp.float32),
        "ln2_g": stack("ln2_g", jnp.float32), "ln2_b": stack("ln2_b", jnp.float32),
        "wqkv": stack("wqkv", MXU_DTYPE), "bqkv": stack("bqkv", jnp.float32),
        "wo": stack("wo", MXU_DTYPE), "bo": stack("bo", jnp.float32),
        "w1": stack("w1", MXU_DTYPE), "b1": stack("b1", jnp.float32),
        "w2": stack("w2", MXU_DTYPE), "b2": stack("b2", jnp.float32),
    }


# ------------------------------- forward pass --------------------------------

def _cost_estimate(cfg, BN, S, CPP, input_arrays, out_nbytes):
    D, H = cfg["hidden"], cfg["num_heads"]
    dh = D // H
    mlp, L = cfg["mlp_dim"], cfg["num_layers"]
    per_layer = (2 * S * D * 3 * D          # fused QKV projection
                 + 4 * H * S * S * dh       # QK^T + PV
                 + 2 * S * D * D            # output projection
                 + 4 * S * D * mlp)         # MLP
    flops = BN * (2 * S * CPP * D + L * per_layer)
    transcendentals = BN * (L * (H * S * S + S * mlp + H * S) + S * (2 * L + 1))
    bytes_accessed = int(sum(a.size * a.dtype.itemsize for a in input_arrays)
                         + out_nbytes)
    return pl.CostEstimate(flops=int(flops), transcendentals=int(transcendentals),
                           bytes_accessed=bytes_accessed)


def vit_forward(mparams, x_img, cfg):
    # x_img: [BN, C, H, W] (NCHW, matches PyTorch)
    BN, C, Hh, Ww = x_img.shape
    P, D = cfg["patch_size"], cfg["hidden"]
    nph, npw = Hh // P, Ww // P
    S = nph * npw + 1
    CPP = C * P * P

    # Patch extraction is pure layout glue (one fused XLA copy).
    patches = x_img.reshape(BN, C, nph, P, npw, P)
    patches = patches.transpose(0, 2, 4, 1, 3, 5).reshape(BN, nph * npw, CPP)
    # Zero CLS input row: the CLS/pos embedding comes entirely from the bias
    # slab; the pad is fused into the extraction copy and costs one MXU row.
    # TODO(synk): review suggests assembling the CLS row in-kernel instead;
    #             kept as a pad to avoid an in-kernel sublane concatenate.
    patches = jnp.pad(patches, ((0, 0), (1, 0), (0, 0))).astype(MXU_DTYPE)

    # Two fat grid steps (one per v7x TensorCore), each handling BN/2 images.
    grid_n = 2 if (BN % 2 == 0 and BN >= 2) else 1
    g = BN // grid_n

    kernel = functools.partial(
        _vit_forward_kernel,
        imgs_per_step=g, num_layers=cfg["num_layers"],
        num_heads=cfg["num_heads"], head_dim=D // cfg["num_heads"],
        eps=cfg["ln_eps"])

    weights = [mparams[k] for k in (
        "patch_w", "embed_bias",
        "ln1_g", "ln1_b", "wqkv", "bqkv", "wo", "bo",
        "ln2_g", "ln2_b", "w1", "b1", "w2", "b2",
        "lnf_g", "lnf_b")]

    def const_spec(a):
        zeros = (0,) * a.ndim
        return pl.BlockSpec(a.shape, lambda i, z=zeros: z)

    in_specs = ([pl.BlockSpec((g, S, CPP), lambda i: (i, 0, 0))]
                + [const_spec(a) for a in weights])

    out_nbytes = BN * S * D * 4
    return pl.pallas_call(
        kernel,
        out_shape=jax.ShapeDtypeStruct((BN, S, D), jnp.float32),
        grid=(grid_n,),
        in_specs=in_specs,
        out_specs=pl.BlockSpec((g, S, D), lambda i: (i, 0, 0)),
        compiler_params=pltpu.CompilerParams(dimension_semantics=("parallel",)),
        cost_estimate=_cost_estimate(cfg, BN, S, CPP, [patches] + weights,
                                     out_nbytes),
    )(patches, *weights)


def vision_model_forward(mparams, inputs, cfg):
    # inputs: [B, num_images, C, H, W] -> list of [B, S, D] (one per image idx).
    # num_images is folded into the batch axis: ONE forward pass for all images.
    B, N, C, Hh, Ww = inputs.shape
    h = vit_forward(mparams, inputs.reshape(B * N, C, Hh, Ww), cfg)
    S, D = h.shape[1], h.shape[2]
    h = h.reshape(B, N, S, D)
    return [h[:, idx] for idx in range(N)]


# ----------------------------------- main ------------------------------------

if __name__ == "__main__":
    key = jax.random.PRNGKey(0)
    pkey, xkey = jax.random.split(key)
    params = init_params(pkey, CFG)
    mparams = merge_params(params, CFG)

    B, N_IMG = 2, 2
    inputs = jax.random.normal(
        xkey, (B, N_IMG, CFG["in_channels"], CFG["image_size"], CFG["image_size"]),
        jnp.float32)

    forward = jax.jit(lambda p, x: vision_model_forward(p, x, CFG))
    outputs = forward(mparams, inputs)
    for o in outputs:
        jax.block_until_ready(o)

    S = (CFG["image_size"] // CFG["patch_size"]) ** 2 + 1
    assert len(outputs) == N_IMG
    assert all(o.shape == (B, S, CFG["hidden"]) for o in outputs)
    assert all(bool(jnp.all(jnp.isfinite(o))) for o in outputs)
    print("KERNEL_OK")
</pallas_src>

<mosaic_0001>
module attributes {stable_mosaic.version = 11 : i64} {
  func.func @_vit_forward_kernel(%arg0: i32, %arg1: memref<2x5x192xbf16, #tpu.memory_space<vmem>>, %arg2: memref<192x32xbf16, #tpu.memory_space<vmem>>, %arg3: memref<5x32xf32, #tpu.memory_space<vmem>>, %arg4: memref<2x1x32xf32, #tpu.memory_space<vmem>>, %arg5: memref<2x1x32xf32, #tpu.memory_space<vmem>>, %arg6: memref<2x4x32x24xbf16, #tpu.memory_space<vmem>>, %arg7: memref<2x4x1x24xf32, #tpu.memory_space<vmem>>, %arg8: memref<2x4x8x32xbf16, #tpu.memory_space<vmem>>, %arg9: memref<2x1x32xf32, #tpu.memory_space<vmem>>, %arg10: memref<2x1x32xf32, #tpu.memory_space<vmem>>, %arg11: memref<2x1x32xf32, #tpu.memory_space<vmem>>, %arg12: memref<2x32x64xbf16, #tpu.memory_space<vmem>>, %arg13: memref<2x1x64xf32, #tpu.memory_space<vmem>>, %arg14: memref<2x64x32xbf16, #tpu.memory_space<vmem>>, %arg15: memref<2x1x32xf32, #tpu.memory_space<vmem>>, %arg16: memref<1x32xf32, #tpu.memory_space<vmem>>, %arg17: memref<1x32xf32, #tpu.memory_space<vmem>>, %arg18: memref<2x5x32xf32, #tpu.memory_space<vmem>>) attributes {dimension_semantics = [#tpu.dimension_semantics<parallel>], iteration_bounds = array<i64: 2>, scalar_prefetch = 0 : i64, scratch_operands = 0 : i64, tpu.core_type = #tpu.core_type<tc>, window_params = [{transform_indices = @transform_0, window_bounds = array<i64: 2, 5, 192>}, {pipeline_mode = #tpu.pipeline_mode<synchronous>, transform_indices = @transform_1, window_bounds = array<i64: 192, 32>}, {pipeline_mode = #tpu.pipeline_mode<synchronous>, transform_indices = @transform_2, window_bounds = array<i64: 5, 32>}, {pipeline_mode = #tpu.pipeline_mode<synchronous>, transform_indices = @transform_3, window_bounds = array<i64: 2, 1, 32>}, {pipeline_mode = #tpu.pipeline_mode<synchronous>, transform_indices = @transform_4, window_bounds = array<i64: 2, 1, 32>}, {pipeline_mode = #tpu.pipeline_mode<synchronous>, transform_indices = @transform_5, window_bounds = array<i64: 2, 4, 32, 24>}, {pipeline_mode = #tpu.pipeline_mode<synchronous>, transform_indices = @transform_6, window_bounds = array<i64: 2, 4, 1, 24>}, {pipeline_mode = #tpu.pipeline_mode<synchronous>, transform_indices = @transform_7, window_bounds = array<i64: 2, 4, 8, 32>}, {pipeline_mode = #tpu.pipeline_mode<synchronous>, transform_indices = @transform_8, window_bounds = array<i64: 2, 1, 32>}, {pipeline_mode = #tpu.pipeline_mode<synchronous>, transform_indices = @transform_9, window_bounds = array<i64: 2, 1, 32>}, {pipeline_mode = #tpu.pipeline_mode<synchronous>, transform_indices = @transform_10, window_bounds = array<i64: 2, 1, 32>}, {pipeline_mode = #tpu.pipeline_mode<synchronous>, transform_indices = @transform_11, window_bounds = array<i64: 2, 32, 64>}, {pipeline_mode = #tpu.pipeline_mode<synchronous>, transform_indices = @transform_12, window_bounds = array<i64: 2, 1, 64>}, {pipeline_mode = #tpu.pipeline_mode<synchronous>, transform_indices = @transform_13, window_bounds = array<i64: 2, 64, 32>}, {pipeline_mode = #tpu.pipeline_mode<synchronous>, transform_indices = @transform_14, window_bounds = array<i64: 2, 1, 32>}, {pipeline_mode = #tpu.pipeline_mode<synchronous>, transform_indices = @transform_15, window_bounds = array<i64: 1, 32>}, {pipeline_mode = #tpu.pipeline_mode<synchronous>, transform_indices = @transform_16, window_bounds = array<i64: 1, 32>}, {transform_indices = @transform_17, window_bounds = array<i64: 2, 5, 32>}]} {
    %c0 = arith.constant 0 : index
    %c0_0 = arith.constant 0 : index
    %c0_1 = arith.constant 0 : index
    %0 = vector.load %arg1[%c0, %c0_0, %c0_1] : memref<2x5x192xbf16, #tpu.memory_space<vmem>>, vector<1x5x192xbf16>
    %1 = vector.shape_cast %0 : vector<1x5x192xbf16> to vector<5x192xbf16>
    %c0_2 = arith.constant 0 : index
    %c0_3 = arith.constant 0 : index
    %2 = vector.load %arg2[%c0_2, %c0_3] : memref<192x32xbf16, #tpu.memory_space<vmem>>, vector<192x32xbf16>
    %cst = arith.constant dense<0.000000e+00> : vector<5x32xf32>
    %3 = tpu.matmul %1, %2, %cst {dimension_numbers = #tpu.dot_dimension_numbers<[1], [0], [0], [1], [0, 0, 1, 1], [], []>} : vector<5x192xbf16>, vector<192x32xbf16>, vector<5x32xf32> -> vector<5x32xf32>
    %c0_4 = arith.constant 0 : index
    %c0_5 = arith.constant 0 : index
    %4 = vector.load %arg3[%c0_4, %c0_5] : memref<5x32xf32, #tpu.memory_space<vmem>>, vector<5x32xf32>
    %5 = arith.addf %3, %4 : vector<5x32xf32>
    %c0_6 = arith.constant 0 : index
    %c0_7 = arith.constant 0 : index
    %c0_8 = arith.constant 0 : index
    %6 = vector.load %arg4[%c0_6, %c0_7, %c0_8] : memref<2x1x32xf32, #tpu.memory_space<vmem>>, vector<1x1x32xf32>
    %7 = vector.shape_cast %6 : vector<1x1x32xf32> to vector<1x32xf32>
    %c0_9 = arith.constant 0 : index
    %c0_10 = arith.constant 0 : index
    %c0_11 = arith.constant 0 : index
    %8 = vector.load %arg5[%c0_9, %c0_10, %c0_11] : memref<2x1x32xf32, #tpu.memory_space<vmem>>, vector<1x1x32xf32>
    %9 = vector.shape_cast %8 : vector<1x1x32xf32> to vector<1x32xf32>
    %cst_12 = arith.constant dense<0.000000e+00> : vector<5xf32>
    %10 = vector.multi_reduction <add>, %5, %cst_12 [1] : vector<5x32xf32> to vector<5xf32>
    %11 = vector.shape_cast %10 : vector<5xf32> to vector<5x1xf32>
    %cst_13 = arith.constant 3.200000e+01 : f32
    %12 = vector.broadcast %cst_13 : f32 to vector<5x1xf32>
    %13 = arith.divf %11, %12 : vector<5x1xf32>
    %14 = vector.broadcast %13 : vector<5x1xf32> to vector<5x32xf32>
    %15 = arith.subf %5, %14 : vector<5x32xf32>
    %16 = arith.mulf %15, %15 : vector<5x32xf32>
    %cst_14 = arith.constant dense<0.000000e+00> : vector<5xf32>
    %17 = vector.multi_reduction <add>, %16, %cst_14 [1] : vector<5x32xf32> to vector<5xf32>
    %18 = vector.shape_cast %17 : vector<5xf32> to vector<5x1xf32>
    %cst_15 = arith.constant 3.200000e+01 : f32
    %19 = vector.broadcast %cst_15 : f32 to vector<5x1xf32>
    %20 = arith.divf %18, %19 : vector<5x1xf32>
    %21 = vector.broadcast %13 : vector<5x1xf32> to vector<5x32xf32>
    %22 = arith.subf %5, %21 : vector<5x32xf32>
    %cst_16 = arith.constant 9.99999996E-13 : f32
    %23 = vector.broadcast %cst_16 : f32 to vector<5x1xf32>
    %24 = arith.addf %20, %23 : vector<5x1xf32>
    %25 = math.rsqrt %24 : vector<5x1xf32>
    %26 = vector.broadcast %25 : vector<5x1xf32> to vector<5x32xf32>
    %27 = arith.mulf %22, %26 : vector<5x32xf32>
    %28 = vector.broadcast %7 : vector<1x32xf32> to vector<5x32xf32>
    %29 = arith.mulf %27, %28 : vector<5x32xf32>
    %30 = vector.broadcast %9 : vector<1x32xf32> to vector<5x32xf32>
    %31 = arith.addf %29, %30 : vector<5x32xf32>
    %32 = arith.truncf %31 : vector<5x32xf32> to vector<5x32xbf16>
    %33 = vector.shape_cast %32 : vector<5x32xbf16> to vector<1x5x32xbf16>
    %34 = vector.shape_cast %33 : vector<1x5x32xbf16> to vector<1x5x32xbf16>
    %35 = vector.broadcast %34 : vector<1x5x32xbf16> to vector<4x5x32xbf16>
    %c0_17 = arith.constant 0 : index
    %c0_18 = arith.constant 0 : index
    %c0_19 = arith.constant 0 : index
    %c0_20 = arith.constant 0 : index
    %36 = vector.load %arg6[%c0_17, %c0_18, %c0_19, %c0_20] : memref<2x4x32x24xbf16, #tpu.memory_space<vmem>>, vector<1x4x32x24xbf16>
    %37 = vector.shape_cast %36 : vector<1x4x32x24xbf16> to vector<4x32x24xbf16>
    "tpu.trace_start"() <{level = 10 : i32, message = "hsd,hde->hse"}> : () -> ()
    %cst_21 = arith.constant dense<0.000000e+00> : vector<4x5x24xf32>
    %38 = tpu.matmul %35, %37, %cst_21 {dimension_numbers = #tpu.dot_dimension_numbers<[2], [1], [1], [2], [0, 0, 0, 1, 1, 2], [0], [0]>} : vector<4x5x32xbf16>, vector<4x32x24xbf16>, vector<4x5x24xf32> -> vector<4x5x24xf32>
    "tpu.trace_stop"() : () -> ()
    %c0_22 = arith.constant 0 : index
    %c0_23 = arith.constant 0 : index
    %c0_24 = arith.constant 0 : index
    %c0_25 = arith.constant 0 : index
    %39 = vector.load %arg7[%c0_22, %c0_23, %c0_24, %c0_25] : memref<2x4x1x24xf32, #tpu.memory_space<vmem>>, vector<1x4x1x24xf32>
    %40 = vector.shape_cast %39 : vector<1x4x1x24xf32> to vector<4x1x24xf32>
    %41 = vector.broadcast %40 : vector<4x1x24xf32> to vector<4x5x24xf32>
    %42 = arith.addf %38, %41 : vector<4x5x24xf32>
    %43 = vector.extract_strided_slice %42 {offsets = [0, 0, 0], sizes = [4, 5, 8], strides = [1, 1, 1]} : vector<4x5x24xf32> to vector<4x5x8xf32>
    %44 = arith.truncf %43 : vector<4x5x8xf32> to vector<4x5x8xbf16>
    %45 = vector.extract_strided_slice %42 {offsets = [0, 0, 8], sizes = [4, 5, 8], strides = [1, 1, 1]} : vector<4x5x24xf32> to vector<4x5x8xf32>
    %46 = arith.truncf %45 : vector<4x5x8xf32> to vector<4x5x8xbf16>
    %47 = vector.extract_strided_slice %42 {offsets = [0, 0, 16], sizes = [4, 5, 8], strides = [1, 1, 1]} : vector<4x5x24xf32> to vector<4x5x8xf32>
    %48 = arith.truncf %47 : vector<4x5x8xf32> to vector<4x5x8xbf16>
    "tpu.trace_start"() <{level = 10 : i32, message = "hqd,hkd->hqk"}> : () -> ()
    %cst_26 = arith.constant dense<0.000000e+00> : vector<4x5x5xf32>
    %49 = tpu.matmul %44, %46, %cst_26 {dimension_numbers = #tpu.dot_dimension_numbers<[2], [2], [1], [1], [0, 0, 0, 1, 1, 1], [0], [0]>} : vector<4x5x8xbf16>, vector<4x5x8xbf16>, vector<4x5x5xf32> -> vector<4x5x5xf32>
    "tpu.trace_stop"() : () -> ()
    %cst_27 = arith.constant dense<0xFF800000> : vector<4x5xf32>
    %50 = vector.multi_reduction <maximumf>, %49, %cst_27 [2] : vector<4x5x5xf32> to vector<4x5xf32>
    %51 = vector.shape_cast %50 : vector<4x5xf32> to vector<4x5x1xf32>
    %52 = vector.broadcast %51 : vector<4x5x1xf32> to vector<4x5x5xf32>
    %53 = arith.subf %49, %52 : vector<4x5x5xf32>
    %54 = math.exp %53 : vector<4x5x5xf32>
    %cst_28 = arith.constant dense<0.000000e+00> : vector<4x5xf32>
    %55 = vector.multi_reduction <add>, %54, %cst_28 [2] : vector<4x5x5xf32> to vector<4x5xf32>
    %56 = vector.shape_cast %55 : vector<4x5xf32> to vector<4x5x1xf32>
    %57 = tpu.reciprocal %56 {approx = true} : vector<4x5x1xf32> -> vector<4x5x1xf32>
    %58 = vector.broadcast %57 : vector<4x5x1xf32> to vector<4x5x5xf32>
    %59 = arith.mulf %54, %58 : vector<4x5x5xf32>
    %60 = arith.truncf %59 : vector<4x5x5xf32> to vector<4x5x5xbf16>
    "tpu.trace_start"() <{level = 10 : i32, message = "hqk,hkd->hqd"}> : () -> ()
    %cst_29 = arith.constant dense<0.000000e+00> : vector<4x5x8xf32>
    %61 = tpu.matmul %60, %48, %cst_29 {dimension_numbers = #tpu.dot_dimension_numbers<[2], [1], [1], [2], [0, 0, 0, 1, 1, 2], [0], [0]>} : vector<4x5x5xbf16>, vector<4x5x8xbf16>, vector<4x5x8xf32> -> vector<4x5x8xf32>
    "tpu.trace_stop"() : () -> ()
    %62 = arith.truncf %61 : vector<4x5x8xf32> to vector<4x5x8xbf16>
    %c0_30 = arith.constant 0 : index
    %c0_31 = arith.constant 0 : index
    %c0_32 = arith.constant 0 : index
    %c0_33 = arith.constant 0 : index
    %63 = vector.load %arg8[%c0_30, %c0_31, %c0_32, %c0_33] : memref<2x4x8x32xbf16, #tpu.memory_space<vmem>>, vector<1x4x8x32xbf16>
    %64 = vector.shape_cast %63 : vector<1x4x8x32xbf16> to vector<4x8x32xbf16>
    "tpu.trace_start"() <{level = 10 : i32, message = "hqd,hdo->hqo"}> : () -> ()
    %cst_34 = arith.constant dense<0.000000e+00> : vector<4x5x32xf32>
    %65 = tpu.matmul %62, %64, %cst_34 {dimension_numbers = #tpu.dot_dimension_numbers<[2], [1], [1], [2], [0, 0, 0, 1, 1, 2], [0], [0]>} : vector<4x5x8xbf16>, vector<4x8x32xbf16>, vector<4x5x32xf32> -> vector<4x5x32xf32>
    "tpu.trace_stop"() : () -> ()
    %cst_35 = arith.constant dense<0.000000e+00> : vector<5x32xf32>
    %66 = vector.multi_reduction <add>, %65, %cst_35 [0] : vector<4x5x32xf32> to vector<5x32xf32>
    %67 = arith.addf %5, %66 : vector<5x32xf32>
    %c0_36 = arith.constant 0 : index
    %c0_37 = arith.constant 0 : index
    %c0_38 = arith.constant 0 : index
    %68 = vector.load %arg9[%c0_36, %c0_37, %c0_38] : memref<2x1x32xf32, #tpu.memory_space<vmem>>, vector<1x1x32xf32>
    %69 = vector.shape_cast %68 : vector<1x1x32xf32> to vector<1x32xf32>
    %70 = vector.broadcast %69 : vector<1x32xf32> to vector<5x32xf32>
    %71 = arith.addf %67, %70 : vector<5x32xf32>
    %c0_39 = arith.constant 0 : index
    %c0_40 = arith.constant 0 : index
    %c0_41 = arith.constant 0 : index
    %72 = vector.load %arg10[%c0_39, %c0_40, %c0_41] : memref<2x1x32xf32, #tpu.memory_space<vmem>>, vector<1x1x32xf32>
    %73 = vector.shape_cast %72 : vector<1x1x32xf32> to vector<1x32xf32>
    %c0_42 = arith.constant 0 : index
    %c0_43 = arith.constant 0 : index
    %c0_44 = arith.constant 0 : index
    %74 = vector.load %arg11[%c0_42, %c0_43, %c0_44] : memref<2x1x32xf32, #tpu.memory_space<vmem>>, vector<1x1x32xf32>
    %75 = vector.shape_cast %74 : vector<1x1x32xf32> to vector<1x32xf32>
    %cst_45 = arith.constant dense<0.000000e+00> : vector<5xf32>
    %76 = vector.multi_reduction <add>, %71, %cst_45 [1] : vector<5x32xf32> to vector<5xf32>
    %77 = vector.shape_cast %76 : vector<5xf32> to vector<5x1xf32>
    %cst_46 = arith.constant 3.200000e+01 : f32
    %78 = vector.broadcast %cst_46 : f32 to vector<5x1xf32>
    %79 = arith.divf %77, %78 : vector<5x1xf32>
    %80 = vector.broadcast %79 : vector<5x1xf32> to vector<5x32xf32>
    %81 = arith.subf %71, %80 : vector<5x32xf32>
    %82 = arith.mulf %81, %81 : vector<5x32xf32>
    %cst_47 = arith.constant dense<0.000000e+00> : vector<5xf32>
    %83 = vector.multi_reduction <add>, %82, %cst_47 [1] : vector<5x32xf32> to vector<5xf32>
    %84 = vector.shape_cast %83 : vector<5xf32> to vector<5x1xf32>
    %cst_48 = arith.constant 3.200000e+01 : f32
    %85 = vector.broadcast %cst_48 : f32 to vector<5x1xf32>
    %86 = arith.divf %84, %85 : vector<5x1xf32>
    %87 = vector.broadcast %79 : vector<5x1xf32> to vector<5x32xf32>
    %88 = arith.subf %71, %87 : vector<5x32xf32>
    %cst_49 = arith.constant 9.99999996E-13 : f32
    %89 = vector.broadcast %cst_49 : f32 to vector<5x1xf32>
    %90 = arith.addf %86, %89 : vector<5x1xf32>
    %91 = math.rsqrt %90 : vector<5x1xf32>
    %92 = vector.broadcast %91 : vector<5x1xf32> to vector<5x32xf32>
    %93 = arith.mulf %88, %92 : vector<5x32xf32>
    %94 = vector.broadcast %73 : vector<1x32xf32> to vector<5x32xf32>
    %95 = arith.mulf %93, %94 : vector<5x32xf32>
    %96 = vector.broadcast %75 : vector<1x32xf32> to vector<5x32xf32>
    %97 = arith.addf %95, %96 : vector<5x32xf32>
    %98 = arith.truncf %97 : vector<5x32xf32> to vector<5x32xbf16>
    %c0_50 = arith.constant 0 : index
    %c0_51 = arith.constant 0 : index
    %c0_52 = arith.constant 0 : index
    %99 = vector.load %arg12[%c0_50, %c0_51, %c0_52] : memref<2x32x64xbf16, #tpu.memory_space<vmem>>, vector<1x32x64xbf16>
    %100 = vector.shape_cast %99 : vector<1x32x64xbf16> to vector<32x64xbf16>
    %cst_53 = arith.constant dense<0.000000e+00> : vector<5x64xf32>
    %101 = tpu.matmul %98, %100, %cst_53 {dimension_numbers = #tpu.dot_dimension_numbers<[1], [0], [0], [1], [0, 0, 1, 1], [], []>} : vector<5x32xbf16>, vector<32x64xbf16>, vector<5x64xf32> -> vector<5x64xf32>
    %c0_54 = arith.constant 0 : index
    %c0_55 = arith.constant 0 : index
    %c0_56 = arith.constant 0 : index
    %102 = vector.load %arg13[%c0_54, %c0_55, %c0_56] : memref<2x1x64xf32, #tpu.memory_space<vmem>>, vector<1x1x64xf32>
    %103 = vector.shape_cast %102 : vector<1x1x64xf32> to vector<1x64xf32>
    %104 = vector.broadcast %103 : vector<1x64xf32> to vector<5x64xf32>
    %105 = arith.addf %101, %104 : vector<5x64xf32>
    %106 = arith.mulf %105, %105 : vector<5x64xf32>
    %107 = arith.mulf %105, %106 : vector<5x64xf32>
    %cst_57 = arith.constant 4.471500e-02 : f32
    %108 = vector.broadcast %cst_57 : f32 to vector<5x64xf32>
    %109 = arith.mulf %108, %107 : vector<5x64xf32>
    %110 = arith.addf %105, %109 : vector<5x64xf32>
    %cst_58 = arith.constant 0.797884583 : f32
    %111 = vector.broadcast %cst_58 : f32 to vector<5x64xf32>
    %112 = arith.mulf %111, %110 : vector<5x64xf32>
    %113 = math.tanh %112 : vector<5x64xf32>
    %cst_59 = arith.constant 1.000000e+00 : f32
    %114 = vector.broadcast %cst_59 : f32 to vector<5x64xf32>
    %115 = arith.addf %114, %113 : vector<5x64xf32>
    %cst_60 = arith.constant 5.000000e-01 : f32
    %116 = vector.broadcast %cst_60 : f32 to vector<5x64xf32>
    %117 = arith.mulf %116, %115 : vector<5x64xf32>
    %118 = arith.mulf %105, %117 : vector<5x64xf32>
    %119 = arith.truncf %118 : vector<5x64xf32> to vector<5x64xbf16>
    %c0_61 = arith.constant 0 : index
    %c0_62 = arith.constant 0 : index
    %c0_63 = arith.constant 0 : index
    %120 = vector.load %arg14[%c0_61, %c0_62, %c0_63] : memref<2x64x32xbf16, #tpu.memory_space<vmem>>, vector<1x64x32xbf16>
    %121 = vector.shape_cast %120 : vector<1x64x32xbf16> to vector<64x32xbf16>
    %cst_64 = arith.constant dense<0.000000e+00> : vector<5x32xf32>
    %122 = tpu.matmul %119, %121, %cst_64 {dimension_numbers = #tpu.dot_dimension_numbers<[1], [0], [0], [1], [0, 0, 1, 1], [], []>} : vector<5x64xbf16>, vector<64x32xbf16>, vector<5x32xf32> -> vector<5x32xf32>
    %c0_65 = arith.constant 0 : index
    %c0_66 = arith.constant 0 : index
    %c0_67 = arith.constant 0 : index
    %123 = vector.load %arg15[%c0_65, %c0_66, %c0_67] : memref<2x1x32xf32, #tpu.memory_space<vmem>>, vector<1x1x32xf32>
    %124 = vector.shape_cast %123 : vector<1x1x32xf32> to vector<1x32xf32>
    %125 = vector.broadcast %124 : vector<1x32xf32> to vector<5x32xf32>
    %126 = arith.addf %122, %125 : vector<5x32xf32>
    %127 = arith.addf %71, %126 : vector<5x32xf32>
    %c1 = arith.constant 1 : index
    %c0_68 = arith.constant 0 : index
    %c0_69 = arith.constant 0 : index
    %128 = vector.load %arg4[%c1, %c0_68, %c0_69] : memref<2x1x32xf32, #tpu.memory_space<vmem>>, vector<1x1x32xf32>
    %129 = vector.shape_cast %128 : vector<1x1x32xf32> to vector<1x32xf32>
    %c1_70 = arith.constant 1 : index
    %c0_71 = arith.constant 0 : index
    %c0_72 = arith.constant 0 : index
    %130 = vector.load %arg5[%c1_70, %c0_71, %c0_72] : memref<2x1x32xf32, #tpu.memory_space<vmem>>, vector<1x1x32xf32>
    %131 = vector.shape_cast %130 : vector<1x1x32xf32> to vector<1x32xf32>
    %cst_73 = arith.constant dense<0.000000e+00> : vector<5xf32>
    %132 = vector.multi_reduction <add>, %127, %cst_73 [1] : vector<5x32xf32> to vector<5xf32>
    %133 = vector.shape_cast %132 : vector<5xf32> to vector<5x1xf32>
    %cst_74 = arith.constant 3.200000e+01 : f32
    %134 = vector.broadcast %cst_74 : f32 to vector<5x1xf32>
    %135 = arith.divf %133, %134 : vector<5x1xf32>
    %136 = vector.broadcast %135 : vector<5x1xf32> to vector<5x32xf32>
    %137 = arith.subf %127, %136 : vector<5x32xf32>
    %138 = arith.mulf %137, %137 : vector<5x32xf32>
    %cst_75 = arith.constant dense<0.000000e+00> : vector<5xf32>
    %139 = vector.multi_reduction <add>, %138, %cst_75 [1] : vector<5x32xf32> to vector<5xf32>
    %140 = vector.shape_cast %139 : vector<5xf32> to vector<5x1xf32>
    %cst_76 = arith.constant 3.200000e+01 : f32
    %141 = vector.broadcast %cst_76 : f32 to vector<5x1xf32>
    %142 = arith.divf %140, %141 : vector<5x1xf32>
    %143 = vector.broadcast %135 : vector<5x1xf32> to vector<5x32xf32>
    %144 = arith.subf %127, %143 : vector<5x32xf32>
    %cst_77 = arith.constant 9.99999996E-13 : f32
    %145 = vector.broadcast %cst_77 : f32 to vector<5x1xf32>
    %146 = arith.addf %142, %145 : vector<5x1xf32>
    %147 = math.rsqrt %146 : vector<5x1xf32>
    %148 = vector.broadcast %147 : vector<5x1xf32> to vector<5x32xf32>
    %149 = arith.mulf %144, %148 : vector<5x32xf32>
    %150 = vector.broadcast %129 : vector<1x32xf32> to vector<5x32xf32>
    %151 = arith.mulf %149, %150 : vector<5x32xf32>
    %152 = vector.broadcast %131 : vector<1x32xf32> to vector<5x32xf32>
    %153 = arith.addf %151, %152 : vector<5x32xf32>
    %154 = arith.truncf %153 : vector<5x32xf32> to vector<5x32xbf16>
    %155 = vector.shape_cast %154 : vector<5x32xbf16> to vector<1x5x32xbf16>
    %156 = vector.shape_cast %155 : vector<1x5x32xbf16> to vector<1x5x32xbf16>
    %157 = vector.broadcast %156 : vector<1x5x32xbf16> to vector<4x5x32xbf16>
    %c1_78 = arith.constant 1 : index
    %c0_79 = arith.constant 0 : index
    %c0_80 = arith.constant 0 : index
    %c0_81 = arith.constant 0 : index
    %158 = vector.load %arg6[%c1_78, %c0_79, %c0_80, %c0_81] : memref<2x4x32x24xbf16, #tpu.memory_space<vmem>>, vector<1x4x32x24xbf16>
    %159 = vector.shape_cast %158 : vector<1x4x32x24xbf16> to vector<4x32x24xbf16>
    "tpu.trace_start"() <{level = 10 : i32, message = "hsd,hde->hse"}> : () -> ()
    %cst_82 = arith.constant dense<0.000000e+00> : vector<4x5x24xf32>
    %160 = tpu.matmul %157, %159, %cst_82 {dimension_numbers = #tpu.dot_dimension_numbers<[2], [1], [1], [2], [0, 0, 0, 1, 1, 2], [0], [0]>} : vector<4x5x32xbf16>, vector<4x32x24xbf16>, vector<4x5x24xf32> -> vector<4x5x24xf32>
    "tpu.trace_stop"() : () -> ()
    %c1_83 = arith.constant 1 : index
    %c0_84 = arith.constant 0 : index
    %c0_85 = arith.constant 0 : index
    %c0_86 = arith.constant 0 : index
    %161 = vector.load %arg7[%c1_83, %c0_84, %c0_85, %c0_86] : memref<2x4x1x24xf32, #tpu.memory_space<vmem>>, vector<1x4x1x24xf32>
    %162 = vector.shape_cast %161 : vector<1x4x1x24xf32> to vector<4x1x24xf32>
    %163 = vector.broadcast %162 : vector<4x1x24xf32> to vector<4x5x24xf32>
    %164 = arith.addf %160, %163 : vector<4x5x24xf32>
    %165 = vector.extract_strided_slice %164 {offsets = [0, 0, 0], sizes = [4, 5, 8], strides = [1, 1, 1]} : vector<4x5x24xf32> to vector<4x5x8xf32>
    %166 = arith.truncf %165 : vector<4x5x8xf32> to vector<4x5x8xbf16>
    %167 = vector.extract_strided_slice %164 {offsets = [0, 0, 8], sizes = [4, 5, 8], strides = [1, 1, 1]} : vector<4x5x24xf32> to vector<4x5x8xf32>
    %168 = arith.truncf %167 : vector<4x5x8xf32> to vector<4x5x8xbf16>
    %169 = vector.extract_strided_slice %164 {offsets = [0, 0, 16], sizes = [4, 5, 8], strides = [1, 1, 1]} : vector<4x5x24xf32> to vector<4x5x8xf32>
    %170 = arith.truncf %169 : vector<4x5x8xf32> to vector<4x5x8xbf16>
    "tpu.trace_start"() <{level = 10 : i32, message = "hqd,hkd->hqk"}> : () -> ()
    %cst_87 = arith.constant dense<0.000000e+00> : vector<4x5x5xf32>
    %171 = tpu.matmul %166, %168, %cst_87 {dimension_numbers = #tpu.dot_dimension_numbers<[2], [2], [1], [1], [0, 0, 0, 1, 1, 1], [0], [0]>} : vector<4x5x8xbf16>, vector<4x5x8xbf16>, vector<4x5x5xf32> -> vector<4x5x5xf32>
    "tpu.trace_stop"() : () -> ()
    %cst_88 = arith.constant dense<0xFF800000> : vector<4x5xf32>
    %172 = vector.multi_reduction <maximumf>, %171, %cst_88 [2] : vector<4x5x5xf32> to vector<4x5xf32>
    %173 = vector.shape_cast %172 : vector<4x5xf32> to vector<4x5x1xf32>
    %174 = vector.broadcast %173 : vector<4x5x1xf32> to vector<4x5x5xf32>
    %175 = arith.subf %171, %174 : vector<4x5x5xf32>
    %176 = math.exp %175 : vector<4x5x5xf32>
    %cst_89 = arith.constant dense<0.000000e+00> : vector<4x5xf32>
    %177 = vector.multi_reduction <add>, %176, %cst_89 [2] : vector<4x5x5xf32> to vector<4x5xf32>
    %178 = vector.shape_cast %177 : vector<4x5xf32> to vector<4x5x1xf32>
    %179 = tpu.reciprocal %178 {approx = true} : vector<4x5x1xf32> -> vector<4x5x1xf32>
    %180 = vector.broadcast %179 : vector<4x5x1xf32> to vector<4x5x5xf32>
    %181 = arith.mulf %176, %180 : vector<4x5x5xf32>
    %182 = arith.truncf %181 : vector<4x5x5xf32> to vector<4x5x5xbf16>
    "tpu.trace_start"() <{level = 10 : i32, message = "hqk,hkd->hqd"}> : () -> ()
    %cst_90 = arith.constant dense<0.000000e+00> : vector<4x5x8xf32>
    %183 = tpu.matmul %182, %170, %cst_90 {dimension_numbers = #tpu.dot_dimension_numbers<[2], [1], [1], [2], [0, 0, 0, 1, 1, 2], [0], [0]>} : vector<4x5x5xbf16>, vector<4x5x8xbf16>, vector<4x5x8xf32> -> vector<4x5x8xf32>
    "tpu.trace_stop"() : () -> ()
    %184 = arith.truncf %183 : vector<4x5x8xf32> to vector<4x5x8xbf16>
    %c1_91 = arith.constant 1 : index
    %c0_92 = arith.constant 0 : index
    %c0_93 = arith.constant 0 : index
    %c0_94 = arith.constant 0 : index
    %185 = vector.load %arg8[%c1_91, %c0_92, %c0_93, %c0_94] : memref<2x4x8x32xbf16, #tpu.memory_space<vmem>>, vector<1x4x8x32xbf16>
    %186 = vector.shape_cast %185 : vector<1x4x8x32xbf16> to vector<4x8x32xbf16>
    "tpu.trace_start"() <{level = 10 : i32, message = "hqd,hdo->hqo"}> : () -> ()
    %cst_95 = arith.constant dense<0.000000e+00> : vector<4x5x32xf32>
    %187 = tpu.matmul %184, %186, %cst_95 {dimension_numbers = #tpu.dot_dimension_numbers<[2], [1], [1], [2], [0, 0, 0, 1, 1, 2], [0], [0]>} : vector<4x5x8xbf16>, vector<4x8x32xbf16>, vector<4x5x32xf32> -> vector<4x5x32xf32>
    "tpu.trace_stop"() : () -> ()
    %cst_96 = arith.constant dense<0.000000e+00> : vector<5x32xf32>
    %188 = vector.multi_reduction <add>, %187, %cst_96 [0] : vector<4x5x32xf32> to vector<5x32xf32>
    %189 = arith.addf %127, %188 : vector<5x32xf32>
    %c1_97 = arith.constant 1 : index
    %c0_98 = arith.constant 0 : index
    %c0_99 = arith.constant 0 : index
    %190 = vector.load %arg9[%c1_97, %c0_98, %c0_99] : memref<2x1x32xf32, #tpu.memory_space<vmem>>, vector<1x1x32xf32>
    %191 = vector.shape_cast %190 : vector<1x1x32xf32> to vector<1x32xf32>
    %192 = vector.broadcast %191 : vector<1x32xf32> to vector<5x32xf32>
    %193 = arith.addf %189, %192 : vector<5x32xf32>
    %c1_100 = arith.constant 1 : index
    %c0_101 = arith.constant 0 : index
    %c0_102 = arith.constant 0 : index
    %194 = vector.load %arg10[%c1_100, %c0_101, %c0_102] : memref<2x1x32xf32, #tpu.memory_space<vmem>>, vector<1x1x32xf32>
    %195 = vector.shape_cast %194 : vector<1x1x32xf32> to vector<1x32xf32>
    %c1_103 = arith.constant 1 : index
    %c0_104 = arith.constant 0 : index
    %c0_105 = arith.constant 0 : index
    %196 = vector.load %arg11[%c1_103, %c0_104, %c0_105] : memref<2x1x32xf32, #tpu.memory_space<vmem>>, vector<1x1x32xf32>
    %197 = vector.shape_cast %196 : vector<1x1x32xf32> to vector<1x32xf32>
    %cst_106 = arith.constant dense<0.000000e+00> : vector<5xf32>
    %198 = vector.multi_reduction <add>, %193, %cst_106 [1] : vector<5x32xf32> to vector<5xf32>
    %199 = vector.shape_cast %198 : vector<5xf32> to vector<5x1xf32>
    %cst_107 = arith.constant 3.200000e+01 : f32
    %200 = vector.broadcast %cst_107 : f32 to vector<5x1xf32>
    %201 = arith.divf %199, %200 : vector<5x1xf32>
    %202 = vector.broadcast %201 : vector<5x1xf32> to vector<5x32xf32>
    %203 = arith.subf %193, %202 : vector<5x32xf32>
    %204 = arith.mulf %203, %203 : vector<5x32xf32>
    %cst_108 = arith.constant dense<0.000000e+00> : vector<5xf32>
    %205 = vector.multi_reduction <add>, %204, %cst_108 [1] : vector<5x32xf32> to vector<5xf32>
    %206 = vector.shape_cast %205 : vector<5xf32> to vector<5x1xf32>
    %cst_109 = arith.constant 3.200000e+01 : f32
    %207 = vector.broadcast %cst_109 : f32 to vector<5x1xf32>
    %208 = arith.divf %206, %207 : vector<5x1xf32>
    %209 = vector.broadcast %201 : vector<5x1xf32> to vector<5x32xf32>
    %210 = arith.subf %193, %209 : vector<5x32xf32>
    %cst_110 = arith.constant 9.99999996E-13 : f32
    %211 = vector.broadcast %cst_110 : f32 to vector<5x1xf32>
    %212 = arith.addf %208, %211 : vector<5x1xf32>
    %213 = math.rsqrt %212 : vector<5x1xf32>
    %214 = vector.broadcast %213 : vector<5x1xf32> to vector<5x32xf32>
    %215 = arith.mulf %210, %214 : vector<5x32xf32>
    %216 = vector.broadcast %195 : vector<1x32xf32> to vector<5x32xf32>
    %217 = arith.mulf %215, %216 : vector<5x32xf32>
    %218 = vector.broadcast %197 : vector<1x32xf32> to vector<5x32xf32>
    %219 = arith.addf %217, %218 : vector<5x32xf32>
    %220 = arith.truncf %219 : vector<5x32xf32> to vector<5x32xbf16>
    %c1_111 = arith.constant 1 : index
    %c0_112 = arith.constant 0 : index
    %c0_113 = arith.constant 0 : index
    %221 = vector.load %arg12[%c1_111, %c0_112, %c0_113] : memref<2x32x64xbf16, #tpu.memory_space<vmem>>, vector<1x32x64xbf16>
    %222 = vector.shape_cast %221 : vector<1x32x64xbf16> to vector<32x64xbf16>
    %cst_114 = arith.constant dense<0.000000e+00> : vector<5x64xf32>
    %223 = tpu.matmul %220, %222, %cst_114 {dimension_numbers = #tpu.dot_dimension_numbers<[1], [0], [0], [1], [0, 0, 1, 1], [], []>} : vector<5x32xbf16>, vector<32x64xbf16>, vector<5x64xf32> -> vector<5x64xf32>
    %c1_115 = arith.constant 1 : index
    %c0_116 = arith.constant 0 : index
    %c0_117 = arith.constant 0 : index
    %224 = vector.load %arg13[%c1_115, %c0_116, %c0_117] : memref<2x1x64xf32, #tpu.memory_space<vmem>>, vector<1x1x64xf32>
    %225 = vector.shape_cast %224 : vector<1x1x64xf32> to vector<1x64xf32>
    %226 = vector.broadcast %225 : vector<1x64xf32> to vector<5x64xf32>
    %227 = arith.addf %223, %226 : vector<5x64xf32>
    %228 = arith.mulf %227, %227 : vector<5x64xf32>
    %229 = arith.mulf %227, %228 : vector<5x64xf32>
    %cst_118 = arith.constant 4.471500e-02 : f32
    %230 = vector.broadcast %cst_118 : f32 to vector<5x64xf32>
    %231 = arith.mulf %230, %229 : vector<5x64xf32>
    %232 = arith.addf %227, %231 : vector<5x64xf32>
    %cst_119 = arith.constant 0.797884583 : f32
    %233 = vector.broadcast %cst_119 : f32 to vector<5x64xf32>
    %234 = arith.mulf %233, %232 : vector<5x64xf32>
    %235 = math.tanh %234 : vector<5x64xf32>
    %cst_120 = arith.constant 1.000000e+00 : f32
    %236 = vector.broadcast %cst_120 : f32 to vector<5x64xf32>
    %237 = arith.addf %236, %235 : vector<5x64xf32>
    %cst_121 = arith.constant 5.000000e-01 : f32
    %238 = vector.broadcast %cst_121 : f32 to vector<5x64xf32>
    %239 = arith.mulf %238, %237 : vector<5x64xf32>
    %240 = arith.mulf %227, %239 : vector<5x64xf32>
    %241 = arith.truncf %240 : vector<5x64xf32> to vector<5x64xbf16>
    %c1_122 = arith.constant 1 : index
    %c0_123 = arith.constant 0 : index
    %c0_124 = arith.constant 0 : index
    %242 = vector.load %arg14[%c1_122, %c0_123, %c0_124] : memref<2x64x32xbf16, #tpu.memory_space<vmem>>, vector<1x64x32xbf16>
    %243 = vector.shape_cast %242 : vector<1x64x32xbf16> to vector<64x32xbf16>
    %cst_125 = arith.constant dense<0.000000e+00> : vector<5x32xf32>
    %244 = tpu.matmul %241, %243, %cst_125 {dimension_numbers = #tpu.dot_dimension_numbers<[1], [0], [0], [1], [0, 0, 1, 1], [], []>} : vector<5x64xbf16>, vector<64x32xbf16>, vector<5x32xf32> -> vector<5x32xf32>
    %c1_126 = arith.constant 1 : index
    %c0_127 = arith.constant 0 : index
    %c0_128 = arith.constant 0 : index
    %245 = vector.load %arg15[%c1_126, %c0_127, %c0_128] : memref<2x1x32xf32, #tpu.memory_space<vmem>>, vector<1x1x32xf32>
    %246 = vector.shape_cast %245 : vector<1x1x32xf32> to vector<1x32xf32>
    %247 = vector.broadcast %246 : vector<1x32xf32> to vector<5x32xf32>
    %248 = arith.addf %244, %247 : vector<5x32xf32>
    %249 = arith.addf %193, %248 : vector<5x32xf32>
    %c0_129 = arith.constant 0 : index
    %c0_130 = arith.constant 0 : index
    %250 = vector.load %arg16[%c0_129, %c0_130] : memref<1x32xf32, #tpu.memory_space<vmem>>, vector<1x32xf32>
    %c0_131 = arith.constant 0 : index
    %c0_132 = arith.constant 0 : index
    %251 = vector.load %arg17[%c0_131, %c0_132] : memref<1x32xf32, #tpu.memory_space<vmem>>, vector<1x32xf32>
    %cst_133 = arith.constant dense<0.000000e+00> : vector<5xf32>
    %252 = vector.multi_reduction <add>, %249, %cst_133 [1] : vector<5x32xf32> to vector<5xf32>
    %253 = vector.shape_cast %252 : vector<5xf32> to vector<5x1xf32>
    %cst_134 = arith.constant 3.200000e+01 : f32
    %254 = vector.broadcast %cst_134 : f32 to vector<5x1xf32>
    %255 = arith.divf %253, %254 : vector<5x1xf32>
    %256 = vector.broadcast %255 : vector<5x1xf32> to vector<5x32xf32>
    %257 = arith.subf %249, %256 : vector<5x32xf32>
    %258 = arith.mulf %257, %257 : vector<5x32xf32>
    %cst_135 = arith.constant dense<0.000000e+00> : vector<5xf32>
    %259 = vector.multi_reduction <add>, %258, %cst_135 [1] : vector<5x32xf32> to vector<5xf32>
    %260 = vector.shape_cast %259 : vector<5xf32> to vector<5x1xf32>
    %cst_136 = arith.constant 3.200000e+01 : f32
    %261 = vector.broadcast %cst_136 : f32 to vector<5x1xf32>
    %262 = arith.divf %260, %261 : vector<5x1xf32>
    %263 = vector.broadcast %255 : vector<5x1xf32> to vector<5x32xf32>
    %264 = arith.subf %249, %263 : vector<5x32xf32>
    %cst_137 = arith.constant 9.99999996E-13 : f32
    %265 = vector.broadcast %cst_137 : f32 to vector<5x1xf32>
    %266 = arith.addf %262, %265 : vector<5x1xf32>
    %267 = math.rsqrt %266 : vector<5x1xf32>
    %268 = vector.broadcast %267 : vector<5x1xf32> to vector<5x32xf32>
    %269 = arith.mulf %264, %268 : vector<5x32xf32>
    %270 = vector.broadcast %250 : vector<1x32xf32> to vector<5x32xf32>
    %271 = arith.mulf %269, %270 : vector<5x32xf32>
    %272 = vector.broadcast %251 : vector<1x32xf32> to vector<5x32xf32>
    %273 = arith.addf %271, %272 : vector<5x32xf32>
    %c0_138 = arith.constant 0 : index
    %c0_139 = arith.constant 0 : index
    %c0_140 = arith.constant 0 : index
    %274 = vector.load %arg18[%c0_138, %c0_139, %c0_140] : memref<2x5x32xf32, #tpu.memory_space<vmem>>, vector<1x5x32xf32>
    %275 = vector.shape_cast %274 : vector<1x5x32xf32> to vector<5x32xf32>
    %276 = vector.shape_cast %273 : vector<5x32xf32> to vector<1x5x32xf32>
    tpu.vector_store %arg18[%c0_138, %c0_139, %c0_140], %276 {strides = array<i32>} : memref<2x5x32xf32, #tpu.memory_space<vmem>>, vector<1x5x32xf32>,
    %c1_141 = arith.constant 1 : index
    %c0_142 = arith.constant 0 : index
    %c0_143 = arith.constant 0 : index
    %277 = vector.load %arg1[%c1_141, %c0_142, %c0_143] : memref<2x5x192xbf16, #tpu.memory_space<vmem>>, vector<1x5x192xbf16>
    %278 = vector.shape_cast %277 : vector<1x5x192xbf16> to vector<5x192xbf16>
    %c0_144 = arith.constant 0 : index
    %c0_145 = arith.constant 0 : index
    %279 = vector.load %arg2[%c0_144, %c0_145] : memref<192x32xbf16, #tpu.memory_space<vmem>>, vector<192x32xbf16>
    %cst_146 = arith.constant dense<0.000000e+00> : vector<5x32xf32>
    %280 = tpu.matmul %278, %279, %cst_146 {dimension_numbers = #tpu.dot_dimension_numbers<[1], [0], [0], [1], [0, 0, 1, 1], [], []>} : vector<5x192xbf16>, vector<192x32xbf16>, vector<5x32xf32> -> vector<5x32xf32>
    %c0_147 = arith.constant 0 : index
    %c0_148 = arith.constant 0 : index
    %281 = vector.load %arg3[%c0_147, %c0_148] : memref<5x32xf32, #tpu.memory_space<vmem>>, vector<5x32xf32>
    %282 = arith.addf %280, %281 : vector<5x32xf32>
    %c0_149 = arith.constant 0 : index
    %c0_150 = arith.constant 0 : index
    %c0_151 = arith.constant 0 : index
    %283 = vector.load %arg4[%c0_149, %c0_150, %c0_151] : memref<2x1x32xf32, #tpu.memory_space<vmem>>, vector<1x1x32xf32>
    %284 = vector.shape_cast %283 : vector<1x1x32xf32> to vector<1x32xf32>
    %c0_152 = arith.constant 0 : index
    %c0_153 = arith.constant 0 : index
    %c0_154 = arith.constant 0 : index
    %285 = vector.load %arg5[%c0_152, %c0_153, %c0_154] : memref<2x1x32xf32, #tpu.memory_space<vmem>>, vector<1x1x32xf32>
    %286 = vector.shape_cast %285 : vector<1x1x32xf32> to vector<1x32xf32>
    %cst_155 = arith.constant dense<0.000000e+00> : vector<5xf32>
    %287 = vector.multi_reduction <add>, %282, %cst_155 [1] : vector<5x32xf32> to vector<5xf32>
    %288 = vector.shape_cast %287 : vector<5xf32> to vector<5x1xf32>
    %cst_156 = arith.constant 3.200000e+01 : f32
    %289 = vector.broadcast %cst_156 : f32 to vector<5x1xf32>
    %290 = arith.divf %288, %289 : vector<5x1xf32>
    %291 = vector.broadcast %290 : vector<5x1xf32> to vector<5x32xf32>
    %292 = arith.subf %282, %291 : vector<5x32xf32>
    %293 = arith.mulf %292, %292 : vector<5x32xf32>
    %cst_157 = arith.constant dense<0.000000e+00> : vector<5xf32>
    %294 = vector.multi_reduction <add>, %293, %cst_157 [1] : vector<5x32xf32> to vector<5xf32>
    %295 = vector.shape_cast %294 : vector<5xf32> to vector<5x1xf32>
    %cst_158 = arith.constant 3.200000e+01 : f32
    %296 = vector.broadcast %cst_158 : f32 to vector<5x1xf32>
    %297 = arith.divf %295, %296 : vector<5x1xf32>
    %298 = vector.broadcast %290 : vector<5x1xf32> to vector<5x32xf32>
    %299 = arith.subf %282, %298 : vector<5x32xf32>
    %cst_159 = arith.constant 9.99999996E-13 : f32
    %300 = vector.broadcast %cst_159 : f32 to vector<5x1xf32>
    %301 = arith.addf %297, %300 : vector<5x1xf32>
    %302 = math.rsqrt %301 : vector<5x1xf32>
    %303 = vector.broadcast %302 : vector<5x1xf32> to vector<5x32xf32>
    %304 = arith.mulf %299, %303 : vector<5x32xf32>
    %305 = vector.broadcast %284 : vector<1x32xf32> to vector<5x32xf32>
    %306 = arith.mulf %304, %305 : vector<5x32xf32>
    %307 = vector.broadcast %286 : vector<1x32xf32> to vector<5x32xf32>
    %308 = arith.addf %306, %307 : vector<5x32xf32>
    %309 = arith.truncf %308 : vector<5x32xf32> to vector<5x32xbf16>
    %310 = vector.shape_cast %309 : vector<5x32xbf16> to vector<1x5x32xbf16>
    %311 = vector.shape_cast %310 : vector<1x5x32xbf16> to vector<1x5x32xbf16>
    %312 = vector.broadcast %311 : vector<1x5x32xbf16> to vector<4x5x32xbf16>
    %c0_160 = arith.constant 0 : index
    %c0_161 = arith.constant 0 : index
    %c0_162 = arith.constant 0 : index
    %c0_163 = arith.constant 0 : index
    %313 = vector.load %arg6[%c0_160, %c0_161, %c0_162, %c0_163] : memref<2x4x32x24xbf16, #tpu.memory_space<vmem>>, vector<1x4x32x24xbf16>
    %314 = vector.shape_cast %313 : vector<1x4x32x24xbf16> to vector<4x32x24xbf16>
    "tpu.trace_start"() <{level = 10 : i32, message = "hsd,hde->hse"}> : () -> ()
    %cst_164 = arith.constant dense<0.000000e+00> : vector<4x5x24xf32>
    %315 = tpu.matmul %312, %314, %cst_164 {dimension_numbers = #tpu.dot_dimension_numbers<[2], [1], [1], [2], [0, 0, 0, 1, 1, 2], [0], [0]>} : vector<4x5x32xbf16>, vector<4x32x24xbf16>, vector<4x5x24xf32> -> vector<4x5x24xf32>
    "tpu.trace_stop"() : () -> ()
    %c0_165 = arith.constant 0 : index
    %c0_166 = arith.constant 0 : index
    %c0_167 = arith.constant 0 : index
    %c0_168 = arith.constant 0 : index
    %316 = vector.load %arg7[%c0_165, %c0_166, %c0_167, %c0_168] : memref<2x4x1x24xf32, #tpu.memory_space<vmem>>, vector<1x4x1x24xf32>
    %317 = vector.shape_cast %316 : vector<1x4x1x24xf32> to vector<4x1x24xf32>
    %318 = vector.broadcast %317 : vector<4x1x24xf32> to vector<4x5x24xf32>
    %319 = arith.addf %315, %318 : vector<4x5x24xf32>
    %320 = vector.extract_strided_slice %319 {offsets = [0, 0, 0], sizes = [4, 5, 8], strides = [1, 1, 1]} : vector<4x5x24xf32> to vector<4x5x8xf32>
    %321 = arith.truncf %320 : vector<4x5x8xf32> to vector<4x5x8xbf16>
    %322 = vector.extract_strided_slice %319 {offsets = [0, 0, 8], sizes = [4, 5, 8], strides = [1, 1, 1]} : vector<4x5x24xf32> to vector<4x5x8xf32>
    %323 = arith.truncf %322 : vector<4x5x8xf32> to vector<4x5x8xbf16>
    %324 = vector.extract_strided_slice %319 {offsets = [0, 0, 16], sizes = [4, 5, 8], strides = [1, 1, 1]} : vector<4x5x24xf32> to vector<4x5x8xf32>
    %325 = arith.truncf %324 : vector<4x5x8xf32> to vector<4x5x8xbf16>
    "tpu.trace_start"() <{level = 10 : i32, message = "hqd,hkd->hqk"}> : () -> ()
    %cst_169 = arith.constant dense<0.000000e+00> : vector<4x5x5xf32>
    %326 = tpu.matmul %321, %323, %cst_169 {dimension_numbers = #tpu.dot_dimension_numbers<[2], [2], [1], [1], [0, 0, 0, 1, 1, 1], [0], [0]>} : vector<4x5x8xbf16>, vector<4x5x8xbf16>, vector<4x5x5xf32> -> vector<4x5x5xf32>
    "tpu.trace_stop"() : () -> ()
    %cst_170 = arith.constant dense<0xFF800000> : vector<4x5xf32>
    %327 = vector.multi_reduction <maximumf>, %326, %cst_170 [2] : vector<4x5x5xf32> to vector<4x5xf32>
    %328 = vector.shape_cast %327 : vector<4x5xf32> to vector<4x5x1xf32>
    %329 = vector.broadcast %328 : vector<4x5x1xf32> to vector<4x5x5xf32>
    %330 = arith.subf %326, %329 : vector<4x5x5xf32>
    %331 = math.exp %330 : vector<4x5x5xf32>
    %cst_171 = arith.constant dense<0.000000e+00> : vector<4x5xf32>
    %332 = vector.multi_reduction <add>, %331, %cst_171 [2] : vector<4x5x5xf32> to vector<4x5xf32>
    %333 = vector.shape_cast %332 : vector<4x5xf32> to vector<4x5x1xf32>
    %334 = tpu.reciprocal %333 {approx = true} : vector<4x5x1xf32> -> vector<4x5x1xf32>
    %335 = vector.broadcast %334 : vector<4x5x1xf32> to vector<4x5x5xf32>
    %336 = arith.mulf %331, %335 : vector<4x5x5xf32>
    %337 = arith.truncf %336 : vector<4x5x5xf32> to vector<4x5x5xbf16>
    "tpu.trace_start"() <{level = 10 : i32, message = "hqk,hkd->hqd"}> : () -> ()
    %cst_172 = arith.constant dense<0.000000e+00> : vector<4x5x8xf32>
    %338 = tpu.matmul %337, %325, %cst_172 {dimension_numbers = #tpu.dot_dimension_numbers<[2], [1], [1], [2], [0, 0, 0, 1, 1, 2], [0], [0]>} : vector<4x5x5xbf16>, vector<4x5x8xbf16>, vector<4x5x8xf32> -> vector<4x5x8xf32>
    "tpu.trace_stop"() : () -> ()
    %339 = arith.truncf %338 : vector<4x5x8xf32> to vector<4x5x8xbf16>
    %c0_173 = arith.constant 0 : index
    %c0_174 = arith.constant 0 : index
    %c0_175 = arith.constant 0 : index
    %c0_176 = arith.constant 0 : index
    %340 = vector.load %arg8[%c0_173, %c0_174, %c0_175, %c0_176] : memref<2x4x8x32xbf16, #tpu.memory_space<vmem>>, vector<1x4x8x32xbf16>
    %341 = vector.shape_cast %340 : vector<1x4x8x32xbf16> to vector<4x8x32xbf16>
    "tpu.trace_start"() <{level = 10 : i32, message = "hqd,hdo->hqo"}> : () -> ()
    %cst_177 = arith.constant dense<0.000000e+00> : vector<4x5x32xf32>
    %342 = tpu.matmul %339, %341, %cst_177 {dimension_numbers = #tpu.dot_dimension_numbers<[2], [1], [1], [2], [0, 0, 0, 1, 1, 2], [0], [0]>} : vector<4x5x8xbf16>, vector<4x8x32xbf16>, vector<4x5x32xf32> -> vector<4x5x32xf32>
    "tpu.trace_stop"() : () -> ()
    %cst_178 = arith.constant dense<0.000000e+00> : vector<5x32xf32>
    %343 = vector.multi_reduction <add>, %342, %cst_178 [0] : vector<4x5x32xf32> to vector<5x32xf32>
    %344 = arith.addf %282, %343 : vector<5x32xf32>
    %c0_179 = arith.constant 0 : index
    %c0_180 = arith.constant 0 : index
    %c0_181 = arith.constant 0 : index
    %345 = vector.load %arg9[%c0_179, %c0_180, %c0_181] : memref<2x1x32xf32, #tpu.memory_space<vmem>>, vector<1x1x32xf32>
    %346 = vector.shape_cast %345 : vector<1x1x32xf32> to vector<1x32xf32>
    %347 = vector.broadcast %346 : vector<1x32xf32> to vector<5x32xf32>
    %348 = arith.addf %344, %347 : vector<5x32xf32>
    %c0_182 = arith.constant 0 : index
    %c0_183 = arith.constant 0 : index
    %c0_184 = arith.constant 0 : index
    %349 = vector.load %arg10[%c0_182, %c0_183, %c0_184] : memref<2x1x32xf32, #tpu.memory_space<vmem>>, vector<1x1x32xf32>
    %350 = vector.shape_cast %349 : vector<1x1x32xf32> to vector<1x32xf32>
    %c0_185 = arith.constant 0 : index
    %c0_186 = arith.constant 0 : index
    %c0_187 = arith.constant 0 : index
    %351 = vector.load %arg11[%c0_185, %c0_186, %c0_187] : memref<2x1x32xf32, #tpu.memory_space<vmem>>, vector<1x1x32xf32>
    %352 = vector.shape_cast %351 : vector<1x1x32xf32> to vector<1x32xf32>
    %cst_188 = arith.constant dense<0.000000e+00> : vector<5xf32>
    %353 = vector.multi_reduction <add>, %348, %cst_188 [1] : vector<5x32xf32> to vector<5xf32>
    %354 = vector.shape_cast %353 : vector<5xf32> to vector<5x1xf32>
    %cst_189 = arith.constant 3.200000e+01 : f32
    %355 = vector.broadcast %cst_189 : f32 to vector<5x1xf32>
    %356 = arith.divf %354, %355 : vector<5x1xf32>
    %357 = vector.broadcast %356 : vector<5x1xf32> to vector<5x32xf32>
    %358 = arith.subf %348, %357 : vector<5x32xf32>
    %359 = arith.mulf %358, %358 : vector<5x32xf32>
    %cst_190 = arith.constant dense<0.000000e+00> : vector<5xf32>
    %360 = vector.multi_reduction <add>, %359, %cst_190 [1] : vector<5x32xf32> to vector<5xf32>
    %361 = vector.shape_cast %360 : vector<5xf32> to vector<5x1xf32>
    %cst_191 = arith.constant 3.200000e+01 : f32
    %362 = vector.broadcast %cst_191 : f32 to vector<5x1xf32>
    %363 = arith.divf %361, %362 : vector<5x1xf32>
    %364 = vector.broadcast %356 : vector<5x1xf32> to vector<5x32xf32>
    %365 = arith.subf %348, %364 : vector<5x32xf32>
    %cst_192 = arith.constant 9.99999996E-13 : f32
    %366 = vector.broadcast %cst_192 : f32 to vector<5x1xf32>
    %367 = arith.addf %363, %366 : vector<5x1xf32>
    %368 = math.rsqrt %367 : vector<5x1xf32>
    %369 = vector.broadcast %368 : vector<5x1xf32> to vector<5x32xf32>
    %370 = arith.mulf %365, %369 : vector<5x32xf32>
    %371 = vector.broadcast %350 : vector<1x32xf32> to vector<5x32xf32>
    %372 = arith.mulf %370, %371 : vector<5x32xf32>
    %373 = vector.broadcast %352 : vector<1x32xf32> to vector<5x32xf32>
    %374 = arith.addf %372, %373 : vector<5x32xf32>
    %375 = arith.truncf %374 : vector<5x32xf32> to vector<5x32xbf16>
    %c0_193 = arith.constant 0 : index
    %c0_194 = arith.constant 0 : index
    %c0_195 = arith.constant 0 : index
    %376 = vector.load %arg12[%c0_193, %c0_194, %c0_195] : memref<2x32x64xbf16, #tpu.memory_space<vmem>>, vector<1x32x64xbf16>
    %377 = vector.shape_cast %376 : vector<1x32x64xbf16> to vector<32x64xbf16>
    %cst_196 = arith.constant dense<0.000000e+00> : vector<5x64xf32>
    %378 = tpu.matmul %375, %377, %cst_196 {dimension_numbers = #tpu.dot_dimension_numbers<[1], [0], [0], [1], [0, 0, 1, 1], [], []>} : vector<5x32xbf16>, vector<32x64xbf16>, vector<5x64xf32> -> vector<5x64xf32>
    %c0_197 = arith.constant 0 : index
    %c0_198 = arith.constant 0 : index
    %c0_199 = arith.constant 0 : index
    %379 = vector.load %arg13[%c0_197, %c0_198, %c0_199] : memref<2x1x64xf32, #tpu.memory_space<vmem>>, vector<1x1x64xf32>
    %380 = vector.shape_cast %379 : vector<1x1x64xf32> to vector<1x64xf32>
    %381 = vector.broadcast %380 : vector<1x64xf32> to vector<5x64xf32>
    %382 = arith.addf %378, %381 : vector<5x64xf32>
    %383 = arith.mulf %382, %382 : vector<5x64xf32>
    %384 = arith.mulf %382, %383 : vector<5x64xf32>
    %cst_200 = arith.constant 4.471500e-02 : f32
    %385 = vector.broadcast %cst_200 : f32 to vector<5x64xf32>
    %386 = arith.mulf %385, %384 : vector<5x64xf32>
    %387 = arith.addf %382, %386 : vector<5x64xf32>
    %cst_201 = arith.constant 0.797884583 : f32
    %388 = vector.broadcast %cst_201 : f32 to vector<5x64xf32>
    %389 = arith.mulf %388, %387 : vector<5x64xf32>
    %390 = math.tanh %389 : vector<5x64xf32>
    %cst_202 = arith.constant 1.000000e+00 : f32
    %391 = vector.broadcast %cst_202 : f32 to vector<5x64xf32>
    %392 = arith.addf %391, %390 : vector<5x64xf32>
    %cst_203 = arith.constant 5.000000e-01 : f32
    %393 = vector.broadcast %cst_203 : f32 to vector<5x64xf32>
    %394 = arith.mulf %393, %392 : vector<5x64xf32>
    %395 = arith.mulf %382, %394 : vector<5x64xf32>
    %396 = arith.truncf %395 : vector<5x64xf32> to vector<5x64xbf16>
    %c0_204 = arith.constant 0 : index
    %c0_205 = arith.constant 0 : index
    %c0_206 = arith.constant 0 : index
    %397 = vector.load %arg14[%c0_204, %c0_205, %c0_206] : memref<2x64x32xbf16, #tpu.memory_space<vmem>>, vector<1x64x32xbf16>
    %398 = vector.shape_cast %397 : vector<1x64x32xbf16> to vector<64x32xbf16>
    %cst_207 = arith.constant dense<0.000000e+00> : vector<5x32xf32>
    %399 = tpu.matmul %396, %398, %cst_207 {dimension_numbers = #tpu.dot_dimension_numbers<[1], [0], [0], [1], [0, 0, 1, 1], [], []>} : vector<5x64xbf16>, vector<64x32xbf16>, vector<5x32xf32> -> vector<5x32xf32>
    %c0_208 = arith.constant 0 : index
    %c0_209 = arith.constant 0 : index
    %c0_210 = arith.constant 0 : index
    %400 = vector.load %arg15[%c0_208, %c0_209, %c0_210] : memref<2x1x32xf32, #tpu.memory_space<vmem>>, vector<1x1x32xf32>
    %401 = vector.shape_cast %400 : vector<1x1x32xf32> to vector<1x32xf32>
    %402 = vector.broadcast %401 : vector<1x32xf32> to vector<5x32xf32>
    %403 = arith.addf %399, %402 : vector<5x32xf32>
    %404 = arith.addf %348, %403 : vector<5x32xf32>
    %c1_211 = arith.constant 1 : index
    %c0_212 = arith.constant 0 : index
    %c0_213 = arith.constant 0 : index
    %405 = vector.load %arg4[%c1_211, %c0_212, %c0_213] : memref<2x1x32xf32, #tpu.memory_space<vmem>>, vector<1x1x32xf32>
    %406 = vector.shape_cast %405 : vector<1x1x32xf32> to vector<1x32xf32>
    %c1_214 = arith.constant 1 : index
    %c0_215 = arith.constant 0 : index
    %c0_216 = arith.constant 0 : index
    %407 = vector.load %arg5[%c1_214, %c0_215, %c0_216] : memref<2x1x32xf32, #tpu.memory_space<vmem>>, vector<1x1x32xf32>
    %408 = vector.shape_cast %407 : vector<1x1x32xf32> to vector<1x32xf32>
    %cst_217 = arith.constant dense<0.000000e+00> : vector<5xf32>
    %409 = vector.multi_reduction <add>, %404, %cst_217 [1] : vector<5x32xf32> to vector<5xf32>
    %410 = vector.shape_cast %409 : vector<5xf32> to vector<5x1xf32>
    %cst_218 = arith.constant 3.200000e+01 : f32
    %411 = vector.broadcast %cst_218 : f32 to vector<5x1xf32>
    %412 = arith.divf %410, %411 : vector<5x1xf32>
    %413 = vector.broadcast %412 : vector<5x1xf32> to vector<5x32xf32>
    %414 = arith.subf %404, %413 : vector<5x32xf32>
    %415 = arith.mulf %414, %414 : vector<5x32xf32>
    %cst_219 = arith.constant dense<0.000000e+00> : vector<5xf32>
    %416 = vector.multi_reduction <add>, %415, %cst_219 [1] : vector<5x32xf32> to vector<5xf32>
    %417 = vector.shape_cast %416 : vector<5xf32> to vector<5x1xf32>
    %cst_220 = arith.constant 3.200000e+01 : f32
    %418 = vector.broadcast %cst_220 : f32 to vector<5x1xf32>
    %419 = arith.divf %417, %418 : vector<5x1xf32>
    %420 = vector.broadcast %412 : vector<5x1xf32> to vector<5x32xf32>
    %421 = arith.subf %404, %420 : vector<5x32xf32>
    %cst_221 = arith.constant 9.99999996E-13 : f32
    %422 = vector.broadcast %cst_221 : f32 to vector<5x1xf32>
    %423 = arith.addf %419, %422 : vector<5x1xf32>
    %424 = math.rsqrt %423 : vector<5x1xf32>
    %425 = vector.broadcast %424 : vector<5x1xf32> to vector<5x32xf32>
    %426 = arith.mulf %421, %425 : vector<5x32xf32>
    %427 = vector.broadcast %406 : vector<1x32xf32> to vector<5x32xf32>
    %428 = arith.mulf %426, %427 : vector<5x32xf32>
    %429 = vector.broadcast %408 : vector<1x32xf32> to vector<5x32xf32>
    %430 = arith.addf %428, %429 : vector<5x32xf32>
    %431 = arith.truncf %430 : vector<5x32xf32> to vector<5x32xbf16>
    %432 = vector.shape_cast %431 : vector<5x32xbf16> to vector<1x5x32xbf16>
    %433 = vector.shape_cast %432 : vector<1x5x32xbf16> to vector<1x5x32xbf16>
    %434 = vector.broadcast %433 : vector<1x5x32xbf16> to vector<4x5x32xbf16>
    %c1_222 = arith.constant 1 : index
    %c0_223 = arith.constant 0 : index
    %c0_224 = arith.constant 0 : index
    %c0_225 = arith.constant 0 : index
    %435 = vector.load %arg6[%c1_222, %c0_223, %c0_224, %c0_225] : memref<2x4x32x24xbf16, #tpu.memory_space<vmem>>, vector<1x4x32x24xbf16>
    %436 = vector.shape_cast %435 : vector<1x4x32x24xbf16> to vector<4x32x24xbf16>
    "tpu.trace_start"() <{level = 10 : i32, message = "hsd,hde->hse"}> : () -> ()
    %cst_226 = arith.constant dense<0.000000e+00> : vector<4x5x24xf32>
    %437 = tpu.matmul %434, %436, %cst_226 {dimension_numbers = #tpu.dot_dimension_numbers<[2], [1], [1], [2], [0, 0, 0, 1, 1, 2], [0], [0]>} : vector<4x5x32xbf16>, vector<4x32x24xbf16>, vector<4x5x24xf32> -> vector<4x5x24xf32>
    "tpu.trace_stop"() : () -> ()
    %c1_227 = arith.constant 1 : index
    %c0_228 = arith.constant 0 : index
    %c0_229 = arith.constant 0 : index
    %c0_230 = arith.constant 0 : index
    %438 = vector.load %arg7[%c1_227, %c0_228, %c0_229, %c0_230] : memref<2x4x1x24xf32, #tpu.memory_space<vmem>>, vector<1x4x1x24xf32>
    %439 = vector.shape_cast %438 : vector<1x4x1x24xf32> to vector<4x1x24xf32>
    %440 = vector.broadcast %439 : vector<4x1x24xf32> to vector<4x5x24xf32>
    %441 = arith.addf %437, %440 : vector<4x5x24xf32>
    %442 = vector.extract_strided_slice %441 {offsets = [0, 0, 0], sizes = [4, 5, 8], strides = [1, 1, 1]} : vector<4x5x24xf32> to vector<4x5x8xf32>
    %443 = arith.truncf %442 : vector<4x5x8xf32> to vector<4x5x8xbf16>
    %444 = vector.extract_strided_slice %441 {offsets = [0, 0, 8], sizes = [4, 5, 8], strides = [1, 1, 1]} : vector<4x5x24xf32> to vector<4x5x8xf32>
    %445 = arith.truncf %444 : vector<4x5x8xf32> to vector<4x5x8xbf16>
    %446 = vector.extract_strided_slice %441 {offsets = [0, 0, 16], sizes = [4, 5, 8], strides = [1, 1, 1]} : vector<4x5x24xf32> to vector<4x5x8xf32>
    %447 = arith.truncf %446 : vector<4x5x8xf32> to vector<4x5x8xbf16>
    "tpu.trace_start"() <{level = 10 : i32, message = "hqd,hkd->hqk"}> : () -> ()
    %cst_231 = arith.constant dense<0.000000e+00> : vector<4x5x5xf32>
    %448 = tpu.matmul %443, %445, %cst_231 {dimension_numbers = #tpu.dot_dimension_numbers<[2], [2], [1], [1], [0, 0, 0, 1, 1, 1], [0], [0]>} : vector<4x5x8xbf16>, vector<4x5x8xbf16>, vector<4x5x5xf32> -> vector<4x5x5xf32>
    "tpu.trace_stop"() : () -> ()
    %cst_232 = arith.constant dense<0xFF800000> : vector<4x5xf32>
    %449 = vector.multi_reduction <maximumf>, %448, %cst_232 [2] : vector<4x5x5xf32> to vector<4x5xf32>
    %450 = vector.shape_cast %449 : vector<4x5xf32> to vector<4x5x1xf32>
    %451 = vector.broadcast %450 : vector<4x5x1xf32> to vector<4x5x5xf32>
    %452 = arith.subf %448, %451 : vector<4x5x5xf32>
    %453 = math.exp %452 : vector<4x5x5xf32>
    %cst_233 = arith.constant dense<0.000000e+00> : vector<4x5xf32>
    %454 = vector.multi_reduction <add>, %453, %cst_233 [2] : vector<4x5x5xf32> to vector<4x5xf32>
    %455 = vector.shape_cast %454 : vector<4x5xf32> to vector<4x5x1xf32>
    %456 = tpu.reciprocal %455 {approx = true} : vector<4x5x1xf32> -> vector<4x5x1xf32>
    %457 = vector.broadcast %456 : vector<4x5x1xf32> to vector<4x5x5xf32>
    %458 = arith.mulf %453, %457 : vector<4x5x5xf32>
    %459 = arith.truncf %458 : vector<4x5x5xf32> to vector<4x5x5xbf16>
    "tpu.trace_start"() <{level = 10 : i32, message = "hqk,hkd->hqd"}> : () -> ()
    %cst_234 = arith.constant dense<0.000000e+00> : vector<4x5x8xf32>
    %460 = tpu.matmul %459, %447, %cst_234 {dimension_numbers = #tpu.dot_dimension_numbers<[2], [1], [1], [2], [0, 0, 0, 1, 1, 2], [0], [0]>} : vector<4x5x5xbf16>, vector<4x5x8xbf16>, vector<4x5x8xf32> -> vector<4x5x8xf32>
    "tpu.trace_stop"() : () -> ()
    %461 = arith.truncf %460 : vector<4x5x8xf32> to vector<4x5x8xbf16>
    %c1_235 = arith.constant 1 : index
    %c0_236 = arith.constant 0 : index
    %c0_237 = arith.constant 0 : index
    %c0_238 = arith.constant 0 : index
    %462 = vector.load %arg8[%c1_235, %c0_236, %c0_237, %c0_238] : memref<2x4x8x32xbf16, #tpu.memory_space<vmem>>, vector<1x4x8x32xbf16>
    %463 = vector.shape_cast %462 : vector<1x4x8x32xbf16> to vector<4x8x32xbf16>
    "tpu.trace_start"() <{level = 10 : i32, message = "hqd,hdo->hqo"}> : () -> ()
    %cst_239 = arith.constant dense<0.000000e+00> : vector<4x5x32xf32>
    %464 = tpu.matmul %461, %463, %cst_239 {dimension_numbers = #tpu.dot_dimension_numbers<[2], [1], [1], [2], [0, 0, 0, 1, 1, 2], [0], [0]>} : vector<4x5x8xbf16>, vector<4x8x32xbf16>, vector<4x5x32xf32> -> vector<4x5x32xf32>
    "tpu.trace_stop"() : () -> ()
    %cst_240 = arith.constant dense<0.000000e+00> : vector<5x32xf32>
    %465 = vector.multi_reduction <add>, %464, %cst_240 [0] : vector<4x5x32xf32> to vector<5x32xf32>
    %466 = arith.addf %404, %465 : vector<5x32xf32>
    %c1_241 = arith.constant 1 : index
    %c0_242 = arith.constant 0 : index
    %c0_243 = arith.constant 0 : index
    %467 = vector.load %arg9[%c1_241, %c0_242, %c0_243] : memref<2x1x32xf32, #tpu.memory_space<vmem>>, vector<1x1x32xf32>
    %468 = vector.shape_cast %467 : vector<1x1x32xf32> to vector<1x32xf32>
    %469 = vector.broadcast %468 : vector<1x32xf32> to vector<5x32xf32>
    %470 = arith.addf %466, %469 : vector<5x32xf32>
    %c1_244 = arith.constant 1 : index
    %c0_245 = arith.constant 0 : index
    %c0_246 = arith.constant 0 : index
    %471 = vector.load %arg10[%c1_244, %c0_245, %c0_246] : memref<2x1x32xf32, #tpu.memory_space<vmem>>, vector<1x1x32xf32>
    %472 = vector.shape_cast %471 : vector<1x1x32xf32> to vector<1x32xf32>
    %c1_247 = arith.constant 1 : index
    %c0_248 = arith.constant 0 : index
    %c0_249 = arith.constant 0 : index
    %473 = vector.load %arg11[%c1_247, %c0_248, %c0_249] : memref<2x1x32xf32, #tpu.memory_space<vmem>>, vector<1x1x32xf32>
    %474 = vector.shape_cast %473 : vector<1x1x32xf32> to vector<1x32xf32>
    %cst_250 = arith.constant dense<0.000000e+00> : vector<5xf32>
    %475 = vector.multi_reduction <add>, %470, %cst_250 [1] : vector<5x32xf32> to vector<5xf32>
    %476 = vector.shape_cast %475 : vector<5xf32> to vector<5x1xf32>
    %cst_251 = arith.constant 3.200000e+01 : f32
    %477 = vector.broadcast %cst_251 : f32 to vector<5x1xf32>
    %478 = arith.divf %476, %477 : vector<5x1xf32>
    %479 = vector.broadcast %478 : vector<5x1xf32> to vector<5x32xf32>
    %480 = arith.subf %470, %479 : vector<5x32xf32>
    %481 = arith.mulf %480, %480 : vector<5x32xf32>
    %cst_252 = arith.constant dense<0.000000e+00> : vector<5xf32>
    %482 = vector.multi_reduction <add>, %481, %cst_252 [1] : vector<5x32xf32> to vector<5xf32>
    %483 = vector.shape_cast %482 : vector<5xf32> to vector<5x1xf32>
    %cst_253 = arith.constant 3.200000e+01 : f32
    %484 = vector.broadcast %cst_253 : f32 to vector<5x1xf32>
    %485 = arith.divf %483, %484 : vector<5x1xf32>
    %486 = vector.broadcast %478 : vector<5x1xf32> to vector<5x32xf32>
    %487 = arith.subf %470, %486 : vector<5x32xf32>
    %cst_254 = arith.constant 9.99999996E-13 : f32
    %488 = vector.broadcast %cst_254 : f32 to vector<5x1xf32>
    %489 = arith.addf %485, %488 : vector<5x1xf32>
    %490 = math.rsqrt %489 : vector<5x1xf32>
    %491 = vector.broadcast %490 : vector<5x1xf32> to vector<5x32xf32>
    %492 = arith.mulf %487, %491 : vector<5x32xf32>
    %493 = vector.broadcast %472 : vector<1x32xf32> to vector<5x32xf32>
    %494 = arith.mulf %492, %493 : vector<5x32xf32>
    %495 = vector.broadcast %474 : vector<1x32xf32> to vector<5x32xf32>
    %496 = arith.addf %494, %495 : vector<5x32xf32>
    %497 = arith.truncf %496 : vector<5x32xf32> to vector<5x32xbf16>
    %c1_255 = arith.constant 1 : index
    %c0_256 = arith.constant 0 : index
    %c0_257 = arith.constant 0 : index
    %498 = vector.load %arg12[%c1_255, %c0_256, %c0_257] : memref<2x32x64xbf16, #tpu.memory_space<vmem>>, vector<1x32x64xbf16>
    %499 = vector.shape_cast %498 : vector<1x32x64xbf16> to vector<32x64xbf16>
    %cst_258 = arith.constant dense<0.000000e+00> : vector<5x64xf32>
    %500 = tpu.matmul %497, %499, %cst_258 {dimension_numbers = #tpu.dot_dimension_numbers<[1], [0], [0], [1], [0, 0, 1, 1], [], []>} : vector<5x32xbf16>, vector<32x64xbf16>, vector<5x64xf32> -> vector<5x64xf32>
    %c1_259 = arith.constant 1 : index
    %c0_260 = arith.constant 0 : index
    %c0_261 = arith.constant 0 : index
    %501 = vector.load %arg13[%c1_259, %c0_260, %c0_261] : memref<2x1x64xf32, #tpu.memory_space<vmem>>, vector<1x1x64xf32>
    %502 = vector.shape_cast %501 : vector<1x1x64xf32> to vector<1x64xf32>
    %503 = vector.broadcast %502 : vector<1x64xf32> to vector<5x64xf32>
    %504 = arith.addf %500, %503 : vector<5x64xf32>
    %505 = arith.mulf %504, %504 : vector<5x64xf32>
    %506 = arith.mulf %504, %505 : vector<5x64xf32>
    %cst_262 = arith.constant 4.471500e-02 : f32
    %507 = vector.broadcast %cst_262 : f32 to vector<5x64xf32>
    %508 = arith.mulf %507, %506 : vector<5x64xf32>
    %509 = arith.addf %504, %508 : vector<5x64xf32>
    %cst_263 = arith.constant 0.797884583 : f32
    %510 = vector.broadcast %cst_263 : f32 to vector<5x64xf32>
    %511 = arith.mulf %510, %509 : vector<5x64xf32>
    %512 = math.tanh %511 : vector<5x64xf32>
    %cst_264 = arith.constant 1.000000e+00 : f32
    %513 = vector.broadcast %cst_264 : f32 to vector<5x64xf32>
    %514 = arith.addf %513, %512 : vector<5x64xf32>
    %cst_265 = arith.constant 5.000000e-01 : f32
    %515 = vector.broadcast %cst_265 : f32 to vector<5x64xf32>
    %516 = arith.mulf %515, %514 : vector<5x64xf32>
    %517 = arith.mulf %504, %516 : vector<5x64xf32>
    %518 = arith.truncf %517 : vector<5x64xf32> to vector<5x64xbf16>
    %c1_266 = arith.constant 1 : index
    %c0_267 = arith.constant 0 : index
    %c0_268 = arith.constant 0 : index
    %519 = vector.load %arg14[%c1_266, %c0_267, %c0_268] : memref<2x64x32xbf16, #tpu.memory_space<vmem>>, vector<1x64x32xbf16>
    %520 = vector.shape_cast %519 : vector<1x64x32xbf16> to vector<64x32xbf16>
    %cst_269 = arith.constant dense<0.000000e+00> : vector<5x32xf32>
    %521 = tpu.matmul %518, %520, %cst_269 {dimension_numbers = #tpu.dot_dimension_numbers<[1], [0], [0], [1], [0, 0, 1, 1], [], []>} : vector<5x64xbf16>, vector<64x32xbf16>, vector<5x32xf32> -> vector<5x32xf32>
    %c1_270 = arith.constant 1 : index
    %c0_271 = arith.constant 0 : index
    %c0_272 = arith.constant 0 : index
    %522 = vector.load %arg15[%c1_270, %c0_271, %c0_272] : memref<2x1x32xf32, #tpu.memory_space<vmem>>, vector<1x1x32xf32>
    %523 = vector.shape_cast %522 : vector<1x1x32xf32> to vector<1x32xf32>
    %524 = vector.broadcast %523 : vector<1x32xf32> to vector<5x32xf32>
    %525 = arith.addf %521, %524 : vector<5x32xf32>
    %526 = arith.addf %470, %525 : vector<5x32xf32>
    %c0_273 = arith.constant 0 : index
    %c0_274 = arith.constant 0 : index
    %527 = vector.load %arg16[%c0_273, %c0_274] : memref<1x32xf32, #tpu.memory_space<vmem>>, vector<1x32xf32>
    %c0_275 = arith.constant 0 : index
    %c0_276 = arith.constant 0 : index
    %528 = vector.load %arg17[%c0_275, %c0_276] : memref<1x32xf32, #tpu.memory_space<vmem>>, vector<1x32xf32>
    %cst_277 = arith.constant dense<0.000000e+00> : vector<5xf32>
    %529 = vector.multi_reduction <add>, %526, %cst_277 [1] : vector<5x32xf32> to vector<5xf32>
    %530 = vector.shape_cast %529 : vector<5xf32> to vector<5x1xf32>
    %cst_278 = arith.constant 3.200000e+01 : f32
    %531 = vector.broadcast %cst_278 : f32 to vector<5x1xf32>
    %532 = arith.divf %530, %531 : vector<5x1xf32>
    %533 = vector.broadcast %532 : vector<5x1xf32> to vector<5x32xf32>
    %534 = arith.subf %526, %533 : vector<5x32xf32>
    %535 = arith.mulf %534, %534 : vector<5x32xf32>
    %cst_279 = arith.constant dense<0.000000e+00> : vector<5xf32>
    %536 = vector.multi_reduction <add>, %535, %cst_279 [1] : vector<5x32xf32> to vector<5xf32>
    %537 = vector.shape_cast %536 : vector<5xf32> to vector<5x1xf32>
    %cst_280 = arith.constant 3.200000e+01 : f32
    %538 = vector.broadcast %cst_280 : f32 to vector<5x1xf32>
    %539 = arith.divf %537, %538 : vector<5x1xf32>
    %540 = vector.broadcast %532 : vector<5x1xf32> to vector<5x32xf32>
    %541 = arith.subf %526, %540 : vector<5x32xf32>
    %cst_281 = arith.constant 9.99999996E-13 : f32
    %542 = vector.broadcast %cst_281 : f32 to vector<5x1xf32>
    %543 = arith.addf %539, %542 : vector<5x1xf32>
    %544 = math.rsqrt %543 : vector<5x1xf32>
    %545 = vector.broadcast %544 : vector<5x1xf32> to vector<5x32xf32>
    %546 = arith.mulf %541, %545 : vector<5x32xf32>
    %547 = vector.broadcast %527 : vector<1x32xf32> to vector<5x32xf32>
    %548 = arith.mulf %546, %547 : vector<5x32xf32>
    %549 = vector.broadcast %528 : vector<1x32xf32> to vector<5x32xf32>
    %550 = arith.addf %548, %549 : vector<5x32xf32>
    %c1_282 = arith.constant 1 : index
    %c0_283 = arith.constant 0 : index
    %c0_284 = arith.constant 0 : index
    %551 = vector.load %arg18[%c1_282, %c0_283, %c0_284] : memref<2x5x32xf32, #tpu.memory_space<vmem>>, vector<1x5x32xf32>
    %552 = vector.shape_cast %551 : vector<1x5x32xf32> to vector<5x32xf32>
    %553 = vector.shape_cast %550 : vector<5x32xf32> to vector<1x5x32xf32>
    tpu.vector_store %arg18[%c1_282, %c0_283, %c0_284], %553 {strides = array<i32>} : memref<2x5x32xf32, #tpu.memory_space<vmem>>, vector<1x5x32xf32>,
    return
  }
  func.func @transform_0(%arg0: i32) -> (i32, i32, i32) {
    %c0_i32 = arith.constant 0 : i32
    %c0_i32_0 = arith.constant 0 : i32
    %c0_i32_1 = arith.constant 0 : i32
    return %arg0, %c0_i32, %c0_i32_0 : i32, i32, i32
  }
  func.func @transform_1(%arg0: i32) -> (i32, i32) {
    %c0_i32 = arith.constant 0 : i32
    %c0_i32_0 = arith.constant 0 : i32
    %c0_i32_1 = arith.constant 0 : i32
    return %c0_i32, %c0_i32_0 : i32, i32
  }
  func.func @transform_2(%arg0: i32) -> (i32, i32) {
    %c0_i32 = arith.constant 0 : i32
    %c0_i32_0 = arith.constant 0 : i32
    %c0_i32_1 = arith.constant 0 : i32
    return %c0_i32, %c0_i32_0 : i32, i32
  }
  func.func @transform_3(%arg0: i32) -> (i32, i32, i32) {
    %c0_i32 = arith.constant 0 : i32
    %c0_i32_0 = arith.constant 0 : i32
    %c0_i32_1 = arith.constant 0 : i32
    %c0_i32_2 = arith.constant 0 : i32
    return %c0_i32, %c0_i32_0, %c0_i32_1 : i32, i32, i32
  }
  func.func @transform_4(%arg0: i32) -> (i32, i32, i32) {
    %c0_i32 = arith.constant 0 : i32
    %c0_i32_0 = arith.constant 0 : i32
    %c0_i32_1 = arith.constant 0 : i32
    %c0_i32_2 = arith.constant 0 : i32
    return %c0_i32, %c0_i32_0, %c0_i32_1 : i32, i32, i32
  }
  func.func @transform_5(%arg0: i32) -> (i32, i32, i32, i32) {
    %c0_i32 = arith.constant 0 : i32
    %c0_i32_0 = arith.constant 0 : i32
    %c0_i32_1 = arith.constant 0 : i32
    %c0_i32_2 = arith.constant 0 : i32
    %c0_i32_3 = arith.constant 0 : i32
    return %c0_i32, %c0_i32_0, %c0_i32_1, %c0_i32_2 : i32, i32, i32, i32
  }
  func.func @transform_6(%arg0: i32) -> (i32, i32, i32, i32) {
    %c0_i32 = arith.constant 0 : i32
    %c0_i32_0 = arith.constant 0 : i32
    %c0_i32_1 = arith.constant 0 : i32
    %c0_i32_2 = arith.constant 0 : i32
    %c0_i32_3 = arith.constant 0 : i32
    return %c0_i32, %c0_i32_0, %c0_i32_1, %c0_i32_2 : i32, i32, i32, i32
  }
  func.func @transform_7(%arg0: i32) -> (i32, i32, i32, i32) {
    %c0_i32 = arith.constant 0 : i32
    %c0_i32_0 = arith.constant 0 : i32
    %c0_i32_1 = arith.constant 0 : i32
    %c0_i32_2 = arith.constant 0 : i32
    %c0_i32_3 = arith.constant 0 : i32
    return %c0_i32, %c0_i32_0, %c0_i32_1, %c0_i32_2 : i32, i32, i32, i32
  }
  func.func @transform_8(%arg0: i32) -> (i32, i32, i32) {
    %c0_i32 = arith.constant 0 : i32
    %c0_i32_0 = arith.constant 0 : i32
    %c0_i32_1 = arith.constant 0 : i32
    %c0_i32_2 = arith.constant 0 : i32
    return %c0_i32, %c0_i32_0, %c0_i32_1 : i32, i32, i32
  }
  func.func @transform_9(%arg0: i32) -> (i32, i32, i32) {
    %c0_i32 = arith.constant 0 : i32
    %c0_i32_0 = arith.constant 0 : i32
    %c0_i32_1 = arith.constant 0 : i32
    %c0_i32_2 = arith.constant 0 : i32
    return %c0_i32, %c0_i32_0, %c0_i32_1 : i32, i32, i32
  }
  func.func @transform_10(%arg0: i32) -> (i32, i32, i32) {
    %c0_i32 = arith.constant 0 : i32
    %c0_i32_0 = arith.constant 0 : i32
    %c0_i32_1 = arith.constant 0 : i32
    %c0_i32_2 = arith.constant 0 : i32
    return %c0_i32, %c0_i32_0, %c0_i32_1 : i32, i32, i32
  }
  func.func @transform_11(%arg0: i32) -> (i32, i32, i32) {
    %c0_i32 = arith.constant 0 : i32
    %c0_i32_0 = arith.constant 0 : i32
    %c0_i32_1 = arith.constant 0 : i32
    %c0_i32_2 = arith.constant 0 : i32
    return %c0_i32, %c0_i32_0, %c0_i32_1 : i32, i32, i32
  }
  func.func @transform_12(%arg0: i32) -> (i32, i32, i32) {
    %c0_i32 = arith.constant 0 : i32
    %c0_i32_0 = arith.constant 0 : i32
    %c0_i32_1 = arith.constant 0 : i32
    %c0_i32_2 = arith.constant 0 : i32
    return %c0_i32, %c0_i32_0, %c0_i32_1 : i32, i32, i32
  }
  func.func @transform_13(%arg0: i32) -> (i32, i32, i32) {
    %c0_i32 = arith.constant 0 : i32
    %c0_i32_0 = arith.constant 0 : i32
    %c0_i32_1 = arith.constant 0 : i32
    %c0_i32_2 = arith.constant 0 : i32
    return %c0_i32, %c0_i32_0, %c0_i32_1 : i32, i32, i32
  }
  func.func @transform_14(%arg0: i32) -> (i32, i32, i32) {
    %c0_i32 = arith.constant 0 : i32
    %c0_i32_0 = arith.constant 0 : i32
    %c0_i32_1 = arith.constant 0 : i32
    %c0_i32_2 = arith.constant 0 : i32
    return %c0_i32, %c0_i32_0, %c0_i32_1 : i32, i32, i32
  }
  func.func @transform_15(%arg0: i32) -> (i32, i32) {
    %c0_i32 = arith.constant 0 : i32
    %c0_i32_0 = arith.constant 0 : i32
    %c0_i32_1 = arith.constant 0 : i32
    return %c0_i32, %c0_i32_0 : i32, i32
  }
  func.func @transform_16(%arg0: i32) -> (i32, i32) {
    %c0_i32 = arith.constant 0 : i32
    %c0_i32_0 = arith.constant 0 : i32
    %c0_i32_1 = arith.constant 0 : i32
    return %c0_i32, %c0_i32_0 : i32, i32
  }
  func.func @transform_17(%arg0: i32) -> (i32, i32, i32) {
    %c0_i32 = arith.constant 0 : i32
    %c0_i32_0 = arith.constant 0 : i32
    %c0_i32_1 = arith.constant 0 : i32
    return %arg0, %c0_i32, %c0_i32_0 : i32, i32, i32
  }
}

</mosaic_0001>

<bundles_post_ra>
// kernel: _lambda_.1
= control target key start
LH: loop header
LB: loop body
LE: loop exit
PB: predicated region body
PF: predicated region fallthrough
CT: control target
= control target key end

     0   :  { %s4323_s24 = smov 0   ;;  %s5126_s0 = inlined_call_operand.vmem [shape: bf16[4,5,192], index: 0, kind: input, shape index: {}]   ;;  %s5127_s1 = inlined_call_operand.vmem [shape: bf16[192,32], index: 1, kind: input, shape index: {}]   ;;  %s5128_s2 = inlined_call_operand.vmem [shape: f32[5,32], index: 2, kind: input, shape index: {}]   ;;  %s5129_s3 = inlined_call_operand.vmem [shape: f32[2,1,32], index: 3, kind: input, shape index: {}]   ;;  %s5130_s4 = inlined_call_operand.vmem [shape: f32[2,1,32], index: 4, kind: input, shape index: {}]   ;;  %s5131_s5 = inlined_call_operand.vmem [shape: bf16[2,4,32,24], index: 5, kind: input, shape index: {}]   ;;  %s5132_s6 = inlined_call_operand.vmem [shape: f32[2,4,1,24], index: 6, kind: input, shape index: {}]   ;;  %s5133_s7 = inlined_call_operand.vmem [shape: bf16[2,4,8,32], index: 7, kind: input, shape index: {}]   ;;  %s5134_s8 = inlined_call_operand.vmem [shape: f32[2,1,32], index: 8, kind: input, shape index: {}]   ;;  %s5135_s9 = inlined_call_operand.vmem [shape: f32[2,1,32], index: 9, kind: input, shape index: {}]   ;;  %s5136_s10 = inlined_call_operand.vmem [shape: f32[2,1,32], index: 10, kind: input, shape index: {}]   ;;  %s5137_s11 = inlined_call_operand.vmem [shape: bf16[2,32,64], index: 11, kind: input, shape index: {}]   ;;  %s5138_s12 = inlined_call_operand.vmem [shape: f32[2,1,64], index: 12, kind: input, shape index: {}]   ;;  %s5139_s13 = inlined_call_operand.vmem [shape: bf16[2,64,32], index: 13, kind: input, shape index: {}]   ;;  %s5140_s14 = inlined_call_operand.vmem [shape: f32[2,1,32], index: 14, kind: input, shape index: {}]   ;;  %s5141_s15 = inlined_call_operand.vmem [shape: f32[1,32], index: 15, kind: input, shape index: {}]   ;;  %s5142_s16 = inlined_call_operand.vmem [shape: f32[1,32], index: 16, kind: input, shape index: {}]   ;;  %s5143_s17 = inlined_call_operand.vmem [shape: f32[4,5,32], index: 17, kind: output, shape index: {}]  }
   0x1   :  { %5150 = sst [smem:[#allocation2_spill]] %s5126_s0 }
   0x2   :  { %5151 = sst [smem:[#allocation3_spill]] %s5127_s1 }
   0x3 LB: > { %s3492_s25 = sadd.s32 4294967295, %s4227_s24   ;;  %p3496_p0 = scmp.ge.s32.totalorder %s4227_s24, 1  ;;  %s4227_s24 = sphi %s4323_s24, %s27_s24  }
   0x4   : > { %p489_p1 = scmp.lt.s32.totalorder %s4227_s24, 3 }
   0x6   : > { %p490_p2 = pnand %p3496_p0, %p489_p1 }
   0x7   : > { %s5152_s28 = sld [smem:[#allocation3_spill]] (!%p490_p2)  ;;  %s3497_s29 = sshll.u32 (!%p490_p2), %s3492_s25, 1 }
   0x8   : > { %493 = sbr.rel (%p490_p2) target bundleno = 7119 (0x1bcf), region = 88  ;;  %p543_p3 = scmp.lt.s32.totalorder (!%p490_p2), %s3497_s29, 3 }
   0x9   : > { %s5153_s27 = sld [smem:[#allocation2_spill]] (!%p490_p2)  ;;  %s5148_s30 = smov (!%p490_p2), 120  }
   0xa   : > { %s5146_s21 = smov (!%p490_p2), 112   ;;  %s5154_s26 = smov (!%p490_p2), 112  }
   0xb   : > { %s5155_s19 = smov (!%p490_p2), 120  }
   0xd   : > { %v3994_v0 = vld [vmem:[%s5152_s28 + $0x38] sm:$0xff]  ;;  %v3993_v2 = vld [vmem:[%s5152_s28 + $0x30] sm:$0xff]  ;;  %s5158_s29 = smov (!%p543_p3, %s3497_s29), 3  ;;  %v3992_v4 = vld [vmem:[%s5152_s28 + $0x28] sm:$0xff]  ;;  %vm660_vm0 = vcmask 523264   ;;  %vm692_vm1 = vcmask 258048  }
   0xe   : > { %v3998_v1 = vld [vmem:[%s5152_s28 + $0x58] sm:$0xff]  ;;  %664 = vmatpush.bf16.msra.mxu0 %v3994_v0  ;;  %v3997_v3 = vld [vmem:[%s5152_s28 + $0x50] sm:$0xff]  ;;  %s5145_s23 = sshll.u32 %s5158_s29, 3  ;;  %v3996_v5 = vld [vmem:[%s5152_s28 + $0x48] sm:$0xff]  ;;  %v4229_v25 = vmov 32.0   ;;  %vm775_vm6 = vcmask 261120  }
   0xf   : > { %681 = vmatpush.bf16.msra.mxu1 %v3998_v1  ;;  %s4354_s0 = scalar_lea.vmem %s5153_s27, %s5145_s23  ;;  %v3991_v7 = vld [vmem:[%s5152_s28 + $0x20] sm:$0xff]  ;;  %v3990_v10 = vld [vmem:[%s5152_s28 + $0x18] sm:$0xff]  ;;  %v3989_v12 = vld [vmem:[%s5152_s28 + $0x10] sm:$0xff]  ;;  %4127 = vrcp.f32 %v4229_v25  ;;  %vm876_vm7 = vcmask 64512   ;;  %vm968_vm8 = vcmask 36864   ;;  %vm1023_vm9 = vcmask 1041408  }
  0x10   : > { %v556_v6 = vld [vmem:[%s4354_s0] sm:$0x77]  ;;  %v3988_v13 = vld [vmem:[%s5152_s28 + $0x8] sm:$0xff]  ;;  %v4002_v38 = vld [vmem:[%s5131_s5 + $0x18] sm:$0xff]  ;;  %vm1024_vm10 = vcmask 1042432   ;;  %vm1019_vm11 = vcmask 39936  }
  0x11   : > { %v3995_v8 = vld [vmem:[%s5152_s28 + $0x40] sm:$0xff]  ;;  %v584_v9 = vunpack.c.h.b16 %v556_v6  ;;  %v583_v14 = vunpack.c.l.b16 %v556_v6  ;;  %v4000_v37 = vld [vmem:[%s5131_s5 + $0x8] sm:$0xff]  ;;  %810 = vmatpush.bf16.msra.mxu3 %v4002_v38  ;;  %v4001_v40 = vld [vmem:[%s5131_s5 + $0x10] sm:$0xff]  ;;  %vm1117_vm12 = vcmask 1043456  }
  0x12   : > { %665 = vmatpush.bf16.msra.mxu0 %v3993_v2  ;;  %v3987_v15 = vld [vmem:[%s5152_s28] sm:$0xff]  ;;  %785 = vmatpush.bf16.msra.mxu2 %v4000_v37  ;;  %v4004_v41 = vld [vmem:[%s5131_s5 + $0x28] sm:$0xff]  ;;  %v4006_v42 = vld [vmem:[%s5131_s5 + $0x38] sm:$0xff] }
  0x13   : > { %682 = vmatpush.bf16.msra.mxu1 %v3997_v3  ;;  %v586_v11 = vpack.c.b16 %v584_v9, %v584_v9  ;;  %v585_v16 = vpack.c.b16 %v583_v14, %v583_v14  ;;  %v581_v19 = vld [vmem:[%s5128_s2] sm:$0x1f]  ;;  %v4005_v46 = vld [vmem:[%s5131_s5 + $0x30] sm:$0xff] }
  0x14   : > { %v3999_v39 = vld [vmem:[%s5131_s5] sm:$0xff] }
  0x15   : > { %v4128_v26 = vpop.eup %4127  ;;  %811 = vmatpush.bf16.msra.mxu3 %v4001_v40  ;;  %v4003_v45 = vld [vmem:[%s5131_s5 + $0x20] sm:$0xff] }
  0x16   : > { %666 = vmatpush.bf16.msra.mxu0 %v3992_v4  ;;  %v697_v27 = vmul.f32 32.0, %v4128_v26  ;;  %vm701_vm2 = vweird.f32 %v4128_v26  ;;  %786 = vmatpush.bf16.msra.mxu2 %v3999_v39  ;;  %v4079_v54 = vld [vmem:[%s5129_s3] ss:$0 sm:$0xff]  ;;  %v4082_v62 = vld [vmem:[%s5132_s6 + $0x1] ss:$0 sm:$0xff] }
  0x17   : > { %683 = vmatpush.bf16.msra.mxu1 %v3996_v5  ;;  %v4080_v57 = vld [vmem:[%s5130_s4] ss:$0 sm:$0xff] }
  0x18   : > { %v698_v28 = vsub.f32 1.0, %v697_v27  ;;  %v4081_v61 = vld [vmem:[%s5132_s6] ss:$0 sm:$0xff] }
  0x19   : > { %860 = vmatpush.bf16.msrb.mxu3 %v4006_v42 }
  0x1a   : > { %667 = vmatpush.bf16.msra.mxu0 %v3991_v7  ;;  %v699_v29 = vmul.f32 %v4128_v26, %v698_v28  ;;  %835 = vmatpush.bf16.msrb.mxu2 %v4004_v41 }
  0x1b   : > { %684 = vmatpush.bf16.msra.mxu1 %v3995_v8 }
  0x1c   : > { %v700_v30 = vadd.f32 %v4128_v26, %v699_v29 }
  0x1d   : > { %861 = vmatpush.bf16.msrb.mxu3 %v4005_v46 }
  0x1e   : > { %668 = vmatpush.bf16.msra.mxu0 %v3990_v10  ;;  %3550 = vmatmul.msk.bf16.vlgmr.msra.gmra.mxu1 %vm660_vm0, %v586_v11  ;;  %v4386_v31 = vsel %vm701_vm2, %v4128_v26, %v700_v30  ;;  %v4083_v11 = vld [vmem:[%s5132_s6 + $0x2] ss:$0 sm:$0xff] }
  0x1f   : > { %836 = vmatpush.bf16.msrb.mxu2 %v4003_v45 }
  0x22   : > { %669 = vmatpush.bf16.msra.mxu0 %v3989_v12  ;;  %v4084_v12 = vld [vmem:[%s5132_s6 + $0x3] ss:$0 sm:$0xff] }
  0x26   : > { %670 = vmatpush.bf16.msra.mxu0 %v3988_v13 }
  0x2a   : > { %671 = vmatpush.bf16.msra.mxu0 %v3987_v15 }
  0x2d   : > { %672 = vmatmul.bf16.vlgmr.msra.gmra.mxu0 %v585_v16 }
  0x9b   : > { %v686_v17 = vpop.f32.mrf.mxu1 }
  0xa3   : > { %v688_v18 = vpop.f32.mrf.mxu1 }
  0xaa   : > { %v673_v20 = vpop.f32.mrf.mxu0 }
  0xab   : > { %v674_v21 = vadd.f32 %v673_v20, %v581_v19 }
  0xad   : > { %v4382_v22 = vadd.f32 %v686_v17, %v674_v21 }
  0xaf   : > { %v693_v23 = vsel %vm692_vm1, %v4382_v22, 0.0 }
  0xb0   : > { %694 = vadd.xlane.f32.xlu0 %v693_v23 }
  0xb2   : > { %v675_v24 = vpop.f32.mrf.mxu0 }
 0x123   : > { %v695_v32 = vpop.xlane.xlu0 %694 }
 0x124   : > { %v703_v33 = vmul.f32 %v4386_v31, %v695_v32 }
 0x126   : > { %v704_v34 = vsub.f32 %v4382_v22, %v703_v33 }
 0x128   : > { %v705_v35 = vmul.f32 %v704_v34, %v704_v34 }
 0x12a   : > { %v706_v36 = vsel %vm692_vm1, %v705_v35, 0.0 }
 0x12b   : > { %707 = vadd.xlane.f32.xlu0 %v706_v36 }
 0x19e   : > { %v708_v43 = vpop.xlane.xlu0 %707 }
 0x19f   : > { %v709_v44 = vmul.f32 %v708_v43, %v4386_v31 }
 0x1a1   : > { %v710_v47 = vadd.f32 1e-12, %v709_v44 }
 0x1a3   : > { %4129 = vrsqrt.f32 %v710_v47  ;;  %vm717_vm4 = vweird.f32 %v710_v47 }
 0x1a9   : > { %v4130_v48 = vpop.eup %4129 }
 0x1aa   : > { %v712_v49 = vmul.f32 %v4130_v48, %v710_v47  ;;  %vm718_vm3 = vweird.f32 %v4130_v48 }
 0x1ab   : > { %vm719_vm5 = vmor %vm717_vm4, %vm718_vm3 }
 0x1ac   : > { %v713_v50 = vmul.f32 %v4130_v48, %v712_v49 }
 0x1ae   : > { %v714_v51 = vmul.f32 0.5, %v713_v50  ;;  %v4232_v50 = vmov 65535  }
 0x1b0   : > { %v715_v52 = vsub.f32 1.5, %v714_v51  ;;  %v1025_v51 = vsel %vm1023_vm9, 4294967295, %v4232_v50 }
 0x1b2   : > { %v716_v53 = vmul.f32 %v4130_v48, %v715_v52  ;;  %v4462_v52 = vsel %vm1024_vm10, %v1025_v51, 0 }
 0x1b4   : > { %v720_v55 = vsel %vm719_vm5, %v4130_v48, %v716_v53 }
 0x1b5   : > { %v721_v56 = vmul.f32 %v720_v55, %v704_v34 }
 0x1b7   : > { %v725_v58 = vmul.f32 %v4079_v54, %v721_v56 }
 0x1b9   : > { %v729_v59 = vadd.f32 %v4080_v57, %v725_v58 }
 0x1bb   : > { %v730_v60 = vpack.c.bf16 %v729_v59, %v729_v59 }
 0x1bd   : > { %3559 = vmatmul.msk.bf16.vlgmr.msra.gmra.mxu2 %vm775_vm6, %v730_v60  ;;  %3568 = vmatmul.msk.bf16.vlgmr.msra.gmra.mxu3 %vm775_vm6, %v730_v60 }
 0x1cd   : > { %3577 = vmatmul.msk.bf16.vlgmr.msrb.gmra.mxu2 %vm775_vm6, %v730_v60  ;;  %3586 = vmatmul.msk.bf16.vlgmr.msrb.gmra.mxu3 %vm775_vm6, %v730_v60 }
 0x240   : > { %v788_v63 = vpop.f32.mrf.mxu2  ;;  %v813_v0 = vpop.f32.mrf.mxu3 }
 0x241   : > { %v789_v1 = vadd.f32 %v4081_v61, %v788_v63  ;;  %v814_v2 = vadd.f32 %v4082_v62, %v813_v0 }
 0x243   : > { %v867_v3 = vpack.c.bf16 %v789_v1, %v789_v1  ;;  %v868_v4 = vpack.c.bf16 %v814_v2, %v814_v2 }
 0x245   : > { %v897_v5 = vunpack.c.l.b16 %v868_v4  ;;  %v872_v6 = vunpack.c.l.b16 %v867_v3 }
 0x247   : > { %v898_v7 = vpack.c.b16 %v897_v5, %v897_v5  ;;  %v4432_v8 = vpack.c.b16 %v872_v6, %v872_v6 }
 0x248   : > { %v790_v9 = vpop.f32.mrf.mxu2  ;;  %v815_v10 = vpop.f32.mrf.mxu3 }
 0x249   : > { %899 = vrot.lane.b32.xlu1 %v898_v7, %s5148_s30  ;;  %874 = vrot.lane.b32.xlu2 %v4432_v8, %s5148_s30 }
 0x250   : > { %v838_v13 = vpop.f32.mrf.mxu2  ;;  %v863_v14 = vpop.f32.mrf.mxu3 }
 0x251   : > { %v839_v15 = vadd.f32 %v4083_v11, %v838_v13  ;;  %v864_v16 = vadd.f32 %v4084_v12, %v863_v14 }
 0x253   : > { %v869_v17 = vpack.c.bf16 %v839_v15, %v839_v15  ;;  %v870_v18 = vpack.c.bf16 %v864_v16, %v864_v16 }
 0x255   : > { %v921_v19 = vunpack.c.l.b16 %v869_v17  ;;  %v945_v20 = vunpack.c.l.b16 %v870_v18 }
 0x257   : > { %v922_v21 = vpack.c.b16 %v921_v19, %v921_v19  ;;  %v4443_v23 = vpack.c.b16 %v945_v20, %v945_v20 }
 0x258   : > { %v840_v24 = vpop.f32.mrf.mxu2  ;;  %v865_v25 = vpop.f32.mrf.mxu3 }
 0x259   : > { %923 = vrot.lane.b32.xlu1 %v922_v21, %s5148_s30  ;;  %947 = vrot.lane.b32.xlu2 %v4443_v23, %s5148_s30 }
 0x2a3   : > { %v875_v26 = vpop.permute.xlu2 %874 }
 0x2a4   : > { %v881_v27 = vsel %vm876_vm7, %v875_v26, 0 }
 0x2a5   : > { %890 = vmatpush.bf16.xpose.msrb.mxu1 %v881_v27 }
 0x2ac   : > { %3587 = vmatmul.msk.bf16.vlgmr.msrb.gmra.mxu1 %vm876_vm7, %v867_v3 }
 0x2b3   : > { %v948_v28 = vpop.permute.xlu2 %947 }
 0x2b4   : > { %v953_v29 = vsel %vm876_vm7, %v948_v28, 0 }
 0x2b5   : > { %962 = vmatpush.bf16.xpose.msrb.mxu0 %v953_v29 }
 0x2bb   : > { %v900_v30 = vpop.permute.xlu1 %899 }
 0x2bc   : > { %v905_v32 = vsel %vm876_vm7, %v900_v30, 0  ;;  %3590 = vmatmul.msk.bf16.vlgmr.msrb.gmra.mxu0 %vm876_vm7, %v870_v18 }
 0x2bd   : > { %914 = vmatpush.bf16.xpose.msra.mxu2 %v905_v32  ;;  %v1111_v32 = vld [vmem:[%s5133_s7 + $0x4] sm:$0xf] }
 0x2c4   : > { %3588 = vmatmul.msk.bf16.vlgmr.msra.gmra.mxu2 %vm876_vm7, %v868_v4 }
 0x2cb   : > { %v924_v33 = vpop.permute.xlu1 %923 }
 0x2cc   : > { %v929_v34 = vsel %vm876_vm7, %v924_v33, 0  ;;  %v1138_v33 = vsel %vm1117_vm12, %v1111_v32, 0  ;;  %v4012_v32 = vld [vmem:[%s5139_s13 + $0x18] sm:$0xff] }
 0x2cd   : > { %938 = vmatpush.bf16.xpose.msra.mxu3 %v929_v34  ;;  %v1112_v34 = vld [vmem:[%s5133_s7 + $0x8] sm:$0xf] }
 0x2d4   : > { %3589 = vmatmul.msk.bf16.vlgmr.msra.gmra.mxu3 %vm876_vm7, %v869_v17 }
 0x329   : > { %v892_v35 = vpop.f32.mrf.mxu1 }
 0x32a   : > { %v969_v36 = vsel %vm968_vm8, %v892_v35, -inf }
 0x32b   : > { %970 = vmax.xlane.f32.xlu2 %v969_v36  ;;  %v1113_v36 = vld [vmem:[%s5133_s7 + $0xc] sm:$0xf] }
 0x331   : > { %v894_v37 = vpop.f32.mrf.mxu1 }
 0x332   : > { %v1176_v37 = vsel %vm1117_vm12, %v1113_v36, 0  ;;  %v4088_v36 = vld [vmem:[%s5138_s12] ss:$0 sm:$0xff] }
 0x339   : > { %v964_v38 = vpop.f32.mrf.mxu0 }
 0x33a   : > { %v978_v43 = vsel %vm968_vm8, %v964_v38, -inf }
 0x341   : > { %v966_v39 = vpop.f32.mrf.mxu0 }
 0x343   : > { %1064 = vrot.lane.b32.xlu2 %v922_v21, %s5146_s21 }
 0x347   : > { %v916_v40 = vpop.f32.mrf.mxu2 }
 0x348   : > { %v972_v41 = vsel %vm968_vm8, %v916_v40, -inf }
 0x349   : > { %973 = vmax.xlane.f32.xlu0 %v972_v41 }
 0x34f   : > { %v918_v42 = vpop.f32.mrf.mxu2 }
 0x351   : > { %979 = vmax.xlane.f32.xlu0 %v978_v43 }
 0x357   : > { %v940_v44 = vpop.f32.mrf.mxu3 }
 0x358   : > { %v975_v45 = vsel %vm968_vm8, %v940_v44, -inf }
 0x359   : > { %976 = vmax.xlane.f32.xlu1 %v975_v45 }
 0x35f   : > { %v942_v46 = vpop.f32.mrf.mxu3 }
 0x365   : > { %1043 = vrot.lane.b32.xlu0 %v898_v7, %s5146_s21 }
 0x39e   : > { %v971_v47 = vpop.xlane.xlu2 %970 }
 0x39f   : > { %v981_v48 = vsub.f32 %v892_v35, %v971_v47  ;;  %v1157_v35 = vsel %vm1117_vm12, %v1112_v34, 0  ;;  %v4010_v34 = vld [vmem:[%s5139_s13 + $0x8] sm:$0xff] }
 0x3a1   : > { %v985_v49 = vmul.f32 1.442695, %v981_v48 }
 0x3a3   : > { %4131 = vpow2.f32 %v985_v49 }
 0x3a6   : > { %v1065_v53 = vpop.permute.xlu2 %1064 }
 0x3a7   : > { %v1070_v54 = vand.u32 %v1065_v53, %v4462_v52 }
 0x3a9   : > { %v4132_v55 = vpop.eup %4131  ;;  %1079 = vmatpush.bf16.msrb.mxu3 %v1070_v54 }
 0x3aa   : > { %v993_v56 = vsel %vm968_vm8, %v4132_v55, 0.0 }
 0x3ab   : > { %994 = vadd.xlane.f32.xlu1 %v993_v56 }
 0x3ad   : > { %1166 = vmatpush.bf16.msra.mxu3 %v1157_v35  ;;  %v4009_v35 = vld [vmem:[%s5139_s13] sm:$0xff] }
 0x3bc   : > { %v974_v57 = vpop.xlane.xlu0 %973 }
 0x3bd   : > { %v982_v58 = vsub.f32 %v916_v40, %v974_v57 }
 0x3bf   : > { %v987_v59 = vmul.f32 1.442695, %v982_v58 }
 0x3c1   : > { %4133 = vpow2.f32 %v987_v59 }
 0x3c4   : > { %v980_v60 = vpop.xlane.xlu0 %979 }
 0x3c5   : > { %v984_v61 = vsub.f32 %v964_v38, %v980_v60  ;;  %v1110_v38 = vld [vmem:[%s5133_s7] sm:$0xf] }
 0x3c6   : > { %v1119_v39 = vsel %vm1117_vm12, %v1110_v38, 0 }
 0x3c7   : > { %v4134_v62 = vpop.eup %4133  ;;  %v991_v63 = vmul.f32 1.442695, %v984_v61 }
 0x3c8   : > { %v996_v0 = vsel %vm968_vm8, %v4134_v62, 0.0 }
 0x3c9   : > { %4135 = vpow2.f32 %v991_v63  ;;  %997 = vadd.xlane.f32.xlu0 %v996_v0 }
 0x3cc   : > { %v977_v1 = vpop.xlane.xlu1 %976 }
 0x3cd   : > { %v983_v2 = vsub.f32 %v940_v44, %v977_v1 }
 0x3cf   : > { %v4136_v3 = vpop.eup %4135  ;;  %v989_v4 = vmul.f32 1.442695, %v983_v2  ;;  %v4085_v2 = vld [vmem:[%s5134_s8] ss:$0 sm:$0xff] }
 0x3d0   : > { %v1002_v5 = vsel %vm968_vm8, %v4136_v3, 0.0 }
 0x3d1   : > { %4137 = vpow2.f32 %v989_v4  ;;  %1003 = vadd.xlane.f32.xlu1 %v1002_v5 }
 0x3d7   : > { %v4138_v6 = vpop.eup %4137  ;;  %v1044_v7 = vpop.permute.xlu0 %1043 }
 0x3d8   : > { %v1049_v9 = vand.u32 %v1044_v7, %v4462_v52  ;;  %v999_v10 = vsel %vm968_vm8, %v4138_v6, 0.0 }
 0x3d9   : > { %1000 = vadd.xlane.f32.xlu0 %v999_v10 }
 0x3da   : > { %1058 = vmatpush.bf16.msrb.mxu2 %v1049_v9 }
 0x3de   : > { %1147 = vmatpush.bf16.msra.mxu2 %v1138_v33  ;;  %v4011_v33 = vld [vmem:[%s5139_s13 + $0x10] sm:$0xff] }
 0x3ea   : > { %1085 = vrot.lane.b32.xlu1 %v4443_v23, %s5146_s21 }
 0x3ed   : > { %1017 = vrot.lane.b32.xlu0 %v4432_v8, %s5146_s21 }
 0x41e   : > { %v995_v15 = vpop.xlane.xlu1 %994 }
 0x43c   : > { %v998_v11 = vpop.xlane.xlu0 %997 }
 0x43d   : > { %4139 = vrcp.f32 %v998_v11 }
 0x443   : > { %v4140_v12 = vpop.eup %4139 }
 0x444   : > { %v1010_v13 = vmul.f32 %v4140_v12, %v4134_v62  ;;  %v1004_v17 = vpop.xlane.xlu1 %1003 }
 0x446   : > { %v1014_v14 = vpack.c.bf16 %v1010_v13, %v1010_v13 }
 0x448   : > { %3592 = vmatmul.msk.bf16.vlgmr.msrb.gmra.mxu2 %vm1019_vm11, %v1014_v14  ;;  %v4008_v14 = vld [vmem:[%s5137_s11 + $0x8] sm:$0xff] }
 0x449   : > { %1326 = vmatpush.bf16.msrb.mxu2 %v4012_v32 }
 0x44c   : > { %v1001_v16 = vpop.xlane.xlu0 %1000 }
 0x44d   : > { %4141 = vrcp.f32 %v1001_v16  ;;  %1327 = vmatpush.bf16.msrb.mxu2 %v4011_v33 }
 0x44e   : > { %4143 = vrcp.f32 %v1004_v17 }
 0x44f   : > { %4145 = vrcp.f32 %v995_v15 }
 0x451   : > { %1328 = vmatpush.bf16.msrb.mxu2 %v4010_v34 }
 0x453   : > { %v4142_v18 = vpop.eup %4141 }
 0x454   : > { %v1011_v19 = vmul.f32 %v4142_v18, %v4138_v6  ;;  %v4144_v8 = vpop.eup %4143 }
 0x455   : > { %v4146_v21 = vpop.eup %4145  ;;  %v1012_v23 = vmul.f32 %v4144_v8, %v4136_v3  ;;  %1329 = vmatpush.bf16.msrb.mxu2 %v4009_v35 }
 0x456   : > { %v1015_v20 = vpack.c.bf16 %v1011_v19, %v1011_v19  ;;  %v1009_v26 = vmul.f32 %v4146_v21, %v4132_v55 }
 0x457   : > { %v1016_v28 = vpack.c.bf16 %v1012_v23, %v1012_v23 }
 0x458   : > { %3593 = vmatmul.msk.bf16.vlgmr.msrb.gmra.mxu3 %vm1019_vm11, %v1015_v20  ;;  %v1013_v30 = vpack.c.bf16 %v1009_v26, %v1009_v26 }
 0x45c   : > { %v1086_v24 = vpop.permute.xlu1 %1085 }
 0x45d   : > { %v1091_v25 = vand.u32 %v1086_v24, %v4462_v52  ;;  %v4086_v24 = vld [vmem:[%s5135_s9] ss:$0 sm:$0xff] }
 0x45f   : > { %v1018_v27 = vpop.permute.xlu0 %1017  ;;  %1100 = vmatpush.bf16.msra.mxu0 %v1091_v25 }
 0x460   : > { %v1028_v29 = vand.u32 %v4462_v52, %v1018_v27  ;;  %v4087_v27 = vld [vmem:[%s5136_s10] ss:$0 sm:$0xff] }
 0x462   : > { %1037 = vmatpush.bf16.msra.mxu1 %v1028_v29  ;;  %3594 = vmatmul.msk.bf16.vlgmr.msra.gmra.mxu0 %vm1019_vm11, %v1016_v28 }
 0x463   : > { %1185 = vmatpush.bf16.msrb.mxu0 %v1176_v37 }
 0x465   : > { %3591 = vmatmul.msk.bf16.vlgmr.msra.gmra.mxu1 %vm1019_vm11, %v1013_v30 }
 0x466   : > { %1128 = vmatpush.bf16.msrb.mxu1 %v1119_v39 }
 0x46a   : > { %1266 = vmatpush.bf16.msra.mxu1 %v4008_v14 }
 0x4cb   : > { %v1060_v40 = vpop.f32.mrf.mxu2 }
 0x4cc   : > { %v1107_v41 = vpack.c.bf16 %v1060_v40, %v1060_v40 }
 0x4ce   : > { %3596 = vmatmul.msk.bf16.vlgmr.msra.gmra.mxu2 %vm876_vm7, %v1107_v41 }
 0x4d3   : > { %v1062_v42 = vpop.f32.mrf.mxu2 }
 0x4db   : > { %v1081_v43 = vpop.f32.mrf.mxu3 }
 0x4dc   : > { %v1108_v44 = vpack.c.bf16 %v1081_v43, %v1081_v43 }
 0x4de   : > { %3597 = vmatmul.msk.bf16.vlgmr.msra.gmra.mxu3 %vm876_vm7, %v1108_v44 }
 0x4df   : > { %v1102_v45 = vpop.f32.mrf.mxu0 }
 0x4e0   : > { %v1109_v46 = vpack.c.bf16 %v1102_v45, %v1102_v45 }
 0x4e2   : > { %v1039_v47 = vpop.f32.mrf.mxu1  ;;  %3598 = vmatmul.msk.bf16.vlgmr.msrb.gmra.mxu0 %vm876_vm7, %v1109_v46 }
 0x4e3   : > { %v1106_v48 = vpack.c.bf16 %v1039_v47, %v1039_v47  ;;  %v1083_v49 = vpop.f32.mrf.mxu3 }
 0x4e5   : > { %3595 = vmatmul.msk.bf16.vlgmr.msrb.gmra.mxu1 %vm876_vm7, %v1106_v48 }
 0x4e7   : > { %v1104_v50 = vpop.f32.mrf.mxu0 }
 0x4e8   : > { %v4089_v50 = vld [vmem:[%s5140_s14] ss:$0 sm:$0xff] }
 0x4ea   : > { %v1041_v51 = vpop.f32.mrf.mxu1 }
 0x551   : > { %v1149_v53 = vpop.f32.mrf.mxu2 }
 0x552   : > { %v1192_v58 = vsel %vm692_vm1, %v1149_v53, 0.0 }
 0x559   : > { %v1151_v54 = vpop.f32.mrf.mxu2 }
 0x55f   : > { %v1187_v55 = vpop.f32.mrf.mxu0 }
 0x560   : > { %v1196_v63 = vsel %vm692_vm1, %v1187_v55, 0.0 }
 0x561   : > { %v1168_v56 = vpop.f32.mrf.mxu3 }
 0x562   : > { %v1130_v57 = vpop.f32.mrf.mxu1  ;;  %v1194_v61 = vsel %vm692_vm1, %v1168_v56, 0.0 }
 0x563   : > { %v1191_v59 = vsel %vm692_vm1, %v1130_v57, 0.0 }
 0x564   : > { %v1193_v60 = vadd.f32 %v1192_v58, %v1191_v59 }
 0x566   : > { %v1195_v62 = vadd.f32 %v1194_v61, %v1193_v60 }
 0x567   : > { %v1189_v0 = vpop.f32.mrf.mxu0 }
 0x568   : > { %v1197_v1 = vadd.f32 %v1196_v63, %v1195_v62  ;;  %v4014_v62 = vld [vmem:[%s5131_s5 + $0x48] sm:$0xff]  ;;  %v4016_v63 = vld [vmem:[%s5131_s5 + $0x58] sm:$0xff] }
 0x569   : > { %v1170_v3 = vpop.f32.mrf.mxu3  ;;  %v4018_v0 = vld [vmem:[%s5131_s5 + $0x68] sm:$0xff]  ;;  %1426 = vmatpush.bf16.msrb.mxu3 %v4014_v62  ;;  %1451 = vmatpush.bf16.msra.mxu0 %v4016_v63 }
 0x56a   : > { %v1132_v4 = vpop.f32.mrf.mxu1  ;;  %v1198_v5 = vadd.f32 %v1197_v1, %v4382_v22  ;;  %v4007_v22 = vld [vmem:[%s5137_s11] sm:$0xff]  ;;  %v4020_v1 = vld [vmem:[%s5131_s5 + $0x78] sm:$0xff]  ;;  %v4015_v3 = vld [vmem:[%s5131_s5 + $0x50] sm:$0xff] }
 0x56b   : > { %1267 = vmatpush.bf16.msra.mxu1 %v4007_v22  ;;  %1501 = vmatpush.bf16.msra.mxu2 %v4020_v1  ;;  %v4017_v4 = vld [vmem:[%s5131_s5 + $0x60] sm:$0xff] }
 0x56c   : > { %v1203_v6 = vadd.f32 %v4085_v2, %v1198_v5  ;;  %v4013_v2 = vld [vmem:[%s5131_s5 + $0x40] sm:$0xff]  ;;  %v4019_v5 = vld [vmem:[%s5131_s5 + $0x70] sm:$0xff] }
 0x56d   : > { %1427 = vmatpush.bf16.msrb.mxu3 %v4013_v2  ;;  %1452 = vmatpush.bf16.msra.mxu0 %v4015_v3 }
 0x56e   : > { %v1206_v7 = vsel %vm692_vm1, %v1203_v6, 0.0 }
 0x56f   : > { %1207 = vadd.xlane.f32.xlu0 %v1206_v7  ;;  %1476 = vmatpush.bf16.msrb.mxu1 %v4018_v0 }
 0x570   : > { %1502 = vmatpush.bf16.msra.mxu2 %v4019_v5 }
 0x573   : > { %1477 = vmatpush.bf16.msrb.mxu1 %v4017_v4 }
 0x5e2   : > { %v1208_v9 = vpop.xlane.xlu0 %1207 }
 0x5e3   : > { %v1209_v10 = vmul.f32 %v1208_v9, %v4386_v31 }
 0x5e5   : > { %v1210_v11 = vsub.f32 %v1203_v6, %v1209_v10 }
 0x5e7   : > { %v1211_v12 = vmul.f32 %v1210_v11, %v1210_v11 }
 0x5e9   : > { %v1212_v13 = vsel %vm692_vm1, %v1211_v12, 0.0 }
 0x5ea   : > { %1213 = vadd.xlane.f32.xlu2 %v1212_v13 }
 0x65d   : > { %v1214_v15 = vpop.xlane.xlu2 %1213 }
 0x65e   : > { %v1215_v16 = vmul.f32 %v1214_v15, %v4386_v31  ;;  %v4090_v15 = vld [vmem:[%s5129_s3 + $0x1] ss:$0 sm:$0xff] }
 0x660   : > { %v1216_v17 = vadd.f32 1e-12, %v1215_v16 }
 0x662   : > { %4147 = vrsqrt.f32 %v1216_v17  ;;  %vm1223_vm14 = vweird.f32 %v1216_v17 }
 0x668   : > { %v4148_v18 = vpop.eup %4147 }
 0x669   : > { %v1218_v19 = vmul.f32 %v4148_v18, %v1216_v17  ;;  %vm1224_vm13 = vweird.f32 %v4148_v18 }
 0x66a   : > { %vm1225_vm15 = vmor %vm1223_vm14, %vm1224_vm13 }
 0x66b   : > { %v1219_v20 = vmul.f32 %v4148_v18, %v1218_v19 }
 0x66d   : > { %v1220_v8 = vmul.f32 0.5, %v1219_v20 }
 0x66f   : > { %v1221_v21 = vsub.f32 1.5, %v1220_v8 }
 0x671   : > { %v1222_v23 = vmul.f32 %v4148_v18, %v1221_v21  ;;  %v4092_v21 = vld [vmem:[%s5132_s6 + $0x5] ss:$0 sm:$0xff] }
 0x673   : > { %v1226_v25 = vsel %vm1225_vm15, %v4148_v18, %v1222_v23  ;;  %v4091_v18 = vld [vmem:[%s5130_s4 + $0x1] ss:$0 sm:$0xff] }
 0x674   : > { %v1227_v26 = vmul.f32 %v1226_v25, %v1210_v11 }
 0x676   : > { %v1231_v28 = vmul.f32 %v4086_v24, %v1227_v26 }
 0x678   : > { %v1235_v29 = vadd.f32 %v4087_v27, %v1231_v28  ;;  %v4094_v27 = vld [vmem:[%s5132_s6 + $0x4] ss:$0 sm:$0xff]  ;;  %v4095_v28 = vld [vmem:[%s5132_s6 + $0x7] ss:$0 sm:$0xff] }
 0x67a   : > { %v1236_v30 = vpack.c.bf16 %v1235_v29, %v1235_v29 }
 0x67c   : > { %3607 = vmatmul.msk.bf16.vlgmr.msra.gmra.mxu1 %vm775_vm6, %v1236_v30  ;;  %v4093_v30 = vld [vmem:[%s5132_s6 + $0x6] ss:$0 sm:$0xff] }
 0x6f9   : > { %v1269_v37 = vpop.f32.mrf.mxu1 }
 0x6fa   : > { %v1270_v38 = vadd.f32 %v4088_v36, %v1269_v37 }
 0x6fc   : > { %v1273_v39 = vmul.f32 %v1270_v38, %v1270_v38 }
 0x6fe   : > { %v1274_v40 = vmul.f32 %v1273_v39, %v1270_v38 }
 0x700   : > { %v1275_v41 = vmul.f32 0.044715, %v1274_v40 }
 0x701   : > { %v1271_v42 = vpop.f32.mrf.mxu1 }
 0x702   : > { %v1276_v43 = vadd.f32 %v1275_v41, %v1270_v38 }
 0x704   : > { %v1277_v44 = vmul.f32 0.7978846, %v1276_v43 }
 0x706   : > { %4149 = vtanh.f32 %v1277_v44 }
 0x70c   : > { %v4150_v45 = vpop.eup %4149 }
 0x70d   : > { %v1279_v46 = vadd.f32 1.0, %v4150_v45 }
 0x70f   : > { %v1280_v47 = vmul.f32 0.5, %v1279_v46 }
 0x711   : > { %v1281_v48 = vmul.f32 %v1280_v47, %v1270_v38 }
 0x713   : > { %v1282_v49 = vpack.c.bf16 %v1281_v48, %v1281_v48 }
 0x715   : > { %3624 = vmatmul.msk.bf16.vlgmr.msrb.gmra.mxu2 %vm660_vm0, %v1282_v49 }
 0x798   : > { %v1331_v51 = vpop.f32.mrf.mxu2 }
 0x799   : > { %v1332_v53 = vadd.f32 %v4089_v50, %v1331_v51 }
 0x79b   : > { %v4544_v54 = vadd.f32 %v1332_v53, %v1203_v6 }
 0x79d   : > { %v1340_v55 = vsel %vm692_vm1, %v4544_v54, 0.0 }
 0x79e   : > { %1341 = vadd.xlane.f32.xlu1 %v1340_v55 }
 0x7a0   : > { %v1333_v56 = vpop.f32.mrf.mxu2 }
 0x811   : > { %v1342_v57 = vpop.xlane.xlu1 %1341 }
 0x812   : > { %v1343_v58 = vmul.f32 %v1342_v57, %v4386_v31 }
 0x814   : > { %v1344_v59 = vsub.f32 %v4544_v54, %v1343_v58 }
 0x816   : > { %v1345_v60 = vmul.f32 %v1344_v59, %v1344_v59 }
 0x818   : > { %v1346_v61 = vsel %vm692_vm1, %v1345_v60, 0.0 }
 0x819   : > { %1347 = vadd.xlane.f32.xlu0 %v1346_v61 }
 0x88c   : > { %v1348_v6 = vpop.xlane.xlu0 %1347 }
 0x88d   : > { %v1349_v7 = vmul.f32 %v1348_v6, %v4386_v31 }
 0x88f   : > { %v1350_v9 = vadd.f32 1e-12, %v1349_v7 }
 0x891   : > { %4151 = vrsqrt.f32 %v1350_v9  ;;  %vm1357_vm3 = vweird.f32 %v1350_v9 }
 0x897   : > { %v4152_v10 = vpop.eup %4151 }
 0x898   : > { %v1352_v11 = vmul.f32 %v4152_v10, %v1350_v9  ;;  %vm1358_vm2 = vweird.f32 %v4152_v10 }
 0x899   : > { %vm1359_vm4 = vmor %vm1357_vm3, %vm1358_vm2 }
 0x89a   : > { %v1353_v12 = vmul.f32 %v4152_v10, %v1352_v11 }
 0x89c   : > { %v1354_v13 = vmul.f32 0.5, %v1353_v12 }
 0x89e   : > { %v1355_v14 = vsub.f32 1.5, %v1354_v13 }
 0x8a0   : > { %v1356_v22 = vmul.f32 %v4152_v10, %v1355_v14 }
 0x8a2   : > { %v1360_v16 = vsel %vm1359_vm4, %v4152_v10, %v1356_v22 }
 0x8a3   : > { %v1361_v17 = vmul.f32 %v1360_v16, %v1344_v59 }
 0x8a5   : > { %v1365_v19 = vmul.f32 %v4090_v15, %v1361_v17 }
 0x8a7   : > { %v1369_v20 = vadd.f32 %v4091_v18, %v1365_v19 }
 0x8a9   : > { %v1370_v8 = vpack.c.bf16 %v1369_v20, %v1369_v20 }
 0x8ab   : > { %3655 = vmatmul.msk.bf16.vlgmr.msrb.gmra.mxu3 %vm775_vm6, %v1370_v8  ;;  %3664 = vmatmul.msk.bf16.vlgmr.msra.gmra.mxu0 %vm775_vm6, %v1370_v8 }
 0x8ac   : > { %3673 = vmatmul.msk.bf16.vlgmr.msrb.gmra.mxu1 %vm775_vm6, %v1370_v8  ;;  %3682 = vmatmul.msk.bf16.vlgmr.msra.gmra.mxu2 %vm775_vm6, %v1370_v8 }
 0x928   : > { %v1454_v23 = vpop.f32.mrf.mxu0 }
 0x929   : > { %v1455_v24 = vadd.f32 %v4092_v21, %v1454_v23  ;;  %v1479_v25 = vpop.f32.mrf.mxu1 }
 0x92a   : > { %v1480_v40 = vadd.f32 %v4093_v30, %v1479_v25 }
 0x92b   : > { %v1509_v26 = vpack.c.bf16 %v1455_v24, %v1455_v24 }
 0x92c   : > { %v1510_v45 = vpack.c.bf16 %v1480_v40, %v1480_v40 }
 0x92d   : > { %v1537_v29 = vunpack.c.l.b16 %v1509_v26 }
 0x92e   : > { %v1429_v32 = vpop.f32.mrf.mxu3  ;;  %v1561_v49 = vunpack.c.l.b16 %v1510_v45 }
 0x92f   : > { %v4598_v33 = vpack.c.b16 %v1537_v29, %v1537_v29  ;;  %v1430_v34 = vadd.f32 %v4094_v27, %v1429_v32  ;;  %v1504_v35 = vpop.f32.mrf.mxu2 }
 0x930   : > { %v1505_v36 = vadd.f32 %v4095_v28, %v1504_v35  ;;  %v1456_v37 = vpop.f32.mrf.mxu0  ;;  %v4607_v50 = vpack.c.b16 %v1561_v49, %v1561_v49 }
 0x931   : > { %v1508_v38 = vpack.c.bf16 %v1430_v34, %v1430_v34  ;;  %v1481_v39 = vpop.f32.mrf.mxu1  ;;  %1539 = vrot.lane.b32.xlu1 %v4598_v33, %s5148_s30 }
 0x932   : > { %v1511_v41 = vpack.c.bf16 %v1505_v36, %v1505_v36 }
 0x933   : > { %v1513_v42 = vunpack.c.l.b16 %v1508_v38 }
 0x934   : > { %v1585_v43 = vunpack.c.l.b16 %v1511_v41 }
 0x935   : > { %v4602_v44 = vpack.c.b16 %v1513_v42, %v1513_v42 }
 0x936   : > { %v1586_v46 = vpack.c.b16 %v1585_v43, %v1585_v43  ;;  %v1431_v47 = vpop.f32.mrf.mxu3 }
 0x937   : > { %v1506_v48 = vpop.f32.mrf.mxu2  ;;  %1515 = vrot.lane.b32.xlu2 %v4602_v44, %s5148_s30 }
 0x938   : > { %1587 = vrot.lane.b32.xlu0 %v1586_v46, %s5148_s30 }
 0x940   : > { %1563 = vrot.lane.b32.xlu0 %v4607_v50, %s5148_s30 }
 0x991   : > { %v1516_v51 = vpop.permute.xlu2 %1515 }
 0x992   : > { %v1521_v53 = vsel %vm876_vm7, %v1516_v51, 0 }
 0x993   : > { %1530 = vmatpush.bf16.xpose.msra.mxu3 %v1521_v53 }
 0x99a   : > { %3683 = vmatmul.msk.bf16.vlgmr.msra.gmra.mxu3 %vm876_vm7, %v1508_v38 }
 0x9a3   : > { %v1540_v55 = vpop.permute.xlu1 %1539 }
 0x9a4   : > { %v1545_v56 = vsel %vm876_vm7, %v1540_v55, 0 }
 0x9a5   : > { %1554 = vmatpush.bf16.xpose.msrb.mxu0 %v1545_v56  ;;  %v3691_v56 = vld [vmem:[%s5133_s7 + $0x10] sm:$0xf] }
 0x9aa   : > { %v1588_v57 = vpop.permute.xlu0 %1587 }
 0x9ab   : > { %v1593_v58 = vsel %vm876_vm7, %v1588_v57, 0  ;;  %v1753_v57 = vsel %vm1117_vm12, %v3691_v56, 0 }
 0x9ac   : > { %1602 = vmatpush.bf16.xpose.msrb.mxu2 %v1593_v58  ;;  %3684 = vmatmul.msk.bf16.vlgmr.msrb.gmra.mxu0 %vm876_vm7, %v1509_v26  ;;  %v3694_v58 = vld [vmem:[%s5133_s7 + $0x1c] sm:$0xf] }
 0x9b2   : > { %v1564_v59 = vpop.permute.xlu0 %1563 }
 0x9b3   : > { %v1569_v60 = vsel %vm876_vm7, %v1564_v59, 0  ;;  %3686 = vmatmul.msk.bf16.vlgmr.msrb.gmra.mxu2 %vm876_vm7, %v1511_v41  ;;  %v1810_v59 = vsel %vm1117_vm12, %v3694_v58, 0 }
 0x9b4   : > { %1578 = vmatpush.bf16.xpose.msra.mxu1 %v1569_v60  ;;  %v3693_v60 = vld [vmem:[%s5133_s7 + $0x18] sm:$0xf] }
 0x9bb   : > { %3685 = vmatmul.msk.bf16.vlgmr.msra.gmra.mxu1 %vm876_vm7, %v1510_v45 }
 0xa1d   : > { %v1532_v61 = vpop.f32.mrf.mxu3 }
 0xa1e   : > { %v1608_v62 = vsel %vm968_vm8, %v1532_v61, -inf }
 0xa1f   : > { %1609 = vmax.xlane.f32.xlu2 %v1608_v62  ;;  %v4034_v62 = vld [vmem:[%s5152_s28 + $0x38] sm:$0xff] }
 0xa25   : > { %v1534_v63 = vpop.f32.mrf.mxu3 }
 0xa26   : > { %v4033_v63 = vld [vmem:[%s5152_s28 + $0x30] sm:$0xff] }
 0xa29   : > { %v1556_v0 = vpop.f32.mrf.mxu0 }
 0xa2a   : > { %v1611_v1 = vsel %vm968_vm8, %v1556_v0, -inf }
 0xa2b   : > { %1612 = vmax.xlane.f32.xlu1 %v1611_v1 }
 0xa31   : > { %v1558_v2 = vpop.f32.mrf.mxu0 }
 0xa32   : > { %v4032_v2 = vld [vmem:[%s5152_s28 + $0x28] sm:$0xff] }
 0xa36   : > { %v1604_v3 = vpop.f32.mrf.mxu2 }
 0xa37   : > { %v1617_v4 = vsel %vm968_vm8, %v1604_v3, -inf }
 0xa38   : > { %1618 = vmax.xlane.f32.xlu0 %v1617_v4  ;;  %v1580_v5 = vpop.f32.mrf.mxu1 }
 0xa39   : > { %v1614_v6 = vsel %vm968_vm8, %v1580_v5, -inf }
 0xa3a   : > { %1615 = vmax.xlane.f32.xlu2 %v1614_v6  ;;  %v4038_v6 = vld [vmem:[%s5152_s28 + $0x58] sm:$0xff] }
 0xa3e   : > { %v1606_v7 = vpop.f32.mrf.mxu2 }
 0xa3f   : > { %v4030_v7 = vld [vmem:[%s5152_s28 + $0x18] sm:$0xff] }
 0xa40   : > { %v1582_v9 = vpop.f32.mrf.mxu1 }
 0xa41   : > { %v4037_v9 = vld [vmem:[%s5152_s28 + $0x50] sm:$0xff] }
 0xa4c   : > { %1719 = vrot.lane.b32.xlu0 %v1586_v46, %s5154_s26 }
 0xa92   : > { %v1610_v10 = vpop.xlane.xlu2 %1609 }
 0xa93   : > { %v1620_v11 = vsub.f32 %v1532_v61, %v1610_v10  ;;  %v1791_v61 = vsel %vm1117_vm12, %v3693_v60, 0 }
 0xa95   : > { %v1624_v12 = vmul.f32 1.442695, %v1620_v11  ;;  %v4029_v11 = vld [vmem:[%s5152_s28 + $0x10] sm:$0xff] }
 0xa97   : > { %4153 = vpow2.f32 %v1624_v12  ;;  %v4036_v12 = vld [vmem:[%s5152_s28 + $0x48] sm:$0xff] }
 0xa9d   : > { %v4154_v13 = vpop.eup %4153 }
 0xa9e   : > { %v1613_v14 = vpop.xlane.xlu1 %1612  ;;  %v1632_v22 = vsel %vm968_vm8, %v4154_v13, 0.0 }
 0xa9f   : > { %v1621_v15 = vsub.f32 %v1556_v0, %v1613_v14  ;;  %1633 = vadd.xlane.f32.xlu2 %v1632_v22  ;;  %v3692_v0 = vld [vmem:[%s5133_s7 + $0x14] sm:$0xf]  ;;  %v4035_v14 = vld [vmem:[%s5152_s28 + $0x40] sm:$0xff] }
 0xaa0   : > { %v1772_v1 = vsel %vm1117_vm12, %v3692_v0, 0  ;;  %v4027_v22 = vld [vmem:[%s5152_s28] sm:$0xff] }
 0xaa1   : > { %v1626_v16 = vmul.f32 1.442695, %v1621_v15 }
 0xaa3   : > { %4155 = vpow2.f32 %v1626_v16 }
 0xaa9   : > { %v4156_v17 = vpop.eup %4155 }
 0xaaa   : > { %v1635_v18 = vsel %vm968_vm8, %v4156_v17, 0.0 }
 0xaab   : > { %v1619_v19 = vpop.xlane.xlu0 %1618  ;;  %1636 = vadd.xlane.f32.xlu1 %v1635_v18  ;;  %v3742_v18 = vld [vmem:[%s4354_s0 + $0x8] sm:$0x77] }
 0xaac   : > { %v1623_v20 = vsub.f32 %v1604_v3, %v1619_v19 }
 0xaad   : > { %v1616_v8 = vpop.xlane.xlu2 %1615 }
 0xaae   : > { %v1630_v21 = vmul.f32 1.442695, %v1623_v20  ;;  %v1622_v23 = vsub.f32 %v1580_v5, %v1616_v8  ;;  %v4031_v5 = vld [vmem:[%s5152_s28 + $0x20] sm:$0xff]  ;;  %v2039_v8 = vunpack.c.h.b16 %v3742_v18 }
 0xab0   : > { %4157 = vpow2.f32 %v1630_v21  ;;  %v1628_v24 = vmul.f32 1.442695, %v1622_v23  ;;  %v2041_v23 = vpack.c.b16 %v2039_v8, %v2039_v8 }
 0xab2   : > { %4159 = vpow2.f32 %v1628_v24 }
 0xab6   : > { %v4158_v25 = vpop.eup %4157 }
 0xab7   : > { %v1641_v26 = vsel %vm968_vm8, %v4158_v25, 0.0  ;;  %1656 = vrot.lane.b32.xlu2 %v4602_v44, %s5154_s26 }
 0xab8   : > { %v4160_v27 = vpop.eup %4159  ;;  %1642 = vadd.xlane.f32.xlu0 %v1641_v26 }
 0xab9   : > { %v1638_v28 = vsel %vm968_vm8, %v4160_v27, 0.0 }
 0xaba   : > { %1639 = vadd.xlane.f32.xlu1 %v1638_v28 }
 0xabe   : > { %v1720_v29 = vpop.permute.xlu0 %1719 }
 0xabf   : > { %v1725_v30 = vand.u32 %v1720_v29, %v4462_v52 }
 0xac1   : > { %1734 = vmatpush.bf16.msra.mxu2 %v1725_v30 }
 0xac5   : > { %1819 = vmatpush.bf16.msrb.mxu2 %v1810_v59 }
 0xacc   : > { %1677 = vrot.lane.b32.xlu0 %v4598_v33, %s5154_s26 }
 0xad3   : > { %1698 = vrot.lane.b32.xlu1 %v4607_v50, %s5154_s26 }
 0xb12   : > { %v1634_v32 = vpop.xlane.xlu2 %1633 }
 0xb13   : > { %4161 = vrcp.f32 %v1634_v32 }
 0xb19   : > { %v4162_v34 = vpop.eup %4161 }
 0xb1a   : > { %v1648_v35 = vmul.f32 %v4162_v34, %v4154_v13  ;;  %v1657_v36 = vpop.permute.xlu2 %1656  ;;  %v4028_v13 = vld [vmem:[%s5152_s28 + $0x8] sm:$0xff] }
 0xb1b   : > { %v1662_v37 = vand.u32 %v1657_v36, %v4462_v52 }
 0xb1c   : > { %v1652_v38 = vpack.c.bf16 %v1648_v35, %v1648_v35 }
 0xb1d   : > { %1671 = vmatpush.bf16.msrb.mxu3 %v1662_v37 }
 0xb1e   : > { %v1637_v40 = vpop.xlane.xlu1 %1636 }
 0xb20   : > { %3687 = vmatmul.msk.bf16.vlgmr.msrb.gmra.mxu3 %vm1019_vm11, %v1652_v38 }
 0xb21   : > { %1762 = vmatpush.bf16.msra.mxu3 %v1753_v57 }
 0xb2b   : > { %v1643_v39 = vpop.xlane.xlu0 %1642 }
 0xb2c   : > { %4163 = vrcp.f32 %v1643_v39 }
 0xb2d   : > { %4165 = vrcp.f32 %v1637_v40  ;;  %v1640_v43 = vpop.xlane.xlu1 %1639 }
 0xb2e   : > { %4167 = vrcp.f32 %v1640_v43 }
 0xb32   : > { %v4164_v41 = vpop.eup %4163 }
 0xb33   : > { %v1651_v42 = vmul.f32 %v4164_v41, %v4158_v25  ;;  %v4166_v44 = vpop.eup %4165 }
 0xb34   : > { %v1649_v45 = vmul.f32 %v4166_v44, %v4156_v17  ;;  %v4168_v48 = vpop.eup %4167  ;;  %v4096_v44 = vld [vmem:[%s5134_s8 + $0x1] ss:$0 sm:$0xff] }
 0xb35   : > { %v1655_v33 = vpack.c.bf16 %v1651_v42, %v1651_v42  ;;  %v1650_v50 = vmul.f32 %v4168_v48, %v4160_v27  ;;  %v2038_v27 = vunpack.c.l.b16 %v3742_v18 }
 0xb36   : > { %v1653_v49 = vpack.c.bf16 %v1649_v45, %v1649_v45 }
 0xb37   : > { %3690 = vmatmul.msk.bf16.vlgmr.msra.gmra.mxu2 %vm1019_vm11, %v1655_v33  ;;  %v1654_v55 = vpack.c.bf16 %v1650_v50, %v1650_v50  ;;  %v2040_v28 = vpack.c.b16 %v2038_v27, %v2038_v27  ;;  %v2036_v50 = vld [vmem:[%s5128_s2] sm:$0x1f] }
 0xb38   : > { %2135 = vmatpush.bf16.msra.mxu2 %v4038_v6  ;;  %v4099_v27 = vld [vmem:[%s5136_s10 + $0x1] ss:$0 sm:$0xff] }
 0xb3c   : > { %2136 = vmatpush.bf16.msra.mxu2 %v4037_v9  ;;  %v4044_v9 = vld [vmem:[%s5131_s5 + $0x28] sm:$0xff] }
 0xb3e   : > { %v1678_v46 = vpop.permute.xlu0 %1677 }
 0xb3f   : > { %v1683_v47 = vand.u32 %v1678_v46, %v4462_v52 }
 0xb40   : > { %2137 = vmatpush.bf16.msra.mxu2 %v4036_v12  ;;  %v4040_v12 = vld [vmem:[%s5131_s5 + $0x8] sm:$0xff] }
 0xb41   : > { %1692 = vmatpush.bf16.msra.mxu0 %v1683_v47 }
 0xb44   : > { %3688 = vmatmul.msk.bf16.vlgmr.msra.gmra.mxu0 %vm1019_vm11, %v1653_v49  ;;  %2138 = vmatpush.bf16.msra.mxu2 %v4035_v14 }
 0xb45   : > { %v1699_v51 = vpop.permute.xlu1 %1698  ;;  %1781 = vmatpush.bf16.msrb.mxu0 %v1772_v1 }
 0xb46   : > { %v1704_v53 = vand.u32 %v1699_v51, %v4462_v52 }
 0xb48   : > { %1713 = vmatpush.bf16.msrb.mxu1 %v1704_v53 }
 0xb4b   : > { %3689 = vmatmul.msk.bf16.vlgmr.msrb.gmra.mxu1 %vm1019_vm11, %v1654_v55 }
 0xb4c   : > { %1800 = vmatpush.bf16.msra.mxu1 %v1791_v61 }
 0xb50   : > { %2118 = vmatpush.bf16.msrb.mxu1 %v4034_v62 }
 0xb54   : > { %2119 = vmatpush.bf16.msrb.mxu1 %v4033_v63 }
 0xb58   : > { %2120 = vmatpush.bf16.msrb.mxu1 %v4032_v2 }
 0xb5c   : > { %2121 = vmatpush.bf16.msrb.mxu1 %v4031_v5  ;;  %v4021_v5 = vld [vmem:[%s5137_s11 + $0x10] sm:$0xff] }
 0xb60   : > { %2122 = vmatpush.bf16.msrb.mxu1 %v4030_v7 }
 0xb64   : > { %2123 = vmatpush.bf16.msrb.mxu1 %v4029_v11  ;;  %v4043_v11 = vld [vmem:[%s5131_s5 + $0x20] sm:$0xff] }
 0xb68   : > { %2124 = vmatpush.bf16.msrb.mxu1 %v4028_v13  ;;  %v4039_v13 = vld [vmem:[%s5131_s5] sm:$0xff] }
 0xb6c   : > { %2125 = vmatpush.bf16.msrb.mxu1 %v4027_v22 }
 0xba3   : > { %v1673_v3 = vpop.f32.mrf.mxu3 }
 0xba4   : > { %v1740_v4 = vpack.c.bf16 %v1673_v3, %v1673_v3 }
 0xba6   : > { %3695 = vmatmul.msk.bf16.vlgmr.msra.gmra.mxu3 %vm876_vm7, %v1740_v4  ;;  %v4022_v4 = vld [vmem:[%s5137_s11 + $0x18] sm:$0xff] }
 0xba7   : > { %1905 = vmatpush.bf16.msrb.mxu3 %v4022_v4 }
 0xbab   : > { %v1675_v10 = vpop.f32.mrf.mxu3  ;;  %1906 = vmatpush.bf16.msrb.mxu3 %v4021_v5 }
 0xbaf   : > { %2230 = vmatpush.bf16.msra.mxu3 %v4040_v12 }
 0xbb3   : > { %2231 = vmatpush.bf16.msra.mxu3 %v4039_v13 }
 0xbba   : > { %v1736_v15 = vpop.f32.mrf.mxu2 }
 0xbbb   : > { %v1743_v16 = vpack.c.bf16 %v1736_v15, %v1736_v15 }
 0xbbd   : > { %3698 = vmatmul.msk.bf16.vlgmr.msrb.gmra.mxu2 %vm876_vm7, %v1743_v16 }
 0xbbe   : > { %2280 = vmatpush.bf16.msrb.mxu2 %v4044_v9 }
 0xbc1   : > { %v1694_v17 = vpop.f32.mrf.mxu0 }
 0xbc2   : > { %v1741_v19 = vpack.c.bf16 %v1694_v17, %v1694_v17  ;;  %v1738_v20 = vpop.f32.mrf.mxu2  ;;  %2281 = vmatpush.bf16.msrb.mxu2 %v4043_v11 }
 0xbc4   : > { %3696 = vmatmul.msk.bf16.vlgmr.msrb.gmra.mxu0 %vm876_vm7, %v1741_v19 }
 0xbc8   : > { %v1715_v21 = vpop.f32.mrf.mxu1 }
 0xbc9   : > { %v1742_v24 = vpack.c.bf16 %v1715_v21, %v1715_v21  ;;  %v1696_v25 = vpop.f32.mrf.mxu0  ;;  %v4097_v21 = vld [vmem:[%s5135_s9 + $0x1] ss:$0 sm:$0xff] }
 0xbcb   : > { %3697 = vmatmul.msk.bf16.vlgmr.msra.gmra.mxu1 %vm876_vm7, %v1742_v24 }
 0xbcd   : > { %3791 = vmatmul.msk.bf16.vlgmr.msra.gmra.mxu2 %vm660_vm0, %v2041_v23 }
 0xbd0   : > { %v1717_v26 = vpop.f32.mrf.mxu1 }
 0xbdb   : > { %2126 = vmatmul.bf16.vlgmr.msrb.gmra.mxu1 %v2040_v28 }
 0xc29   : > { %v1764_v29 = vpop.f32.mrf.mxu3 }
 0xc2a   : > { %v1825_v36 = vsel %vm692_vm1, %v1764_v29, 0.0 }
 0xc31   : > { %v1766_v30 = vpop.f32.mrf.mxu3 }
 0xc40   : > { %v1821_v32 = vpop.f32.mrf.mxu2 }
 0xc41   : > { %v1783_v34 = vpop.f32.mrf.mxu0  ;;  %v1830_v33 = vsel %vm692_vm1, %v1821_v32, 0.0 }
 0xc42   : > { %v1826_v35 = vsel %vm692_vm1, %v1783_v34, 0.0  ;;  %v4046_v34 = vld [vmem:[%s5131_s5 + $0x38] sm:$0xff] }
 0xc43   : > { %v1827_v37 = vadd.f32 %v1826_v35, %v1825_v36 }
 0xc48   : > { %v1802_v38 = vpop.f32.mrf.mxu1  ;;  %v1823_v39 = vpop.f32.mrf.mxu2 }
 0xc49   : > { %v1828_v40 = vsel %vm692_vm1, %v1802_v38, 0.0  ;;  %v1785_v41 = vpop.f32.mrf.mxu0  ;;  %v4098_v38 = vld [vmem:[%s5129_s3] ss:$0 sm:$0xff]  ;;  %v4045_v39 = vld [vmem:[%s5131_s5 + $0x30] sm:$0xff] }
 0xc4a   : > { %v1829_v42 = vadd.f32 %v1828_v40, %v1827_v37 }
 0xc4c   : > { %v1831_v43 = vadd.f32 %v1830_v33, %v1829_v42  ;;  %v4100_v42 = vld [vmem:[%s5130_s4] ss:$0 sm:$0xff] }
 0xc4e   : > { %v1832_v45 = vadd.f32 %v1831_v43, %v4544_v54 }
 0xc50   : > { %v1804_v46 = vpop.f32.mrf.mxu1  ;;  %v4708_v47 = vadd.f32 %v4096_v44, %v1832_v45  ;;  %v2140_v48 = vpop.f32.mrf.mxu2  ;;  %v4026_v45 = vld [vmem:[%s5139_s13 + $0x38] sm:$0xff] }
 0xc51   : > { %1967 = vmatpush.bf16.msra.mxu0 %v4026_v45  ;;  %v4025_v46 = vld [vmem:[%s5139_s13 + $0x30] sm:$0xff] }
 0xc52   : > { %v1843_v49 = vsel %vm692_vm1, %v4708_v47, 0.0 }
 0xc53   : > { %1844 = vadd.xlane.f32.xlu2 %v1843_v49  ;;  %v4023_v49 = vld [vmem:[%s5139_s13 + $0x20] sm:$0xff] }
 0xc55   : > { %1968 = vmatpush.bf16.msra.mxu0 %v4025_v46 }
 0xc58   : > { %v2127_v51 = vpop.f32.mrf.mxu1  ;;  %v2142_v53 = vpop.f32.mrf.mxu2 }
 0xc59   : > { %v2128_v55 = vadd.f32 %v2127_v51, %v2036_v50  ;;  %v4101_v50 = vld [vmem:[%s5138_s12 + $0x1] ss:$0 sm:$0xff] }
 0xc5b   : > { %v4715_v56 = vadd.f32 %v2140_v48, %v2128_v55  ;;  %v4024_v48 = vld [vmem:[%s5139_s13 + $0x28] sm:$0xff] }
 0xc5c   : > { %1969 = vmatpush.bf16.msra.mxu0 %v4024_v48 }
 0xc5d   : > { %v2146_v54 = vsel %vm692_vm1, %v4715_v56, 0.0 }
 0xc5e   : > { %2147 = vadd.xlane.f32.xlu1 %v2146_v54  ;;  %v4042_v54 = vld [vmem:[%s5131_s5 + $0x18] sm:$0xff] }
 0xc60   : > { %v2129_v57 = vpop.f32.mrf.mxu1  ;;  %1970 = vmatpush.bf16.msra.mxu0 %v4023_v49 }
 0xc64   : > { %2255 = vmatpush.bf16.msrb.mxu0 %v4042_v54 }
 0xcc6   : > { %v1845_v58 = vpop.xlane.xlu2 %1844 }
 0xcc7   : > { %v1846_v59 = vmul.f32 %v1845_v58, %v4386_v31 }
 0xcc9   : > { %v1847_v60 = vsub.f32 %v4708_v47, %v1846_v59  ;;  %v4041_v59 = vld [vmem:[%s5131_s5 + $0x10] sm:$0xff] }
 0xcca   : > { %2256 = vmatpush.bf16.msrb.mxu0 %v4041_v59 }
 0xccb   : > { %v1848_v61 = vmul.f32 %v1847_v60, %v1847_v60 }
 0xccd   : > { %v1849_v62 = vsel %vm692_vm1, %v1848_v61, 0.0  ;;  %v4102_v61 = vld [vmem:[%s5132_s6 + $0x2] ss:$0 sm:$0xff] }
 0xcce   : > { %1850 = vadd.xlane.f32.xlu0 %v1849_v62 }
 0xcd1   : > { %v2148_v63 = vpop.xlane.xlu1 %2147 }
 0xcd2   : > { %v2149_v0 = vmul.f32 %v2148_v63, %v4386_v31 }
 0xcd4   : > { %v2150_v1 = vsub.f32 %v4715_v56, %v2149_v0 }
 0xcd6   : > { %v2151_v2 = vmul.f32 %v2150_v1, %v2150_v1 }
 0xcd8   : > { %v2152_v3 = vsel %vm692_vm1, %v2151_v2, 0.0  ;;  %v4103_v2 = vld [vmem:[%s5132_s6] ss:$0 sm:$0xff] }
 0xcd9   : > { %2153 = vadd.xlane.f32.xlu2 %v2152_v3 }
 0xd41   : > { %v1851_v6 = vpop.xlane.xlu0 %1850 }
 0xd42   : > { %v1852_v7 = vmul.f32 %v1851_v6, %v4386_v31 }
 0xd44   : > { %v1853_v10 = vadd.f32 1e-12, %v1852_v7 }
 0xd46   : > { %4169 = vrsqrt.f32 %v1853_v10  ;;  %vm1860_vm9 = vweird.f32 %v1853_v10 }
 0xd4c   : > { %v4170_v14 = vpop.eup %4169  ;;  %v2154_v22 = vpop.xlane.xlu2 %2153 }
 0xd4d   : > { %v1855_v15 = vmul.f32 %v4170_v14, %v1853_v10  ;;  %v2155_v16 = vmul.f32 %v2154_v22, %v4386_v31  ;;  %vm1861_vm5 = vweird.f32 %v4170_v14 }
 0xd4e   : > { %vm1862_vm10 = vmor %vm1860_vm9, %vm1861_vm5 }
 0xd4f   : > { %v1856_v17 = vmul.f32 %v4170_v14, %v1855_v15  ;;  %v2156_v18 = vadd.f32 1e-12, %v2155_v16 }
 0xd51   : > { %v1857_v19 = vmul.f32 0.5, %v1856_v17  ;;  %4171 = vrsqrt.f32 %v2156_v18  ;;  %vm2163_vm13 = vweird.f32 %v2156_v18 }
 0xd53   : > { %v1858_v20 = vsub.f32 1.5, %v1857_v19 }
 0xd55   : > { %v1859_v8 = vmul.f32 %v4170_v14, %v1858_v20 }
 0xd57   : > { %v4172_v23 = vpop.eup %4171  ;;  %v1863_v24 = vsel %vm1862_vm10, %v4170_v14, %v1859_v8 }
 0xd58   : > { %v1864_v25 = vmul.f32 %v1863_v24, %v1847_v60  ;;  %v2158_v26 = vmul.f32 %v4172_v23, %v2156_v18  ;;  %vm2164_vm14 = vweird.f32 %v4172_v23  ;;  %v4104_v18 = vld [vmem:[%s5132_s6 + $0x3] ss:$0 sm:$0xff] }
 0xd59   : > { %vm2165_vm15 = vmor %vm2163_vm13, %vm2164_vm14 }
 0xd5a   : > { %v1868_v28 = vmul.f32 %v4097_v21, %v1864_v25  ;;  %v2159_v29 = vmul.f32 %v4172_v23, %v2158_v26 }
 0xd5c   : > { %v2160_v30 = vmul.f32 0.5, %v2159_v29  ;;  %v1872_v32 = vadd.f32 %v4099_v27, %v1868_v28 }
 0xd5e   : > { %v2161_v35 = vsub.f32 1.5, %v2160_v30  ;;  %v1873_v36 = vpack.c.bf16 %v1872_v32, %v1872_v32 }
 0xd60   : > { %v2162_v37 = vmul.f32 %v4172_v23, %v2161_v35  ;;  %3715 = vmatmul.msk.bf16.vlgmr.msrb.gmra.mxu3 %vm775_vm6, %v1873_v36  ;;  %v4106_v35 = vld [vmem:[%s5132_s6 + $0x1] ss:$0 sm:$0xff] }
 0xd61   : > { %2305 = vmatpush.bf16.msrb.mxu3 %v4046_v34 }
 0xd62   : > { %v2166_v40 = vsel %vm2165_vm15, %v4172_v23, %v2162_v37 }
 0xd63   : > { %v2167_v41 = vmul.f32 %v2166_v40, %v2150_v1 }
 0xd65   : > { %v2171_v33 = vmul.f32 %v4098_v38, %v2167_v41  ;;  %2306 = vmatpush.bf16.msrb.mxu3 %v4045_v39 }
 0xd67   : > { %v2175_v43 = vadd.f32 %v4100_v42, %v2171_v33 }
 0xd69   : > { %v2176_v44 = vpack.c.bf16 %v2175_v43, %v2175_v43 }
 0xd6b   : > { %3818 = vmatmul.msk.bf16.vlgmr.msrb.gmra.mxu2 %vm775_vm6, %v2176_v44 }
 0xd70   : > { %3800 = vmatmul.msk.bf16.vlgmr.msra.gmra.mxu3 %vm775_vm6, %v2176_v44 }
 0xd80   : > { %3827 = vmatmul.msk.bf16.vlgmr.msrb.gmra.mxu3 %vm775_vm6, %v2176_v44 }
 0xde3   : > { %v1908_v51 = vpop.f32.mrf.mxu3 }
 0xde4   : > { %v1909_v53 = vadd.f32 %v4101_v50, %v1908_v51 }
 0xde6   : > { %v1912_v55 = vmul.f32 %v1909_v53, %v1909_v53 }
 0xde8   : > { %v1913_v57 = vmul.f32 %v1912_v55, %v1909_v53 }
 0xdea   : > { %v1914_v58 = vmul.f32 0.044715, %v1913_v57 }
 0xdeb   : > { %v1910_v60 = vpop.f32.mrf.mxu3 }
 0xdec   : > { %v1915_v62 = vadd.f32 %v1914_v58, %v1909_v53 }
 0xdee   : > { %v1916_v63 = vmul.f32 0.7978846, %v1915_v62  ;;  %v2283_v0 = vpop.f32.mrf.mxu2 }
 0xdef   : > { %v2284_v1 = vadd.f32 %v4102_v61, %v2283_v0 }
 0xdf0   : > { %4173 = vtanh.f32 %v1916_v63 }
 0xdf1   : > { %v2314_v3 = vpack.c.bf16 %v2284_v1, %v2284_v1 }
 0xdf3   : > { %v2365_v4 = vunpack.c.l.b16 %v2314_v3  ;;  %v2233_v5 = vpop.f32.mrf.mxu3 }
 0xdf4   : > { %v2234_v6 = vadd.f32 %v4103_v2, %v2233_v5 }
 0xdf5   : > { %v4794_v7 = vpack.c.b16 %v2365_v4, %v2365_v4 }
 0xdf6   : > { %v4174_v9 = vpop.eup %4173  ;;  %v2312_v10 = vpack.c.bf16 %v2234_v6, %v2234_v6  ;;  %v2285_v11 = vpop.f32.mrf.mxu2 }
 0xdf7   : > { %v1918_v12 = vadd.f32 1.0, %v4174_v9  ;;  %2367 = vrot.lane.b32.xlu0 %v4794_v7, %s5155_s19 }
 0xdf8   : > { %v2317_v13 = vunpack.c.l.b16 %v2312_v10 }
 0xdf9   : > { %v1919_v14 = vmul.f32 0.5, %v1918_v12 }
 0xdfa   : > { %v4798_v22 = vpack.c.b16 %v2317_v13, %v2317_v13 }
 0xdfb   : > { %v1920_v15 = vmul.f32 %v1919_v14, %v1909_v53  ;;  %v2235_v16 = vpop.f32.mrf.mxu3 }
 0xdfc   : > { %2319 = vrot.lane.b32.xlu1 %v4798_v22, %s5155_s19 }
 0xdfd   : > { %v1921_v17 = vpack.c.bf16 %v1920_v15, %v1920_v15 }
 0xdff   : > { %3741 = vmatmul.msk.bf16.vlgmr.msra.gmra.mxu0 %vm660_vm0, %v1921_v17 }
 0xe03   : > { %v2308_v19 = vpop.f32.mrf.mxu3 }
 0xe04   : > { %v2309_v20 = vadd.f32 %v4104_v18, %v2308_v19 }
 0xe06   : > { %v2315_v8 = vpack.c.bf16 %v2309_v20, %v2309_v20 }
 0xe08   : > { %v2389_v21 = vunpack.c.l.b16 %v2315_v8 }
 0xe0a   : > { %v4806_v23 = vpack.c.b16 %v2389_v21, %v2389_v21 }
 0xe0b   : > { %v2310_v24 = vpop.f32.mrf.mxu3 }
 0xe0c   : > { %2391 = vrot.lane.b32.xlu2 %v4806_v23, %s5155_s19 }
 0xe0f   : > { %3809 = vmatmul.msk.bf16.vlgmr.msrb.gmra.mxu0 %vm775_vm6, %v2176_v44 }
 0xe66   : > { %v2392_v25 = vpop.permute.xlu2 %2391 }
 0xe67   : > { %v2397_v26 = vsel %vm876_vm7, %v2392_v25, 0 }
 0xe68   : > { %2406 = vmatpush.bf16.xpose.msra.mxu3 %v2397_v26 }
 0xe69   : > { %v2368_v27 = vpop.permute.xlu0 %2367 }
 0xe6a   : > { %v2373_v28 = vsel %vm876_vm7, %v2368_v27, 0 }
 0xe6b   : > { %2382 = vmatpush.bf16.xpose.msra.mxu2 %v2373_v28 }
 0xe6e   : > { %v2320_v29 = vpop.permute.xlu1 %2319 }
 0xe6f   : > { %v2325_v30 = vsel %vm876_vm7, %v2320_v29, 0  ;;  %3831 = vmatmul.msk.bf16.vlgmr.msra.gmra.mxu3 %vm876_vm7, %v2315_v8 }
 0xe70   : > { %2334 = vmatpush.bf16.xpose.msra.mxu0 %v2325_v30 }
 0xe72   : > { %3830 = vmatmul.msk.bf16.vlgmr.msra.gmra.mxu2 %vm876_vm7, %v2314_v3 }
 0xe77   : > { %3828 = vmatmul.msk.bf16.vlgmr.msra.gmra.mxu0 %vm876_vm7, %v2312_v10 }
 0xe7c   : > { %v4817_v32 = vpop.f32.mrf.mxu0 }
 0xe84   : > { %v1974_v34 = vpop.f32.mrf.mxu0 }
 0xe8c   : > { %v2258_v36 = vpop.f32.mrf.mxu0 }
 0xe8d   : > { %v2259_v37 = vadd.f32 %v4106_v35, %v2258_v36  ;;  %v2550_v35 = vld [vmem:[%s5133_s7 + $0x8] sm:$0xf] }
 0xe8e   : > { %v2594_v36 = vsel %vm1117_vm12, %v2550_v35, 0 }
 0xe8f   : > { %v2313_v38 = vpack.c.bf16 %v2259_v37, %v2259_v37  ;;  %v2548_v37 = vld [vmem:[%s5133_s7] sm:$0xf] }
 0xe91   : > { %v2341_v39 = vunpack.c.l.b16 %v2313_v38 }
 0xe93   : > { %v4822_v40 = vpack.c.b16 %v2341_v39, %v2341_v39  ;;  %v2551_v39 = vld [vmem:[%s5133_s7 + $0xc] sm:$0xf] }
 0xe94   : > { %v2260_v41 = vpop.f32.mrf.mxu0 }
 0xe95   : > { %2343 = vrot.lane.b32.xlu0 %v4822_v40, %s5155_s19 }
 0xef2   : > { %v2408_v42 = vpop.f32.mrf.mxu3 }
 0xef3   : > { %v2421_v33 = vsel %vm968_vm8, %v2408_v42, -inf }
 0xef4   : > { %v2336_v43 = vpop.f32.mrf.mxu0  ;;  %2422 = vmax.xlane.f32.xlu0 %v2421_v33 }
 0xef5   : > { %v2384_v44 = vpop.f32.mrf.mxu2  ;;  %v2412_v45 = vsel %vm968_vm8, %v2336_v43, -inf }
 0xef6   : > { %2413 = vmax.xlane.f32.xlu1 %v2412_v45  ;;  %v2418_v46 = vsel %vm968_vm8, %v2384_v44, -inf }
 0xef7   : > { %2419 = vmax.xlane.f32.xlu2 %v2418_v46 }
 0xefa   : > { %v2410_v48 = vpop.f32.mrf.mxu3 }
 0xefc   : > { %v2338_v49 = vpop.f32.mrf.mxu0 }
 0xefd   : > { %v2386_v50 = vpop.f32.mrf.mxu2 }
 0xf07   : > { %v2344_v51 = vpop.permute.xlu0 %2343 }
 0xf08   : > { %v2349_v53 = vsel %vm876_vm7, %v2344_v51, 0 }
 0xf09   : > { %2358 = vmatpush.bf16.xpose.msra.mxu1 %v2349_v53 }
 0xf10   : > { %3829 = vmatmul.msk.bf16.vlgmr.msra.gmra.mxu1 %vm876_vm7, %v2313_v38  ;;  %v2556_v38 = vsel %vm1117_vm12, %v2548_v37, 0 }
 0xf67   : > { %v2423_v1 = vpop.xlane.xlu0 %2422 }
 0xf68   : > { %v2427_v2 = vsub.f32 %v2408_v42, %v2423_v1 }
 0xf69   : > { %v2414_v55 = vpop.xlane.xlu1 %2413 }
 0xf6a   : > { %v2424_v54 = vsub.f32 %v2336_v43, %v2414_v55  ;;  %v2420_v57 = vpop.xlane.xlu2 %2419  ;;  %v2434_v3 = vmul.f32 1.442695, %v2427_v2 }
 0xf6b   : > { %v2426_v58 = vsub.f32 %v2384_v44, %v2420_v57 }
 0xf6c   : > { %v2428_v59 = vmul.f32 1.442695, %v2424_v54 }
 0xf6d   : > { %v2432_v60 = vmul.f32 1.442695, %v2426_v58  ;;  %v2549_v58 = vld [vmem:[%s5133_s7 + $0x4] sm:$0xf] }
 0xf6e   : > { %4175 = vpow2.f32 %v2428_v59  ;;  %v2575_v59 = vsel %vm1117_vm12, %v2549_v58, 0 }
 0xf6f   : > { %4177 = vpow2.f32 %v2432_v60 }
 0xf70   : > { %4179 = vpow2.f32 %v2434_v3 }
 0xf74   : > { %v4176_v61 = vpop.eup %4175 }
 0xf75   : > { %v4178_v62 = vpop.eup %4177  ;;  %v2436_v63 = vsel %vm968_vm8, %v4176_v61, 0.0 }
 0xf76   : > { %2437 = vadd.xlane.f32.xlu1 %v2436_v63  ;;  %v2442_v0 = vsel %vm968_vm8, %v4178_v62, 0.0  ;;  %v4180_v6 = vpop.eup %4179 }
 0xf77   : > { %2443 = vadd.xlane.f32.xlu0 %v2442_v0  ;;  %v2445_v10 = vsel %vm968_vm8, %v4180_v6, 0.0 }
 0xf8b   : > { %2502 = vrot.lane.b32.xlu0 %v4794_v7, %s5154_s26 }
 0xf8d   : > { %v2360_v4 = vpop.f32.mrf.mxu1 }
 0xf8e   : > { %v2415_v5 = vsel %vm968_vm8, %v2360_v4, -inf }
 0xf8f   : > { %2416 = vmax.xlane.f32.xlu2 %v2415_v5 }
 0xf93   : > { %2460 = vrot.lane.b32.xlu0 %v4798_v22, %s5154_s26 }
 0xf95   : > { %v2362_v9 = vpop.f32.mrf.mxu1 }
 0xf97   : > { %2446 = vadd.xlane.f32.xlu2 %v2445_v10 }
 0xfaf   : > { %2523 = vrot.lane.b32.xlu2 %v4806_v23, %s5154_s26 }
 0xfe9   : > { %v2438_v12 = vpop.xlane.xlu1 %2437 }
 0xfea   : > { %v2444_v11 = vpop.xlane.xlu0 %2443 }
 0xfeb   : > { %4181 = vrcp.f32 %v2444_v11 }
 0xfec   : > { %4183 = vrcp.f32 %v2438_v12 }
 0xff1   : > { %v4182_v7 = vpop.eup %4181 }
 0xff2   : > { %v2454_v13 = vmul.f32 %v4182_v7, %v4178_v62  ;;  %v4184_v17 = vpop.eup %4183 }
 0xff3   : > { %v2452_v19 = vmul.f32 %v4184_v17, %v4176_v61 }
 0xff4   : > { %v2458_v16 = vpack.c.bf16 %v2454_v13, %v2454_v13 }
 0xff5   : > { %v2456_v23 = vpack.c.bf16 %v2452_v19, %v2452_v19 }
 0xffd   : > { %v2503_v14 = vpop.permute.xlu0 %2502 }
 0xffe   : > { %v2508_v15 = vand.u32 %v2503_v14, %v4462_v52  ;;  %v4107_v14 = vld [vmem:[%s5134_s8] ss:$0 sm:$0xff] }
0x1000   : > { %2517 = vmatpush.bf16.msrb.mxu2 %v2508_v15 }
0x1002   : > { %v2417_v22 = vpop.xlane.xlu2 %2416 }
0x1003   : > { %v2425_v18 = vsub.f32 %v2360_v4, %v2417_v22  ;;  %3834 = vmatmul.msk.bf16.vlgmr.msrb.gmra.mxu2 %vm1019_vm11, %v2458_v16 }
0x1004   : > { %2603 = vmatpush.bf16.msra.mxu2 %v2594_v36  ;;  %v4108_v36 = vld [vmem:[%s5135_s9] ss:$0 sm:$0xff] }
0x1005   : > { %v2430_v20 = vmul.f32 1.442695, %v2425_v18  ;;  %v2461_v8 = vpop.permute.xlu0 %2460 }
0x1006   : > { %v2466_v21 = vand.u32 %v2461_v8, %v4462_v52 }
0x1007   : > { %4185 = vpow2.f32 %v2430_v20 }
0x1008   : > { %2475 = vmatpush.bf16.msrb.mxu0 %v2466_v21 }
0x100a   : > { %v2447_v24 = vpop.xlane.xlu2 %2446 }
0x100b   : > { %4187 = vrcp.f32 %v2447_v24  ;;  %3832 = vmatmul.msk.bf16.vlgmr.msrb.gmra.mxu0 %vm1019_vm11, %v2456_v23  ;;  %v4048_v23 = vld [vmem:[%s5137_s11 + $0x8] sm:$0xff] }
0x100c   : > { %2565 = vmatpush.bf16.msra.mxu0 %v2556_v38  ;;  %v4109_v38 = vld [vmem:[%s5136_s10] ss:$0 sm:$0xff] }
0x100d   : > { %v4186_v25 = vpop.eup %4185 }
0x100e   : > { %v2439_v26 = vsel %vm968_vm8, %v4186_v25, 0.0 }
0x100f   : > { %2440 = vadd.xlane.f32.xlu1 %v2439_v26 }
0x1010   : > { %2703 = vmatpush.bf16.msrb.mxu0 %v4048_v23 }
0x1011   : > { %v4188_v27 = vpop.eup %4187 }
0x1012   : > { %v2455_v28 = vmul.f32 %v4188_v27, %v4180_v6  ;;  %v2524_v29 = vpop.permute.xlu2 %2523 }
0x1013   : > { %v2529_v30 = vand.u32 %v2524_v29, %v4462_v52 }
0x1014   : > { %v2459_v34 = vpack.c.bf16 %v2455_v28, %v2455_v28 }
0x1015   : > { %2538 = vmatpush.bf16.msrb.mxu3 %v2529_v30 }
0x1018   : > { %3835 = vmatmul.msk.bf16.vlgmr.msrb.gmra.mxu3 %vm1019_vm11, %v2459_v34 }
0x1028   : > { %2481 = vrot.lane.b32.xlu1 %v4822_v40, %s5154_s26  ;;  %v2613_v40 = vsel %vm1117_vm12, %v2551_v39, 0 }
0x1029   : > { %2622 = vmatpush.bf16.msra.mxu3 %v2613_v40 }
0x1082   : > { %v2441_v44 = vpop.xlane.xlu1 %2440 }
0x1083   : > { %4189 = vrcp.f32 %v2441_v44  ;;  %v4050_v44 = vld [vmem:[%s5139_s13 + $0x8] sm:$0xff] }
0x1086   : > { %v2519_v41 = vpop.f32.mrf.mxu2 }
0x1087   : > { %v2546_v42 = vpack.c.bf16 %v2519_v41, %v2519_v41 }
0x1088   : > { %v2477_v33 = vpop.f32.mrf.mxu0 }
0x1089   : > { %v2544_v43 = vpack.c.bf16 %v2477_v33, %v2477_v33  ;;  %3838 = vmatmul.msk.bf16.vlgmr.msra.gmra.mxu2 %vm876_vm7, %v2546_v42  ;;  %v4190_v48 = vpop.eup %4189  ;;  %v4052_v33 = vld [vmem:[%s5139_s13 + $0x18] sm:$0xff] }
0x108a   : > { %v2453_v49 = vmul.f32 %v4190_v48, %v4186_v25 }
0x108b   : > { %3836 = vmatmul.msk.bf16.vlgmr.msra.gmra.mxu0 %vm876_vm7, %v2544_v43  ;;  %v4051_v43 = vld [vmem:[%s5139_s13 + $0x10] sm:$0xff] }
0x108c   : > { %v2457_v54 = vpack.c.bf16 %v2453_v49, %v2453_v49 }
0x108e   : > { %v2521_v45 = vpop.f32.mrf.mxu2 }
0x108f   : > { %v4049_v45 = vld [vmem:[%s5139_s13] sm:$0xff] }
0x1090   : > { %v2479_v46 = vpop.f32.mrf.mxu0 }
0x1091   : > { %v4110_v46 = vld [vmem:[%s5138_s12] ss:$0 sm:$0xff] }
0x109a   : > { %v2482_v50 = vpop.permute.xlu1 %2481 }
0x109b   : > { %v2487_v51 = vand.u32 %v2482_v50, %v4462_v52  ;;  %v2540_v53 = vpop.f32.mrf.mxu3 }
0x109c   : > { %v2547_v55 = vpack.c.bf16 %v2540_v53, %v2540_v53 }
0x109d   : > { %2496 = vmatpush.bf16.msrb.mxu1 %v2487_v51 }
0x109e   : > { %3839 = vmatmul.msk.bf16.vlgmr.msra.gmra.mxu3 %vm876_vm7, %v2547_v55 }
0x10a0   : > { %3833 = vmatmul.msk.bf16.vlgmr.msrb.gmra.mxu1 %vm1019_vm11, %v2457_v54 }
0x10a1   : > { %2584 = vmatpush.bf16.msra.mxu1 %v2575_v59 }
0x10a3   : > { %v2542_v57 = vpop.f32.mrf.mxu3 }
0x10a5   : > { %2763 = vmatpush.bf16.msrb.mxu1 %v4052_v33  ;;  %v4115_v33 = vld [vmem:[%s5132_s6 + $0x7] ss:$0 sm:$0xff] }
0x10a9   : > { %2764 = vmatpush.bf16.msrb.mxu1 %v4051_v43 }
0x10ad   : > { %2765 = vmatpush.bf16.msrb.mxu1 %v4050_v44 }
0x10b1   : > { %2766 = vmatpush.bf16.msrb.mxu1 %v4049_v45 }
0x1108   : > { %v2567_v60 = vpop.f32.mrf.mxu0 }
0x1109   : > { %v2628_v6 = vsel %vm692_vm1, %v2567_v60, 0.0 }
0x110c   : > { %v2605_v61 = vpop.f32.mrf.mxu2 }
0x110d   : > { %v2631_v11 = vsel %vm692_vm1, %v2605_v61, 0.0 }
0x1110   : > { %v2569_v62 = vpop.f32.mrf.mxu0 }
0x1114   : > { %v2607_v63 = vpop.f32.mrf.mxu2 }
0x1115   : > { %v4111_v63 = vld [vmem:[%s5140_s14] ss:$0 sm:$0xff] }
0x111d   : > { %v2498_v0 = vpop.f32.mrf.mxu1 }
0x111e   : > { %v2545_v1 = vpack.c.bf16 %v2498_v0, %v2498_v0 }
0x1120   : > { %3837 = vmatmul.msk.bf16.vlgmr.msra.gmra.mxu1 %vm876_vm7, %v2545_v1 }
0x1121   : > { %v2624_v2 = vpop.f32.mrf.mxu3 }
0x1122   : > { %v2633_v7 = vsel %vm692_vm1, %v2624_v2, 0.0 }
0x1125   : > { %v2500_v3 = vpop.f32.mrf.mxu1 }
0x1129   : > { %v2626_v4 = vpop.f32.mrf.mxu3 }
0x119d   : > { %v2586_v5 = vpop.f32.mrf.mxu1 }
0x119e   : > { %v2629_v9 = vsel %vm692_vm1, %v2586_v5, 0.0 }
0x119f   : > { %v2630_v10 = vadd.f32 %v2629_v9, %v2628_v6 }
0x11a1   : > { %v2632_v12 = vadd.f32 %v2631_v11, %v2630_v10 }
0x11a3   : > { %v2634_v13 = vadd.f32 %v2633_v7, %v2632_v12  ;;  %v4054_v12 = vld [vmem:[%s5131_s5 + $0x48] sm:$0xff]  ;;  %v4056_v7 = vld [vmem:[%s5131_s5 + $0x58] sm:$0xff] }
0x11a4   : > { %2859 = vmatpush.bf16.msrb.mxu2 %v4054_v12  ;;  %2884 = vmatpush.bf16.msrb.mxu3 %v4056_v7 }
0x11a5   : > { %v2588_v15 = vpop.f32.mrf.mxu1  ;;  %v2635_v16 = vadd.f32 %v2634_v13, %v4715_v56  ;;  %v4047_v56 = vld [vmem:[%s5137_s11] sm:$0xff]  ;;  %v4058_v13 = vld [vmem:[%s5131_s5 + $0x68] sm:$0xff] }
0x11a6   : > { %2704 = vmatpush.bf16.msrb.mxu0 %v4047_v56  ;;  %v4053_v15 = vld [vmem:[%s5131_s5 + $0x40] sm:$0xff] }
0x11a7   : > { %v2640_v17 = vadd.f32 %v4107_v14, %v2635_v16  ;;  %v4060_v14 = vld [vmem:[%s5131_s5 + $0x78] sm:$0xff]  ;;  %v4055_v16 = vld [vmem:[%s5131_s5 + $0x50] sm:$0xff] }
0x11a8   : > { %2934 = vmatpush.bf16.msra.mxu1 %v4060_v14  ;;  %2860 = vmatpush.bf16.msrb.mxu2 %v4053_v15 }
0x11a9   : > { %v2643_v22 = vsel %vm692_vm1, %v2640_v17, 0.0  ;;  %2885 = vmatpush.bf16.msrb.mxu3 %v4055_v16 }
0x11aa   : > { %2644 = vadd.xlane.f32.xlu0 %v2643_v22  ;;  %2909 = vmatpush.bf16.msra.mxu0 %v4058_v13  ;;  %v4059_v22 = vld [vmem:[%s5131_s5 + $0x70] sm:$0xff] }
0x11ac   : > { %2935 = vmatpush.bf16.msra.mxu1 %v4059_v22 }
0x121d   : > { %v2645_v18 = vpop.xlane.xlu0 %2644 }
0x121e   : > { %v2646_v19 = vmul.f32 %v2645_v18, %v4386_v31 }
0x1220   : > { %v2647_v20 = vsub.f32 %v2640_v17, %v2646_v19 }
0x1222   : > { %v2648_v8 = vmul.f32 %v2647_v20, %v2647_v20 }
0x1224   : > { %v2649_v21 = vsel %vm692_vm1, %v2648_v8, 0.0 }
0x1225   : > { %2650 = vadd.xlane.f32.xlu2 %v2649_v21 }
0x1298   : > { %v2651_v24 = vpop.xlane.xlu2 %2650 }
0x1299   : > { %v2652_v25 = vmul.f32 %v2651_v24, %v4386_v31 }
0x129b   : > { %v2653_v26 = vadd.f32 1e-12, %v2652_v25 }
0x129d   : > { %4191 = vrsqrt.f32 %v2653_v26  ;;  %vm2660_vm3 = vweird.f32 %v2653_v26 }
0x12a3   : > { %v4192_v27 = vpop.eup %4191 }
0x12a4   : > { %v2655_v28 = vmul.f32 %v4192_v27, %v2653_v26  ;;  %vm2661_vm2 = vweird.f32 %v4192_v27  ;;  %v4112_v26 = vld [vmem:[%s5129_s3 + $0x1] ss:$0 sm:$0xff] }
0x12a5   : > { %vm2662_vm4 = vmor %vm2660_vm3, %vm2661_vm2 }
0x12a6   : > { %v2656_v29 = vmul.f32 %v4192_v27, %v2655_v28  ;;  %v4113_v28 = vld [vmem:[%s5130_s4 + $0x1] ss:$0 sm:$0xff] }
0x12a8   : > { %v2657_v30 = vmul.f32 0.5, %v2656_v29 }
0x12aa   : > { %v2658_v34 = vsub.f32 1.5, %v2657_v30 }
0x12ac   : > { %v2659_v35 = vmul.f32 %v4192_v27, %v2658_v34 }
0x12ae   : > { %v2663_v37 = vsel %vm2662_vm4, %v4192_v27, %v2659_v35 }
0x12af   : > { %v2664_v39 = vmul.f32 %v2663_v37, %v2647_v20 }
0x12b1   : > { %v2668_v40 = vmul.f32 %v4108_v36, %v2664_v39  ;;  %v4114_v36 = vld [vmem:[%s5132_s6 + $0x6] ss:$0 sm:$0xff] }
0x12b3   : > { %v2672_v41 = vadd.f32 %v4109_v38, %v2668_v40  ;;  %v4116_v40 = vld [vmem:[%s5132_s6 + $0x4] ss:$0 sm:$0xff] }
0x12b5   : > { %v2673_v42 = vpack.c.bf16 %v2672_v41, %v2672_v41  ;;  %v4117_v41 = vld [vmem:[%s5132_s6 + $0x5] ss:$0 sm:$0xff] }
0x12b7   : > { %3848 = vmatmul.msk.bf16.vlgmr.msrb.gmra.mxu0 %vm775_vm6, %v2673_v42 }
0x1334   : > { %v2706_v48 = vpop.f32.mrf.mxu0 }
0x1335   : > { %v2707_v49 = vadd.f32 %v4110_v46, %v2706_v48 }
0x1337   : > { %v2710_v50 = vmul.f32 %v2707_v49, %v2707_v49 }
0x1339   : > { %v2711_v51 = vmul.f32 %v2710_v50, %v2707_v49 }
0x133b   : > { %v2712_v53 = vmul.f32 0.044715, %v2711_v51 }
0x133c   : > { %v2708_v55 = vpop.f32.mrf.mxu0 }
0x133d   : > { %v2713_v54 = vadd.f32 %v2712_v53, %v2707_v49 }
0x133f   : > { %v2714_v57 = vmul.f32 0.7978846, %v2713_v54 }
0x1341   : > { %4193 = vtanh.f32 %v2714_v57 }
0x1347   : > { %v4194_v58 = vpop.eup %4193 }
0x1348   : > { %v2716_v59 = vadd.f32 1.0, %v4194_v58 }
0x134a   : > { %v2717_v60 = vmul.f32 0.5, %v2716_v59 }
0x134c   : > { %v2718_v61 = vmul.f32 %v2717_v60, %v2707_v49 }
0x134e   : > { %v2719_v62 = vpack.c.bf16 %v2718_v61, %v2718_v61 }
0x1350   : > { %3865 = vmatmul.msk.bf16.vlgmr.msrb.gmra.mxu1 %vm660_vm0, %v2719_v62 }
0x13cd   : > { %v2768_v0 = vpop.f32.mrf.mxu1 }
0x13ce   : > { %v2769_v1 = vadd.f32 %v4111_v63, %v2768_v0 }
0x13d0   : > { %v4916_v2 = vadd.f32 %v2769_v1, %v2640_v17  ;;  %v4057_v17 = vld [vmem:[%s5131_s5 + $0x60] sm:$0xff] }
0x13d1   : > { %2910 = vmatpush.bf16.msra.mxu0 %v4057_v17 }
0x13d2   : > { %v2775_v3 = vsel %vm692_vm1, %v4916_v2, 0.0 }
0x13d3   : > { %2776 = vadd.xlane.f32.xlu1 %v2775_v3 }
0x13d5   : > { %v2770_v4 = vpop.f32.mrf.mxu1 }
0x1446   : > { %v2777_v5 = vpop.xlane.xlu1 %2776 }
0x1447   : > { %v2778_v6 = vmul.f32 %v2777_v5, %v4386_v31 }
0x1449   : > { %v2779_v9 = vsub.f32 %v4916_v2, %v2778_v6 }
0x144b   : > { %v2780_v10 = vmul.f32 %v2779_v9, %v2779_v9 }
0x144d   : > { %v2781_v11 = vsel %vm692_vm1, %v2780_v10, 0.0 }
0x144e   : > { %2782 = vadd.xlane.f32.xlu0 %v2781_v11 }
0x14c1   : > { %v2783_v18 = vpop.xlane.xlu0 %2782 }
0x14c2   : > { %v2784_v19 = vmul.f32 %v2783_v18, %v4386_v31 }
0x14c4   : > { %v2785_v20 = vadd.f32 1e-12, %v2784_v19 }
0x14c6   : > { %4195 = vrsqrt.f32 %v2785_v20  ;;  %vm2792_vm9 = vweird.f32 %v2785_v20 }
0x14cc   : > { %v4196_v8 = vpop.eup %4195 }
0x14cd   : > { %v2787_v21 = vmul.f32 %v4196_v8, %v2785_v20  ;;  %vm2793_vm5 = vweird.f32 %v4196_v8 }
0x14ce   : > { %vm2794_vm10 = vmor %vm2792_vm9, %vm2793_vm5 }
0x14cf   : > { %v2788_v23 = vmul.f32 %v4196_v8, %v2787_v21 }
0x14d1   : > { %v2789_v56 = vmul.f32 0.5, %v2788_v23 }
0x14d3   : > { %v2790_v24 = vsub.f32 1.5, %v2789_v56 }
0x14d5   : > { %v2791_v25 = vmul.f32 %v4196_v8, %v2790_v24 }
0x14d7   : > { %v2795_v27 = vsel %vm2794_vm10, %v4196_v8, %v2791_v25 }
0x14d8   : > { %v2796_v29 = vmul.f32 %v2795_v27, %v2779_v9 }
0x14da   : > { %v2800_v30 = vmul.f32 %v4112_v26, %v2796_v29 }
0x14dc   : > { %v2804_v34 = vadd.f32 %v4113_v28, %v2800_v30 }
0x14de   : > { %v2805_v35 = vpack.c.bf16 %v2804_v34, %v2804_v34 }
0x14e0   : > { %3896 = vmatmul.msk.bf16.vlgmr.msrb.gmra.mxu2 %vm775_vm6, %v2805_v35  ;;  %3905 = vmatmul.msk.bf16.vlgmr.msrb.gmra.mxu3 %vm775_vm6, %v2805_v35 }
0x14e1   : > { %3914 = vmatmul.msk.bf16.vlgmr.msra.gmra.mxu0 %vm775_vm6, %v2805_v35  ;;  %3923 = vmatmul.msk.bf16.vlgmr.msra.gmra.mxu1 %vm775_vm6, %v2805_v35 }
0x155e   : > { %v2912_v37 = vpop.f32.mrf.mxu0  ;;  %v2937_v38 = vpop.f32.mrf.mxu1 }
0x155f   : > { %v2913_v39 = vadd.f32 %v4114_v36, %v2912_v37  ;;  %v2938_v50 = vadd.f32 %v4115_v33, %v2937_v38 }
0x1561   : > { %v2943_v42 = vpack.c.bf16 %v2913_v39, %v2913_v39  ;;  %v2944_v59 = vpack.c.bf16 %v2938_v50, %v2938_v50 }
0x1563   : > { %v2994_v43 = vunpack.c.l.b16 %v2943_v42  ;;  %v2862_v44 = vpop.f32.mrf.mxu2  ;;  %v2887_v45 = vpop.f32.mrf.mxu3  ;;  %v3018_v0 = vunpack.c.l.b16 %v2944_v59 }
0x1564   : > { %v2863_v46 = vadd.f32 %v4116_v40, %v2862_v44  ;;  %v2888_v48 = vadd.f32 %v4117_v41, %v2887_v45 }
0x1565   : > { %v4970_v49 = vpack.c.b16 %v2994_v43, %v2994_v43  ;;  %v4979_v1 = vpack.c.b16 %v3018_v0, %v3018_v0 }
0x1566   : > { %v2941_v51 = vpack.c.bf16 %v2863_v46, %v2863_v46  ;;  %v2942_v53 = vpack.c.bf16 %v2888_v48, %v2888_v48  ;;  %v2914_v55 = vpop.f32.mrf.mxu0  ;;  %v2939_v54 = vpop.f32.mrf.mxu1  ;;  %v4105_v46 = vld [vmem:[%s5140_s14 + $0x1] ss:$0 sm:$0xff] }
0x1567   : > { %2996 = vrot.lane.b32.xlu1 %v4970_v49, %s5155_s19  ;;  %v1973_v48 = vadd.f32 %v4105_v46, %v4817_v32 }
0x1568   : > { %v2946_v57 = vunpack.c.l.b16 %v2941_v51  ;;  %v2970_v58 = vunpack.c.l.b16 %v2942_v53 }
0x1569   : > { %v5012_v50 = vadd.f32 %v1973_v48, %v4708_v47 }
0x156a   : > { %v2947_v60 = vpack.c.b16 %v2946_v57, %v2946_v57  ;;  %v4974_v61 = vpack.c.b16 %v2970_v58, %v2970_v58 }
0x156b   : > { %v2864_v62 = vpop.f32.mrf.mxu2  ;;  %v2889_v63 = vpop.f32.mrf.mxu3 }
0x156c   : > { %2972 = vrot.lane.b32.xlu0 %v4974_v61, %s5155_s19  ;;  %2948 = vrot.lane.b32.xlu2 %v2947_v60, %s5155_s19 }
0x1574   : > { %3020 = vrot.lane.b32.xlu2 %v4979_v1, %s5155_s19  ;;  %s5156_s19 = sshll.u32 %s5158_s29, 3 }
0x1575   : > { %s5087_s25 = scalar_lea.vmem %s5143_s17, %s5156_s19 }
0x15c6   : > { %v2949_v3 = vpop.permute.xlu2 %2948 }
0x15c7   : > { %v2954_v4 = vsel %vm876_vm7, %v2949_v3, 0 }
0x15c8   : > { %2963 = vmatpush.bf16.xpose.msra.mxu2 %v2954_v4 }
0x15ce   : > { %v3021_v5 = vpop.permute.xlu2 %3020 }
0x15cf   : > { %v3026_v6 = vsel %vm876_vm7, %v3021_v5, 0  ;;  %3924 = vmatmul.msk.bf16.vlgmr.msra.gmra.mxu2 %vm876_vm7, %v2941_v51  ;;  %v1979_v51 = vsel %vm692_vm1, %v5012_v50, 0.0 }
0x15d0   : > { %3035 = vmatpush.bf16.xpose.msrb.mxu1 %v3026_v6 }
0x15d7   : > { %3927 = vmatmul.msk.bf16.vlgmr.msrb.gmra.mxu1 %vm876_vm7, %v2944_v59 }
0x15d9   : > { %v2997_v9 = vpop.permute.xlu1 %2996 }
0x15da   : > { %v3002_v10 = vsel %vm876_vm7, %v2997_v9, 0 }
0x15db   : > { %3011 = vmatpush.bf16.xpose.msrb.mxu0 %v3002_v10 }
0x15de   : > { %v2973_v11 = vpop.permute.xlu0 %2972 }
0x15df   : > { %v2978_v12 = vsel %vm876_vm7, %v2973_v11, 0 }
0x15e0   : > { %2987 = vmatpush.bf16.xpose.msra.mxu3 %v2978_v12  ;;  %v3932_v12 = vld [vmem:[%s5133_s7 + $0x10] sm:$0xf] }
0x15e2   : > { %3926 = vmatmul.msk.bf16.vlgmr.msrb.gmra.mxu0 %vm876_vm7, %v2943_v42 }
0x15e7   : > { %3925 = vmatmul.msk.bf16.vlgmr.msra.gmra.mxu3 %vm876_vm7, %v2942_v53 }
0x1652   : > { %v2965_v7 = vpop.f32.mrf.mxu2 }
0x1653   : > { %v3041_v13 = vsel %vm968_vm8, %v2965_v7, -inf }
0x1654   : > { %3042 = vmax.xlane.f32.xlu0 %v3041_v13  ;;  %v3037_v14 = vpop.f32.mrf.mxu1  ;;  %v3935_v13 = vld [vmem:[%s5133_s7 + $0x1c] sm:$0xf] }
0x1655   : > { %v3050_v16 = vsel %vm968_vm8, %v3037_v14, -inf }
0x165a   : > { %v2967_v15 = vpop.f32.mrf.mxu2 }
0x165c   : > { %3051 = vmax.xlane.f32.xlu0 %v3050_v16  ;;  %v3039_v17 = vpop.f32.mrf.mxu1 }
0x165f   : > { %v3013_v22 = vpop.f32.mrf.mxu0 }
0x1660   : > { %v3047_v18 = vsel %vm968_vm8, %v3013_v22, -inf }
0x1661   : > { %3048 = vmax.xlane.f32.xlu1 %v3047_v18 }
0x1667   : > { %v3015_v19 = vpop.f32.mrf.mxu0 }
0x166a   : > { %v2989_v20 = vpop.f32.mrf.mxu3 }
0x166b   : > { %v3044_v8 = vsel %vm968_vm8, %v2989_v20, -inf }
0x166c   : > { %3045 = vmax.xlane.f32.xlu2 %v3044_v8 }
0x1672   : > { %v2991_v21 = vpop.f32.mrf.mxu3 }
0x1684   : > { %3089 = vrot.lane.b32.xlu2 %v2947_v60, %s5154_s26 }
0x16c7   : > { %v3043_v23 = vpop.xlane.xlu0 %3042 }
0x16c8   : > { %v3053_v56 = vsub.f32 %v2965_v7, %v3043_v23  ;;  %v3185_v7 = vsel %vm1117_vm12, %v3932_v12, 0 }
0x16ca   : > { %v3057_v24 = vmul.f32 1.442695, %v3053_v56 }
0x16cc   : > { %4197 = vpow2.f32 %v3057_v24 }
0x16cf   : > { %v3052_v27 = vpop.xlane.xlu0 %3051 }
0x16d0   : > { %v3056_v30 = vsub.f32 %v3037_v14, %v3052_v27  ;;  %v3934_v14 = vld [vmem:[%s5133_s7 + $0x18] sm:$0xf] }
0x16d1   : > { %v3223_v16 = vsel %vm1117_vm12, %v3934_v14, 0 }
0x16d2   : > { %v4198_v25 = vpop.eup %4197  ;;  %v3063_v35 = vmul.f32 1.442695, %v3056_v30 }
0x16d3   : > { %v3065_v26 = vsel %vm968_vm8, %v4198_v25, 0.0 }
0x16d4   : > { %v3049_v28 = vpop.xlane.xlu1 %3048  ;;  %3066 = vadd.xlane.f32.xlu2 %v3065_v26 }
0x16d5   : > { %v3055_v29 = vsub.f32 %v3013_v22, %v3049_v28  ;;  %v3933_v22 = vld [vmem:[%s5133_s7 + $0x14] sm:$0xf] }
0x16d6   : > { %v3204_v18 = vsel %vm1117_vm12, %v3933_v22, 0 }
0x16d7   : > { %v3061_v34 = vmul.f32 1.442695, %v3055_v29 }
0x16d9   : > { %4199 = vpow2.f32 %v3061_v34 }
0x16da   : > { %4201 = vpow2.f32 %v3063_v35 }
0x16df   : > { %v4200_v36 = vpop.eup %4199  ;;  %v3046_v37 = vpop.xlane.xlu2 %3045 }
0x16e0   : > { %v3054_v38 = vsub.f32 %v2989_v20, %v3046_v37  ;;  %v3071_v39 = vsel %vm968_vm8, %v4200_v36, 0.0  ;;  %v4202_v41 = vpop.eup %4201 }
0x16e1   : > { %3072 = vadd.xlane.f32.xlu1 %v3071_v39  ;;  %v3074_v43 = vsel %vm968_vm8, %v4202_v41, 0.0 }
0x16e2   : > { %v3059_v40 = vmul.f32 1.442695, %v3054_v38 }
0x16e4   : > { %4203 = vpow2.f32 %v3059_v40 }
0x16e7   : > { %v3090_v42 = vpop.permute.xlu2 %3089 }
0x16e8   : > { %v3095_v33 = vand.u32 %v3090_v42, %v4462_v52 }
0x16e9   : > { %3075 = vadd.xlane.f32.xlu1 %v3074_v43 }
0x16ea   : > { %v4204_v44 = vpop.eup %4203  ;;  %3104 = vmatpush.bf16.msrb.mxu2 %v3095_v33 }
0x16eb   : > { %v3068_v45 = vsel %vm968_vm8, %v4204_v44, 0.0 }
0x16ec   : > { %3152 = vrot.lane.b32.xlu2 %v4979_v1, %s5154_s26  ;;  %3069 = vadd.xlane.f32.xlu0 %v3068_v45 }
0x16ee   : > { %3194 = vmatpush.bf16.msra.mxu2 %v3185_v7 }
0x1700   : > { %3110 = vrot.lane.b32.xlu0 %v4974_v61, %s5154_s26 }
0x1702   : > { %3131 = vrot.lane.b32.xlu1 %v4970_v49, %s5154_s26 }
0x172c   : > { %1980 = vadd.xlane.f32.xlu1 %v1979_v51 }
0x1747   : > { %v3067_v53 = vpop.xlane.xlu2 %3066 }
0x1748   : > { %4205 = vrcp.f32 %v3067_v53 }
0x174e   : > { %v4206_v55 = vpop.eup %4205 }
0x174f   : > { %v3081_v54 = vmul.f32 %v4206_v55, %v4198_v25  ;;  %v3153_v57 = vpop.permute.xlu2 %3152 }
0x1750   : > { %v3158_v49 = vand.u32 %v3153_v57, %v4462_v52 }
0x1751   : > { %v3085_v58 = vpack.c.bf16 %v3081_v54, %v3081_v54 }
0x1752   : > { %3167 = vmatpush.bf16.msra.mxu1 %v3158_v49 }
0x1753   : > { %3928 = vmatmul.msk.bf16.vlgmr.msrb.gmra.mxu2 %vm1019_vm11, %v3085_v58 }
0x1754   : > { %v3073_v59 = vpop.xlane.xlu1 %3072 }
0x175c   : > { %v3076_v32 = vpop.xlane.xlu1 %3075 }
0x175d   : > { %4207 = vrcp.f32 %v3076_v32 }
0x175f   : > { %v3070_v62 = vpop.xlane.xlu0 %3069 }
0x1760   : > { %4209 = vrcp.f32 %v3070_v62 }
0x1761   : > { %4211 = vrcp.f32 %v3073_v59 }
0x1763   : > { %v4208_v47 = vpop.eup %4207 }
0x1764   : > { %v3084_v60 = vmul.f32 %v4208_v47, %v4202_v41 }
0x1766   : > { %v3088_v61 = vpack.c.bf16 %v3084_v60, %v3084_v60  ;;  %v4210_v63 = vpop.eup %4209  ;;  %v4062_v60 = vld [vmem:[%s5137_s11 + $0x18] sm:$0xff] }
0x1767   : > { %v4212_v0 = vpop.eup %4211  ;;  %v3082_v1 = vmul.f32 %v4210_v63, %v4204_v44  ;;  %v4118_v44 = vld [vmem:[%s5134_s8 + $0x1] ss:$0 sm:$0xff]  ;;  %3332 = vmatpush.bf16.msrb.mxu2 %v4062_v60 }
0x1768   : > { %3931 = vmatmul.msk.bf16.vlgmr.msra.gmra.mxu1 %vm1019_vm11, %v3088_v61  ;;  %v3083_v5 = vmul.f32 %v4212_v0, %v4200_v36  ;;  %v4061_v61 = vld [vmem:[%s5137_s11 + $0x10] sm:$0xff] }
0x1769   : > { %v3086_v10 = vpack.c.bf16 %v3082_v1, %v3082_v1 }
0x176a   : > { %v3087_v11 = vpack.c.bf16 %v3083_v5, %v3083_v5 }
0x176b   : > { %3333 = vmatpush.bf16.msrb.mxu2 %v4061_v61 }
0x1772   : > { %v3111_v3 = vpop.permute.xlu0 %3110 }
0x1773   : > { %v3116_v4 = vand.u32 %v3111_v3, %v4462_v52 }
0x1774   : > { %v3132_v6 = vpop.permute.xlu1 %3131 }
0x1775   : > { %v3137_v9 = vand.u32 %v3132_v6, %v4462_v52  ;;  %3125 = vmatpush.bf16.msrb.mxu3 %v3116_v4  ;;  %v3242_v52 = vsel %vm1117_vm12, %v3935_v13, 0  ;;  %v4119_v13 = vld [vmem:[%s5135_s9 + $0x1] ss:$0 sm:$0xff] }
0x1776   : > { %3251 = vmatpush.bf16.msrb.mxu1 %v3242_v52 }
0x1777   : > { %3146 = vmatpush.bf16.msra.mxu0 %v3137_v9 }
0x1778   : > { %3929 = vmatmul.msk.bf16.vlgmr.msrb.gmra.mxu3 %vm1019_vm11, %v3086_v10 }
0x1779   : > { %3213 = vmatpush.bf16.msra.mxu3 %v3204_v18 }
0x177a   : > { %3930 = vmatmul.msk.bf16.vlgmr.msra.gmra.mxu0 %vm1019_vm11, %v3087_v11 }
0x177b   : > { %3232 = vmatpush.bf16.msrb.mxu0 %v3223_v16 }
0x179f   : > { %v1981_v53 = vpop.xlane.xlu1 %1980 }
0x17a0   : > { %v1982_v57 = vmul.f32 %v1981_v53, %v4386_v31 }
0x17a2   : > { %v1983_v59 = vsub.f32 %v5012_v50, %v1982_v57 }
0x17d6   : > { %v3106_v15 = vpop.f32.mrf.mxu2 }
0x17d7   : > { %v3173_v17 = vpack.c.bf16 %v3106_v15, %v3106_v15  ;;  %v4120_v15 = vld [vmem:[%s5136_s10 + $0x1] ss:$0 sm:$0xff] }
0x17d9   : > { %3936 = vmatmul.msk.bf16.vlgmr.msra.gmra.mxu2 %vm876_vm7, %v3173_v17 }
0x17de   : > { %v3108_v19 = vpop.f32.mrf.mxu2 }
0x17e5   : > { %v3169_v20 = vpop.f32.mrf.mxu1 }
0x17e6   : > { %v3176_v8 = vpack.c.bf16 %v3169_v20, %v3169_v20 }
0x17e8   : > { %3939 = vmatmul.msk.bf16.vlgmr.msrb.gmra.mxu1 %vm876_vm7, %v3176_v8 }
0x17ed   : > { %v3171_v21 = vpop.f32.mrf.mxu1 }
0x17ee   : > { %v4121_v21 = vld [vmem:[%s5141_s15] ss:$0 sm:$0xff] }
0x17f7   : > { %v3148_v23 = vpop.f32.mrf.mxu0 }
0x17f8   : > { %v3175_v56 = vpack.c.bf16 %v3148_v23, %v3148_v23 }
0x17fa   : > { %3938 = vmatmul.msk.bf16.vlgmr.msrb.gmra.mxu0 %vm876_vm7, %v3175_v56  ;;  %v4122_v56 = vld [vmem:[%s5142_s16] ss:$0 sm:$0xff] }
0x17fb   : > { %v3127_v24 = vpop.f32.mrf.mxu3 }
0x17fc   : > { %v3174_v25 = vpack.c.bf16 %v3127_v24, %v3127_v24 }
0x17fe   : > { %3937 = vmatmul.msk.bf16.vlgmr.msra.gmra.mxu3 %vm876_vm7, %v3174_v25 }
0x17ff   : > { %v3150_v26 = vpop.f32.mrf.mxu0 }
0x1803   : > { %v3129_v27 = vpop.f32.mrf.mxu3 }
0x1804   : > { %v4066_v27 = vld [vmem:[%s5139_s13 + $0x38] sm:$0xff] }
0x1805   : > { %3392 = vmatpush.bf16.msrb.mxu3 %v4066_v27 }
0x185c   : > { %v3196_v28 = vpop.f32.mrf.mxu2 }
0x185d   : > { %v3257_v38 = vsel %vm692_vm1, %v3196_v28, 0.0  ;;  %v4065_v28 = vld [vmem:[%s5139_s13 + $0x30] sm:$0xff] }
0x185e   : > { %3393 = vmatpush.bf16.msrb.mxu3 %v4065_v28 }
0x1864   : > { %v3198_v29 = vpop.f32.mrf.mxu2 }
0x1865   : > { %v3253_v30 = vpop.f32.mrf.mxu1  ;;  %v4064_v29 = vld [vmem:[%s5139_s13 + $0x28] sm:$0xff] }
0x1866   : > { %v3262_v33 = vsel %vm692_vm1, %v3253_v30, 0.0  ;;  %3394 = vmatpush.bf16.msrb.mxu3 %v4064_v29  ;;  %v4063_v30 = vld [vmem:[%s5139_s13 + $0x20] sm:$0xff] }
0x186a   : > { %3395 = vmatpush.bf16.msrb.mxu3 %v4063_v30 }
0x186d   : > { %v3255_v34 = vpop.f32.mrf.mxu1 }
0x186e   : > { %v4123_v34 = vld [vmem:[%s5138_s12 + $0x1] ss:$0 sm:$0xff] }
0x1877   : > { %v3234_v35 = vpop.f32.mrf.mxu0 }
0x1878   : > { %v3260_v41 = vsel %vm692_vm1, %v3234_v35, 0.0 }
0x187f   : > { %v3236_v36 = vpop.f32.mrf.mxu0 }
0x1881   : > { %v3215_v37 = vpop.f32.mrf.mxu3 }
0x1882   : > { %v3258_v39 = vsel %vm692_vm1, %v3215_v37, 0.0 }
0x1883   : > { %v3259_v40 = vadd.f32 %v3258_v39, %v3257_v38 }
0x1885   : > { %v3261_v42 = vadd.f32 %v3260_v41, %v3259_v40 }
0x1887   : > { %v3263_v43 = vadd.f32 %v3262_v33, %v3261_v42 }
0x1889   : > { %v3217_v45 = vpop.f32.mrf.mxu3  ;;  %v3264_v46 = vadd.f32 %v3263_v43, %v4916_v2  ;;  %v1984_v2 = vmul.f32 %v1983_v59, %v1983_v59 }
0x188b   : > { %v5051_v48 = vadd.f32 %v4118_v44, %v3264_v46  ;;  %v1985_v47 = vsel %vm692_vm1, %v1984_v2, 0.0 }
0x188d   : > { %v3272_v51 = vsel %vm692_vm1, %v5051_v48, 0.0 }
0x188e   : > { %3273 = vadd.xlane.f32.xlu0 %v3272_v51  ;;  %v4124_v51 = vld [vmem:[%s5140_s14 + $0x1] ss:$0 sm:$0xff] }
0x1901   : > { %v3274_v55 = vpop.xlane.xlu0 %3273 }
0x1902   : > { %v3275_v54 = vmul.f32 %v3274_v55, %v4386_v31 }
0x1904   : > { %v3276_v49 = vsub.f32 %v5051_v48, %v3275_v54 }
0x1906   : > { %v3277_v58 = vmul.f32 %v3276_v49, %v3276_v49 }
0x1908   : > { %v3278_v32 = vsel %vm692_vm1, %v3277_v58, 0.0 }
0x1909   : > { %3279 = vadd.xlane.f32.xlu2 %v3278_v32 }
0x1911   : > { %1986 = vadd.xlane.f32.xlu2 %v1985_v47 }
0x197c   : > { %v3280_v62 = vpop.xlane.xlu2 %3279 }
0x197d   : > { %v3281_v50 = vmul.f32 %v3280_v62, %v4386_v31 }
0x197f   : > { %v3282_v63 = vadd.f32 1e-12, %v3281_v50 }
0x1981   : > { %4213 = vrsqrt.f32 %v3282_v63  ;;  %vm3289_vm8 = vweird.f32 %v3282_v63 }
0x1984   : > { %v1987_v0 = vpop.xlane.xlu2 %1986 }
0x1985   : > { %v1988_v1 = vmul.f32 %v1987_v0, %v4386_v31 }
0x1987   : > { %v4214_v3 = vpop.eup %4213  ;;  %v1989_v4 = vadd.f32 1e-12, %v1988_v1 }
0x1988   : > { %v3284_v5 = vmul.f32 %v4214_v3, %v3282_v63  ;;  %vm3290_vm7 = vweird.f32 %v4214_v3 }
0x1989   : > { %4215 = vrsqrt.f32 %v1989_v4  ;;  %vm3291_vm11 = vmor %vm3289_vm8, %vm3290_vm7  ;;  %vm1996_vm13 = vweird.f32 %v1989_v4 }
0x198a   : > { %v3285_v6 = vmul.f32 %v4214_v3, %v3284_v5 }
0x198c   : > { %v3286_v9 = vmul.f32 0.5, %v3285_v6 }
0x198e   : > { %v3287_v10 = vsub.f32 1.5, %v3286_v9 }
0x198f   : > { %v4216_v11 = vpop.eup %4215 }
0x1990   : > { %v3288_v12 = vmul.f32 %v4214_v3, %v3287_v10  ;;  %v1991_v7 = vmul.f32 %v4216_v11, %v1989_v4  ;;  %vm1997_vm12 = vweird.f32 %v4216_v11  ;;  %v4125_v4 = vld [vmem:[%s5141_s15] ss:$0 sm:$0xff] }
0x1991   : > { %vm1998_vm14 = vmor %vm1996_vm13, %vm1997_vm12 }
0x1992   : > { %v3292_v52 = vsel %vm3291_vm11, %v4214_v3, %v3288_v12  ;;  %v1992_v14 = vmul.f32 %v4216_v11, %v1991_v7 }
0x1993   : > { %v3293_v16 = vmul.f32 %v3292_v52, %v3276_v49 }
0x1994   : > { %v1993_v17 = vmul.f32 0.5, %v1992_v14 }
0x1995   : > { %v3297_v22 = vmul.f32 %v4119_v13, %v3293_v16 }
0x1996   : > { %v1994_v18 = vsub.f32 1.5, %v1993_v17 }
0x1997   : > { %v3301_v19 = vadd.f32 %v4120_v15, %v3297_v22 }
0x1998   : > { %v1995_v20 = vmul.f32 %v4216_v11, %v1994_v18 }
0x1999   : > { %v3302_v8 = vpack.c.bf16 %v3301_v19, %v3301_v19 }
0x199a   : > { %v1999_v23 = vsel %vm1998_vm14, %v4216_v11, %v1995_v20 }
0x199b   : > { %v2000_v24 = vmul.f32 %v1999_v23, %v1983_v59  ;;  %3956 = vmatmul.msk.bf16.vlgmr.msrb.gmra.mxu2 %vm775_vm6, %v3302_v8 }
0x199d   : > { %v2004_v25 = vmul.f32 %v4121_v21, %v2000_v24 }
0x199f   : > { %v2008_v26 = vadd.f32 %v4122_v56, %v2004_v25 }
0x19a1   : > { %2009 = vst.msk [vmem:[%s5087_s25] sm:$0x1f] %vm692_vm1, %v2008_v26 }
0x1a1e   : > { %v3335_v35 = vpop.f32.mrf.mxu2 }
0x1a1f   : > { %v3336_v36 = vadd.f32 %v4123_v34, %v3335_v35 }
0x1a21   : > { %v3339_v37 = vmul.f32 %v3336_v36, %v3336_v36 }
0x1a23   : > { %v3340_v38 = vmul.f32 %v3339_v37, %v3336_v36 }
0x1a25   : > { %v3341_v39 = vmul.f32 0.044715, %v3340_v38 }
0x1a26   : > { %v3337_v40 = vpop.f32.mrf.mxu2 }
0x1a27   : > { %v3342_v41 = vadd.f32 %v3341_v39, %v3336_v36 }
0x1a29   : > { %v3343_v42 = vmul.f32 0.7978846, %v3342_v41 }
0x1a2b   : > { %4217 = vtanh.f32 %v3343_v42 }
0x1a31   : > { %v4218_v33 = vpop.eup %4217 }
0x1a32   : > { %v3345_v43 = vadd.f32 1.0, %v4218_v33 }
0x1a34   : > { %v3346_v44 = vmul.f32 0.5, %v3345_v43 }
0x1a36   : > { %v3347_v45 = vmul.f32 %v3346_v44, %v3336_v36 }
0x1a38   : > { %v3348_v46 = vpack.c.bf16 %v3347_v45, %v3347_v45 }
0x1a3a   : > { %3982 = vmatmul.msk.bf16.vlgmr.msrb.gmra.mxu3 %vm660_vm0, %v3348_v46 }
0x1abd   : > { %v3397_v53 = vpop.f32.mrf.mxu3 }
0x1abe   : > { %v3398_v55 = vadd.f32 %v4124_v51, %v3397_v53 }
0x1ac0   : > { %v3401_v54 = vadd.f32 %v3398_v55, %v5051_v48 }
0x1ac2   : > { %v3404_v57 = vsel %vm692_vm1, %v3401_v54, 0.0 }
0x1ac3   : > { %3405 = vadd.xlane.f32.xlu0 %v3404_v57 }
0x1ac5   : > { %v3399_v49 = vpop.f32.mrf.mxu3 }
0x1b36   : > { %v3406_v58 = vpop.xlane.xlu0 %3405 }
0x1b37   : > { %v3407_v59 = vmul.f32 %v3406_v58, %v4386_v31 }
0x1b39   : > { %v3408_v32 = vsub.f32 %v3401_v54, %v3407_v59 }
0x1b3b   : > { %v3409_v2 = vmul.f32 %v3408_v32, %v3408_v32 }
0x1b3d   : > { %v3410_v47 = vsel %vm692_vm1, %v3409_v2, 0.0 }
0x1b3e   : > { %3411 = vadd.xlane.f32.xlu0 %v3410_v47 }
0x1bb1   : > { %v3412_v60 = vpop.xlane.xlu0 %3411 }
0x1bb2   : > { %v3413_v61 = vmul.f32 %v3412_v60, %v4386_v31  ;;  %v4126_v31 = vld [vmem:[%s5142_s16] ss:$0 sm:$0xff] }
0x1bb4   : > { %v3414_v62 = vadd.f32 1e-12, %v3413_v61 }
0x1bb6   : > { %4219 = vrsqrt.f32 %v3414_v62  ;;  %vm3421_vm6 = vweird.f32 %v3414_v62 }
0x1bbc   : > { %v4220_v50 = vpop.eup %4219 }
0x1bbd   : > { %v3416_v48 = vmul.f32 %v4220_v50, %v3414_v62  ;;  %vm3422_vm0 = vweird.f32 %v4220_v50 }
0x1bbe   : > { %vm3423_vm15 = vmor %vm3421_vm6, %vm3422_vm0 }
0x1bbf   : > { %v3417_v63 = vmul.f32 %v4220_v50, %v3416_v48 }
0x1bc1   : > { %v3418_v0 = vmul.f32 0.5, %v3417_v63 }
0x1bc3   : > { %v3419_v1 = vsub.f32 1.5, %v3418_v0 }
0x1bc5   : > { %v3420_v3 = vmul.f32 %v4220_v50, %v3419_v1 }
0x1bc7   : > { %v3424_v5 = vsel %vm3423_vm15, %v4220_v50, %v3420_v3 }
0x1bc8   : > { %v3425_v6 = vmul.f32 %v3424_v5, %v3408_v32 }
0x1bca   : > { %v3429_v9 = vmul.f32 %v4125_v4, %v3425_v6 }
0x1bcc   : > { %v3433_v10 = vadd.f32 %v4126_v31, %v3429_v9 }
0x1bce   : > { %3983 = vst.msk [vmem:[%s5087_s25 + $0x8] sm:$0x1f] %vm692_vm1, %v3433_v10 }
0x1bcf PF: > { %s27_s24 = sadd.s32 1, %s4227_s24  }
0x1bd0   : > { %p24_p4 = scmp.ge.s32.totalorder %s27_s24, 4  }
0x1bd2   :  { %26 = sbr.rel (!%p24_p4) target bundleno = 3 (0x3), region = 132 }

</bundles_post_ra>
